<compile_context>
chip_gen: v7x
topology: tpu7x:2x2x1
jax: 0.10.0
libtpu: 0.0.40
codegen_flags: <defaults>
</compile_context>

<pallas_src>
import functools

import jax
import jax.numpy as jnp
from jax.experimental import pallas as pl
from jax.experimental.pallas import tpu as pltpu


def cbam_kernel(x_ref, w1_ref, w2t_ref, wsp_ref, o_ref, pad_ref, *,
                H, W, C, K, HW, START, FLATPAD):
    """One batch element per grid step, on a lane-dense (C, H*W) view."""
    P = K // 2
    x = x_ref[0]                                          # (C, HW) f32

    # ---- channel attention: global avg-pool -> 1x1 conv -> ReLU -> 1x1 conv
    #      -> sigmoid.  Tiny MLP done on the VPU (broadcast-mul + reduce).
    avg = jnp.mean(x, axis=1, keepdims=True)              # (C, 1)
    h = jnp.maximum(
        jnp.sum(avg * w1_ref[...], axis=0, keepdims=True), 0.0)       # (1, Cr)
    ca = jax.nn.sigmoid(
        jnp.sum(h * w2t_ref[...], axis=1, keepdims=True))             # (C, 1)
    x2 = x * ca                                           # (C, HW) lane-dense

    # ---- spatial attention: channel max / mean -> KxK conv (pad K//2) -> sigmoid
    max_map = jnp.max(x2, axis=0, keepdims=True)          # (1, HW)
    avg_map = jnp.mean(x2, axis=0, keepdims=True)         # (1, HW)

    # Both maps live on sublanes 0/1 of one zero-padded flat VMEM scratch.
    # Only the (128-aligned) border strips are zeroed; the interior is fully
    # overwritten every step.
    pad_ref[:, :START] = jnp.zeros((2, START), jnp.float32)
    pad_ref[:, START + HW:] = jnp.zeros((2, FLATPAD - START - HW), jnp.float32)
    pad_ref[0:1, START:START + HW] = max_map
    pad_ref[1:2, START:START + HW] = avg_map

    # Hoisted per-lane column index (w coordinate of each flat position).
    col = jax.lax.broadcasted_iota(jnp.int32, (1, HW), 1) % W

    # 2-in / 1-out KxK conv on the stacked maps.  kh-shifts are absorbed by
    # the zero-padded flat buffer; kw validity is one mask per off-center kw.
    # Partial sums use 2 (kh) x 4 (kw) independent accumulators for ILP.
    accs = [jnp.zeros((2, HW), jnp.float32) for _ in range(4)]
    for kw in range(K):
        dw = kw - P
        parts = [jnp.zeros((2, HW), jnp.float32) for _ in range(2)]
        for kh in range(K):
            dh = kh - P
            off = START + dh * W + dw                      # static slice offset
            idx = kh * K + kw
            wcol = wsp_ref[:, idx:idx + 1]                 # (2, 1): [max_w, avg_w]
            parts[kh % 2] = parts[kh % 2] + wcol * pad_ref[:, off:off + HW]
        part = parts[0] + parts[1]                         # (2, HW)
        if dw != 0:
            valid = jnp.logical_and(col + dw >= 0, col + dw < W)
            part = jnp.where(valid, part, 0.0)
        accs[kw % 4] = accs[kw % 4] + part
    conv = (accs[0] + accs[1]) + (accs[2] + accs[3])       # (2, HW)
    sa = jax.nn.sigmoid(jnp.sum(conv, axis=0, keepdims=True))         # (1, HW)

    o_ref[0] = x2 * sa                                     # dense store (HW lanes)


def cbam_pallas(x_nchw, w1, w2, wsp, kernel_size=7):
    N, C, H, W = x_nchw.shape
    K = kernel_size
    P = K // 2
    Cr = w1.shape[1]
    HW = H * W

    def _round_up(v, m):
        return (v + m - 1) // m * m

    pad_amt = P * W + P
    START = _round_up(pad_amt, 128)
    FLATPAD = _round_up(START + HW + pad_amt, 128)

    x_flat = x_nchw.reshape(N, C, HW)        # free: no transpose needed
    w2t = jnp.transpose(w2)                  # (C, Cr): channel on sublanes
    wsp2 = wsp.reshape(2, K * K)             # row 0 = max taps, row 1 = avg taps

    kern = functools.partial(cbam_kernel, H=H, W=W, C=C, K=K,
                             HW=HW, START=START, FLATPAD=FLATPAD)
    out_flat = pl.pallas_call(
        kern,
        out_shape=jax.ShapeDtypeStruct((N, C, HW), jnp.float32),
        grid_spec=pltpu.PrefetchScalarGridSpec(
            num_scalar_prefetch=0,
            grid=(N,),
            in_specs=[
                pl.BlockSpec((1, C, HW), lambda n: (n, 0, 0)),
                pl.BlockSpec((C, Cr), lambda n: (0, 0)),
                pl.BlockSpec((C, Cr), lambda n: (0, 0)),
                pl.BlockSpec((2, K * K), lambda n: (0, 0)),
            ],
            out_specs=pl.BlockSpec((1, C, HW), lambda n: (n, 0, 0)),
            scratch_shapes=[
                pltpu.VMEM((2, FLATPAD), jnp.float32),   # padded flat max/avg maps
            ],
        ),
        compiler_params=pltpu.CompilerParams(
            dimension_semantics=("parallel",)),
    )(x_flat, w1, w2t, wsp2)
    return out_flat.reshape(N, C, H, W)


def cbam_ref(x_nchw, w1, w2, wsp):
    """Pure-JAX reference matching the PyTorch module semantics (NCHW)."""
    avg = jnp.mean(x_nchw, axis=(2, 3))                       # (N, C)
    h = jnp.maximum(avg @ w1, 0.0)                            # (N, Cr)
    ca = jax.nn.sigmoid(h @ w2)                               # (N, C)
    x2 = x_nchw * ca[:, :, None, None]
    max_map = jnp.max(x2, axis=1, keepdims=True)
    avg_map = jnp.mean(x2, axis=1, keepdims=True)
    feat = jnp.concatenate([max_map, avg_map], axis=1)        # (N, 2, H, W)
    sa = jax.lax.conv_general_dilated(
        feat, wsp[None], window_strides=(1, 1), padding="SAME",
        dimension_numbers=("NCHW", "OIHW", "NCHW"))           # (N, 1, H, W)
    sa = jax.nn.sigmoid(sa)
    return x2 * sa


if __name__ == "__main__":
    N, C, H, W = 2, 32, 16, 16
    reduction_ratio, K = 16, 7
    Cr = C // reduction_ratio

    key = jax.random.PRNGKey(0)
    k1, k2, k3, k4 = jax.random.split(key, 4)
    x_nchw = jax.random.normal(k1, (N, C, H, W), jnp.float32)
    # Deterministic synthetic parameters (shapes implied by nn.Conv2d defs):
    #   conv1x1 C->C/r  -> matmul weight (C, Cr)
    #   conv1x1 C/r->C  -> matmul weight (Cr, C)
    #   conv 7x7, 2->1  -> weight (2, K, K)   [channel 0 = max map, 1 = avg map]
    w1 = 0.1 * jax.random.normal(k2, (C, Cr), jnp.float32)
    w2 = 0.1 * jax.random.normal(k3, (Cr, C), jnp.float32)
    wsp = 0.1 * jax.random.normal(k4, (2, K, K), jnp.float32)

    out = cbam_pallas(x_nchw, w1, w2, wsp, K)
    jax.block_until_ready(out)

    ref = cbam_ref(x_nchw, w1, w2, wsp)
    err = float(jnp.max(jnp.abs(out - ref)))
    assert jnp.allclose(out, ref, atol=1e-4, rtol=1e-4), f"max abs err {err}"

    print("KERNEL_OK")
</pallas_src>

<mosaic_0001>
module attributes {stable_mosaic.version = 11 : i64} {
  func.func @cbam_kernel(%arg0: i32, %arg1: memref<1x32x256xf32, #tpu.memory_space<vmem>>, %arg2: memref<32x2xf32, #tpu.memory_space<vmem>>, %arg3: memref<32x2xf32, #tpu.memory_space<vmem>>, %arg4: memref<2x49xf32, #tpu.memory_space<vmem>>, %arg5: memref<1x32x256xf32, #tpu.memory_space<vmem>>, %arg6: memref<2x512xf32, #tpu.memory_space<vmem>>) attributes {dimension_semantics = [#tpu.dimension_semantics<parallel>], iteration_bounds = array<i64: 2>, scalar_prefetch = 0 : i64, scratch_operands = 1 : i64, tpu.core_type = #tpu.core_type<tc>, window_params = [{transform_indices = @transform_0, window_bounds = array<i64: 1, 32, 256>}, {pipeline_mode = #tpu.pipeline_mode<synchronous>, transform_indices = @transform_1, window_bounds = array<i64: 32, 2>}, {pipeline_mode = #tpu.pipeline_mode<synchronous>, transform_indices = @transform_2, window_bounds = array<i64: 32, 2>}, {pipeline_mode = #tpu.pipeline_mode<synchronous>, transform_indices = @transform_3, window_bounds = array<i64: 2, 49>}, {transform_indices = @transform_4, window_bounds = array<i64: 1, 32, 256>}]} {
    %c0 = arith.constant 0 : index
    %c0_0 = arith.constant 0 : index
    %c0_1 = arith.constant 0 : index
    %0 = vector.load %arg1[%c0, %c0_0, %c0_1] : memref<1x32x256xf32, #tpu.memory_space<vmem>>, vector<1x32x256xf32>
    %1 = vector.shape_cast %0 : vector<1x32x256xf32> to vector<32x256xf32>
    %cst = arith.constant dense<0.000000e+00> : vector<32xf32>
    %2 = vector.multi_reduction <add>, %1, %cst [1] : vector<32x256xf32> to vector<32xf32>
    %3 = vector.shape_cast %2 : vector<32xf32> to vector<32x1xf32>
    %cst_2 = arith.constant 2.560000e+02 : f32
    %4 = vector.broadcast %cst_2 : f32 to vector<32x1xf32>
    %5 = arith.divf %3, %4 : vector<32x1xf32>
    %c0_3 = arith.constant 0 : index
    %c0_4 = arith.constant 0 : index
    %6 = vector.load %arg2[%c0_3, %c0_4] : memref<32x2xf32, #tpu.memory_space<vmem>>, vector<32x2xf32>
    %7 = vector.broadcast %5 : vector<32x1xf32> to vector<32x2xf32>
    %8 = arith.mulf %7, %6 : vector<32x2xf32>
    %cst_5 = arith.constant dense<0.000000e+00> : vector<2xf32>
    %9 = vector.multi_reduction <add>, %8, %cst_5 [0] : vector<32x2xf32> to vector<2xf32>
    %10 = vector.shape_cast %9 : vector<2xf32> to vector<1x2xf32>
    %cst_6 = arith.constant 0.000000e+00 : f32
    %11 = vector.broadcast %cst_6 : f32 to vector<1x2xf32>
    %12 = arith.maximumf %10, %11 : vector<1x2xf32>
    %c0_7 = arith.constant 0 : index
    %c0_8 = arith.constant 0 : index
    %13 = vector.load %arg3[%c0_7, %c0_8] : memref<32x2xf32, #tpu.memory_space<vmem>>, vector<32x2xf32>
    %14 = vector.broadcast %12 : vector<1x2xf32> to vector<32x2xf32>
    %15 = arith.mulf %14, %13 : vector<32x2xf32>
    %cst_9 = arith.constant dense<0.000000e+00> : vector<32xf32>
    %16 = vector.multi_reduction <add>, %15, %cst_9 [1] : vector<32x2xf32> to vector<32xf32>
    %17 = vector.shape_cast %16 : vector<32xf32> to vector<32x1xf32>
    %18 = arith.negf %17 : vector<32x1xf32>
    %19 = math.exp %18 : vector<32x1xf32>
    %cst_10 = arith.constant 1.000000e+00 : f32
    %20 = vector.broadcast %cst_10 : f32 to vector<32x1xf32>
    %21 = arith.addf %20, %19 : vector<32x1xf32>
    %22 = arith.divf %20, %21 : vector<32x1xf32>
    %23 = vector.broadcast %22 : vector<32x1xf32> to vector<32x256xf32>
    %24 = arith.mulf %1, %23 : vector<32x256xf32>
    %cst_11 = arith.constant dense<0xFF800000> : vector<256xf32>
    %25 = vector.multi_reduction <maximumf>, %24, %cst_11 [0] : vector<32x256xf32> to vector<256xf32>
    %26 = vector.shape_cast %25 : vector<256xf32> to vector<1x256xf32>
    %cst_12 = arith.constant dense<0.000000e+00> : vector<256xf32>
    %27 = vector.multi_reduction <add>, %24, %cst_12 [0] : vector<32x256xf32> to vector<256xf32>
    %28 = vector.shape_cast %27 : vector<256xf32> to vector<1x256xf32>
    %cst_13 = arith.constant 3.200000e+01 : f32
    %29 = vector.broadcast %cst_13 : f32 to vector<1x256xf32>
    %30 = arith.divf %28, %29 : vector<1x256xf32>
    %cst_14 = arith.constant 0.000000e+00 : f32
    %31 = vector.broadcast %cst_14 : f32 to vector<2x128xf32>
    %c0_15 = arith.constant 0 : index
    %c0_16 = arith.constant 0 : index
    %32 = vector.load %arg6[%c0_15, %c0_16] : memref<2x512xf32, #tpu.memory_space<vmem>>, vector<2x128xf32>
    tpu.vector_store %arg6[%c0_15, %c0_16], %31 {strides = array<i32>} : memref<2x512xf32, #tpu.memory_space<vmem>>, vector<2x128xf32>,
    %cst_17 = arith.constant 0.000000e+00 : f32
    %33 = vector.broadcast %cst_17 : f32 to vector<2x128xf32>
    %c0_18 = arith.constant 0 : index
    %c384 = arith.constant 384 : index
    %34 = vector.load %arg6[%c0_18, %c384] : memref<2x512xf32, #tpu.memory_space<vmem>>, vector<2x128xf32>
    tpu.vector_store %arg6[%c0_18, %c384], %33 {strides = array<i32>} : memref<2x512xf32, #tpu.memory_space<vmem>>, vector<2x128xf32>,
    %c0_19 = arith.constant 0 : index
    %c128 = arith.constant 128 : index
    %35 = vector.load %arg6[%c0_19, %c128] : memref<2x512xf32, #tpu.memory_space<vmem>>, vector<1x256xf32>
    tpu.vector_store %arg6[%c0_19, %c128], %26 {strides = array<i32>} : memref<2x512xf32, #tpu.memory_space<vmem>>, vector<1x256xf32>,
    %c1 = arith.constant 1 : index
    %c128_20 = arith.constant 128 : index
    %36 = vector.load %arg6[%c1, %c128_20] : memref<2x512xf32, #tpu.memory_space<vmem>>, vector<1x256xf32>
    tpu.vector_store %arg6[%c1, %c128_20], %30 {strides = array<i32>} : memref<2x512xf32, #tpu.memory_space<vmem>>, vector<1x256xf32>,
    %37 = tpu.iota {dimensions = array<i32: 1>} : vector<1x256xi32>
    %c16_i32 = arith.constant 16 : i32
    %c0_i32 = arith.constant 0 : i32
    %38 = arith.cmpi eq, %c16_i32, %c0_i32 : i32
    %c1_i32 = arith.constant 1 : i32
    %39 = arith.select %38, %c1_i32, %c16_i32 : i32
    %40 = vector.broadcast %39 : i32 to vector<1x256xi32>
    %41 = arith.remsi %37, %40 : vector<1x256xi32>
    %c0_i32_21 = arith.constant 0 : i32
    %42 = vector.broadcast %c0_i32_21 : i32 to vector<1x256xi32>
    %43 = arith.cmpi ne, %41, %42 : vector<1x256xi32>
    %c0_i32_22 = arith.constant 0 : i32
    %44 = vector.broadcast %c0_i32_22 : i32 to vector<1x256xi32>
    %45 = arith.cmpi slt, %41, %44 : vector<1x256xi32>
    %c0_i32_23 = arith.constant 0 : i32
    %46 = arith.cmpi slt, %39, %c0_i32_23 : i32
    %47 = vector.broadcast %46 : i1 to vector<1x256xi1>
    %48 = vector.broadcast %47 : vector<1x256xi1> to vector<1x256xi1>
    %49 = arith.xori %45, %48 : vector<1x256xi1>
    %50 = arith.andi %49, %43 : vector<1x256xi1>
    %51 = vector.broadcast %39 : i32 to vector<1x256xi32>
    %52 = arith.addi %41, %51 : vector<1x256xi32>
    %53 = arith.select %50, %52, %41 : vector<1x256xi1>, vector<1x256xi32>
    %cst_24 = arith.constant 0.000000e+00 : f32
    %54 = vector.broadcast %cst_24 : f32 to vector<2x256xf32>
    %cst_25 = arith.constant 0.000000e+00 : f32
    %55 = vector.broadcast %cst_25 : f32 to vector<2x256xf32>
    %cst_26 = arith.constant 0.000000e+00 : f32
    %56 = vector.broadcast %cst_26 : f32 to vector<2x256xf32>
    %cst_27 = arith.constant 0.000000e+00 : f32
    %57 = vector.broadcast %cst_27 : f32 to vector<2x256xf32>
    %cst_28 = arith.constant 0.000000e+00 : f32
    %58 = vector.broadcast %cst_28 : f32 to vector<2x256xf32>
    %cst_29 = arith.constant 0.000000e+00 : f32
    %59 = vector.broadcast %cst_29 : f32 to vector<2x256xf32>
    %c0_30 = arith.constant 0 : index
    %c0_31 = arith.constant 0 : index
    %60 = vector.load %arg4[%c0_30, %c0_31] : memref<2x49xf32, #tpu.memory_space<vmem>>, vector<2x1xf32>
    %c0_32 = arith.constant 0 : index
    %c77 = arith.constant 77 : index
    %61 = vector.load %arg6[%c0_32, %c77] : memref<2x512xf32, #tpu.memory_space<vmem>>, vector<2x256xf32>
    %62 = vector.broadcast %60 : vector<2x1xf32> to vector<2x256xf32>
    %63 = arith.mulf %62, %61 : vector<2x256xf32>
    %64 = arith.addf %58, %63 : vector<2x256xf32>
    %c0_33 = arith.constant 0 : index
    %c7 = arith.constant 7 : index
    %65 = vector.load %arg4[%c0_33, %c7] : memref<2x49xf32, #tpu.memory_space<vmem>>, vector<2x1xf32>
    %c0_34 = arith.constant 0 : index
    %c93 = arith.constant 93 : index
    %66 = vector.load %arg6[%c0_34, %c93] : memref<2x512xf32, #tpu.memory_space<vmem>>, vector<2x256xf32>
    %67 = vector.broadcast %65 : vector<2x1xf32> to vector<2x256xf32>
    %68 = arith.mulf %67, %66 : vector<2x256xf32>
    %69 = arith.addf %59, %68 : vector<2x256xf32>
    %c0_35 = arith.constant 0 : index
    %c14 = arith.constant 14 : index
    %70 = vector.load %arg4[%c0_35, %c14] : memref<2x49xf32, #tpu.memory_space<vmem>>, vector<2x1xf32>
    %c0_36 = arith.constant 0 : index
    %c109 = arith.constant 109 : index
    %71 = vector.load %arg6[%c0_36, %c109] : memref<2x512xf32, #tpu.memory_space<vmem>>, vector<2x256xf32>
    %72 = vector.broadcast %70 : vector<2x1xf32> to vector<2x256xf32>
    %73 = arith.mulf %72, %71 : vector<2x256xf32>
    %74 = arith.addf %64, %73 : vector<2x256xf32>
    %c0_37 = arith.constant 0 : index
    %c21 = arith.constant 21 : index
    %75 = vector.load %arg4[%c0_37, %c21] : memref<2x49xf32, #tpu.memory_space<vmem>>, vector<2x1xf32>
    %c0_38 = arith.constant 0 : index
    %c125 = arith.constant 125 : index
    %76 = vector.load %arg6[%c0_38, %c125] : memref<2x512xf32, #tpu.memory_space<vmem>>, vector<2x256xf32>
    %77 = vector.broadcast %75 : vector<2x1xf32> to vector<2x256xf32>
    %78 = arith.mulf %77, %76 : vector<2x256xf32>
    %79 = arith.addf %69, %78 : vector<2x256xf32>
    %c0_39 = arith.constant 0 : index
    %c28 = arith.constant 28 : index
    %80 = vector.load %arg4[%c0_39, %c28] : memref<2x49xf32, #tpu.memory_space<vmem>>, vector<2x1xf32>
    %c0_40 = arith.constant 0 : index
    %c141 = arith.constant 141 : index
    %81 = vector.load %arg6[%c0_40, %c141] : memref<2x512xf32, #tpu.memory_space<vmem>>, vector<2x256xf32>
    %82 = vector.broadcast %80 : vector<2x1xf32> to vector<2x256xf32>
    %83 = arith.mulf %82, %81 : vector<2x256xf32>
    %84 = arith.addf %74, %83 : vector<2x256xf32>
    %c0_41 = arith.constant 0 : index
    %c35 = arith.constant 35 : index
    %85 = vector.load %arg4[%c0_41, %c35] : memref<2x49xf32, #tpu.memory_space<vmem>>, vector<2x1xf32>
    %c0_42 = arith.constant 0 : index
    %c157 = arith.constant 157 : index
    %86 = vector.load %arg6[%c0_42, %c157] : memref<2x512xf32, #tpu.memory_space<vmem>>, vector<2x256xf32>
    %87 = vector.broadcast %85 : vector<2x1xf32> to vector<2x256xf32>
    %88 = arith.mulf %87, %86 : vector<2x256xf32>
    %89 = arith.addf %79, %88 : vector<2x256xf32>
    %c0_43 = arith.constant 0 : index
    %c42 = arith.constant 42 : index
    %90 = vector.load %arg4[%c0_43, %c42] : memref<2x49xf32, #tpu.memory_space<vmem>>, vector<2x1xf32>
    %c0_44 = arith.constant 0 : index
    %c173 = arith.constant 173 : index
    %91 = vector.load %arg6[%c0_44, %c173] : memref<2x512xf32, #tpu.memory_space<vmem>>, vector<2x256xf32>
    %92 = vector.broadcast %90 : vector<2x1xf32> to vector<2x256xf32>
    %93 = arith.mulf %92, %91 : vector<2x256xf32>
    %94 = arith.addf %84, %93 : vector<2x256xf32>
    %95 = arith.addf %94, %89 : vector<2x256xf32>
    %c-3_i32 = arith.constant -3 : i32
    %96 = vector.broadcast %c-3_i32 : i32 to vector<1x256xi32>
    %97 = arith.addi %53, %96 : vector<1x256xi32>
    %c0_i32_45 = arith.constant 0 : i32
    %98 = vector.broadcast %c0_i32_45 : i32 to vector<1x256xi32>
    %99 = arith.cmpi sge, %97, %98 : vector<1x256xi32>
    %c-3_i32_46 = arith.constant -3 : i32
    %100 = vector.broadcast %c-3_i32_46 : i32 to vector<1x256xi32>
    %101 = arith.addi %53, %100 : vector<1x256xi32>
    %c16_i32_47 = arith.constant 16 : i32
    %102 = vector.broadcast %c16_i32_47 : i32 to vector<1x256xi32>
    %103 = arith.cmpi slt, %101, %102 : vector<1x256xi32>
    %104 = arith.andi %99, %103 : vector<1x256xi1>
    %cst_48 = arith.constant 0.000000e+00 : f32
    %105 = vector.shape_cast %104 : vector<1x256xi1> to vector<1x256xi1>
    %106 = vector.broadcast %105 : vector<1x256xi1> to vector<2x256xi1>
    %107 = vector.broadcast %cst_48 : f32 to vector<2x256xf32>
    %108 = arith.select %106, %95, %107 : vector<2x256xi1>, vector<2x256xf32>
    %109 = arith.addf %54, %108 : vector<2x256xf32>
    %cst_49 = arith.constant 0.000000e+00 : f32
    %110 = vector.broadcast %cst_49 : f32 to vector<2x256xf32>
    %cst_50 = arith.constant 0.000000e+00 : f32
    %111 = vector.broadcast %cst_50 : f32 to vector<2x256xf32>
    %c0_51 = arith.constant 0 : index
    %c1_52 = arith.constant 1 : index
    %112 = vector.load %arg4[%c0_51, %c1_52] : memref<2x49xf32, #tpu.memory_space<vmem>>, vector<2x1xf32>
    %c0_53 = arith.constant 0 : index
    %c78 = arith.constant 78 : index
    %113 = vector.load %arg6[%c0_53, %c78] : memref<2x512xf32, #tpu.memory_space<vmem>>, vector<2x256xf32>
    %114 = vector.broadcast %112 : vector<2x1xf32> to vector<2x256xf32>
    %115 = arith.mulf %114, %113 : vector<2x256xf32>
    %116 = arith.addf %110, %115 : vector<2x256xf32>
    %c0_54 = arith.constant 0 : index
    %c8 = arith.constant 8 : index
    %117 = vector.load %arg4[%c0_54, %c8] : memref<2x49xf32, #tpu.memory_space<vmem>>, vector<2x1xf32>
    %c0_55 = arith.constant 0 : index
    %c94 = arith.constant 94 : index
    %118 = vector.load %arg6[%c0_55, %c94] : memref<2x512xf32, #tpu.memory_space<vmem>>, vector<2x256xf32>
    %119 = vector.broadcast %117 : vector<2x1xf32> to vector<2x256xf32>
    %120 = arith.mulf %119, %118 : vector<2x256xf32>
    %121 = arith.addf %111, %120 : vector<2x256xf32>
    %c0_56 = arith.constant 0 : index
    %c15 = arith.constant 15 : index
    %122 = vector.load %arg4[%c0_56, %c15] : memref<2x49xf32, #tpu.memory_space<vmem>>, vector<2x1xf32>
    %c0_57 = arith.constant 0 : index
    %c110 = arith.constant 110 : index
    %123 = vector.load %arg6[%c0_57, %c110] : memref<2x512xf32, #tpu.memory_space<vmem>>, vector<2x256xf32>
    %124 = vector.broadcast %122 : vector<2x1xf32> to vector<2x256xf32>
    %125 = arith.mulf %124, %123 : vector<2x256xf32>
    %126 = arith.addf %116, %125 : vector<2x256xf32>
    %c0_58 = arith.constant 0 : index
    %c22 = arith.constant 22 : index
    %127 = vector.load %arg4[%c0_58, %c22] : memref<2x49xf32, #tpu.memory_space<vmem>>, vector<2x1xf32>
    %c0_59 = arith.constant 0 : index
    %c126 = arith.constant 126 : index
    %128 = vector.load %arg6[%c0_59, %c126] : memref<2x512xf32, #tpu.memory_space<vmem>>, vector<2x256xf32>
    %129 = vector.broadcast %127 : vector<2x1xf32> to vector<2x256xf32>
    %130 = arith.mulf %129, %128 : vector<2x256xf32>
    %131 = arith.addf %121, %130 : vector<2x256xf32>
    %c0_60 = arith.constant 0 : index
    %c29 = arith.constant 29 : index
    %132 = vector.load %arg4[%c0_60, %c29] : memref<2x49xf32, #tpu.memory_space<vmem>>, vector<2x1xf32>
    %c0_61 = arith.constant 0 : index
    %c142 = arith.constant 142 : index
    %133 = vector.load %arg6[%c0_61, %c142] : memref<2x512xf32, #tpu.memory_space<vmem>>, vector<2x256xf32>
    %134 = vector.broadcast %132 : vector<2x1xf32> to vector<2x256xf32>
    %135 = arith.mulf %134, %133 : vector<2x256xf32>
    %136 = arith.addf %126, %135 : vector<2x256xf32>
    %c0_62 = arith.constant 0 : index
    %c36 = arith.constant 36 : index
    %137 = vector.load %arg4[%c0_62, %c36] : memref<2x49xf32, #tpu.memory_space<vmem>>, vector<2x1xf32>
    %c0_63 = arith.constant 0 : index
    %c158 = arith.constant 158 : index
    %138 = vector.load %arg6[%c0_63, %c158] : memref<2x512xf32, #tpu.memory_space<vmem>>, vector<2x256xf32>
    %139 = vector.broadcast %137 : vector<2x1xf32> to vector<2x256xf32>
    %140 = arith.mulf %139, %138 : vector<2x256xf32>
    %141 = arith.addf %131, %140 : vector<2x256xf32>
    %c0_64 = arith.constant 0 : index
    %c43 = arith.constant 43 : index
    %142 = vector.load %arg4[%c0_64, %c43] : memref<2x49xf32, #tpu.memory_space<vmem>>, vector<2x1xf32>
    %c0_65 = arith.constant 0 : index
    %c174 = arith.constant 174 : index
    %143 = vector.load %arg6[%c0_65, %c174] : memref<2x512xf32, #tpu.memory_space<vmem>>, vector<2x256xf32>
    %144 = vector.broadcast %142 : vector<2x1xf32> to vector<2x256xf32>
    %145 = arith.mulf %144, %143 : vector<2x256xf32>
    %146 = arith.addf %136, %145 : vector<2x256xf32>
    %147 = arith.addf %146, %141 : vector<2x256xf32>
    %c-2_i32 = arith.constant -2 : i32
    %148 = vector.broadcast %c-2_i32 : i32 to vector<1x256xi32>
    %149 = arith.addi %53, %148 : vector<1x256xi32>
    %c0_i32_66 = arith.constant 0 : i32
    %150 = vector.broadcast %c0_i32_66 : i32 to vector<1x256xi32>
    %151 = arith.cmpi sge, %149, %150 : vector<1x256xi32>
    %c-2_i32_67 = arith.constant -2 : i32
    %152 = vector.broadcast %c-2_i32_67 : i32 to vector<1x256xi32>
    %153 = arith.addi %53, %152 : vector<1x256xi32>
    %c16_i32_68 = arith.constant 16 : i32
    %154 = vector.broadcast %c16_i32_68 : i32 to vector<1x256xi32>
    %155 = arith.cmpi slt, %153, %154 : vector<1x256xi32>
    %156 = arith.andi %151, %155 : vector<1x256xi1>
    %cst_69 = arith.constant 0.000000e+00 : f32
    %157 = vector.shape_cast %156 : vector<1x256xi1> to vector<1x256xi1>
    %158 = vector.broadcast %157 : vector<1x256xi1> to vector<2x256xi1>
    %159 = vector.broadcast %cst_69 : f32 to vector<2x256xf32>
    %160 = arith.select %158, %147, %159 : vector<2x256xi1>, vector<2x256xf32>
    %161 = arith.addf %55, %160 : vector<2x256xf32>
    %cst_70 = arith.constant 0.000000e+00 : f32
    %162 = vector.broadcast %cst_70 : f32 to vector<2x256xf32>
    %cst_71 = arith.constant 0.000000e+00 : f32
    %163 = vector.broadcast %cst_71 : f32 to vector<2x256xf32>
    %c0_72 = arith.constant 0 : index
    %c2 = arith.constant 2 : index
    %164 = vector.load %arg4[%c0_72, %c2] : memref<2x49xf32, #tpu.memory_space<vmem>>, vector<2x1xf32>
    %c0_73 = arith.constant 0 : index
    %c79 = arith.constant 79 : index
    %165 = vector.load %arg6[%c0_73, %c79] : memref<2x512xf32, #tpu.memory_space<vmem>>, vector<2x256xf32>
    %166 = vector.broadcast %164 : vector<2x1xf32> to vector<2x256xf32>
    %167 = arith.mulf %166, %165 : vector<2x256xf32>
    %168 = arith.addf %162, %167 : vector<2x256xf32>
    %c0_74 = arith.constant 0 : index
    %c9 = arith.constant 9 : index
    %169 = vector.load %arg4[%c0_74, %c9] : memref<2x49xf32, #tpu.memory_space<vmem>>, vector<2x1xf32>
    %c0_75 = arith.constant 0 : index
    %c95 = arith.constant 95 : index
    %170 = vector.load %arg6[%c0_75, %c95] : memref<2x512xf32, #tpu.memory_space<vmem>>, vector<2x256xf32>
    %171 = vector.broadcast %169 : vector<2x1xf32> to vector<2x256xf32>
    %172 = arith.mulf %171, %170 : vector<2x256xf32>
    %173 = arith.addf %163, %172 : vector<2x256xf32>
    %c0_76 = arith.constant 0 : index
    %c16 = arith.constant 16 : index
    %174 = vector.load %arg4[%c0_76, %c16] : memref<2x49xf32, #tpu.memory_space<vmem>>, vector<2x1xf32>
    %c0_77 = arith.constant 0 : index
    %c111 = arith.constant 111 : index
    %175 = vector.load %arg6[%c0_77, %c111] : memref<2x512xf32, #tpu.memory_space<vmem>>, vector<2x256xf32>
    %176 = vector.broadcast %174 : vector<2x1xf32> to vector<2x256xf32>
    %177 = arith.mulf %176, %175 : vector<2x256xf32>
    %178 = arith.addf %168, %177 : vector<2x256xf32>
    %c0_78 = arith.constant 0 : index
    %c23 = arith.constant 23 : index
    %179 = vector.load %arg4[%c0_78, %c23] : memref<2x49xf32, #tpu.memory_space<vmem>>, vector<2x1xf32>
    %c0_79 = arith.constant 0 : index
    %c127 = arith.constant 127 : index
    %180 = vector.load %arg6[%c0_79, %c127] : memref<2x512xf32, #tpu.memory_space<vmem>>, vector<2x256xf32>
    %181 = vector.broadcast %179 : vector<2x1xf32> to vector<2x256xf32>
    %182 = arith.mulf %181, %180 : vector<2x256xf32>
    %183 = arith.addf %173, %182 : vector<2x256xf32>
    %c0_80 = arith.constant 0 : index
    %c30 = arith.constant 30 : index
    %184 = vector.load %arg4[%c0_80, %c30] : memref<2x49xf32, #tpu.memory_space<vmem>>, vector<2x1xf32>
    %c0_81 = arith.constant 0 : index
    %c143 = arith.constant 143 : index
    %185 = vector.load %arg6[%c0_81, %c143] : memref<2x512xf32, #tpu.memory_space<vmem>>, vector<2x256xf32>
    %186 = vector.broadcast %184 : vector<2x1xf32> to vector<2x256xf32>
    %187 = arith.mulf %186, %185 : vector<2x256xf32>
    %188 = arith.addf %178, %187 : vector<2x256xf32>
    %c0_82 = arith.constant 0 : index
    %c37 = arith.constant 37 : index
    %189 = vector.load %arg4[%c0_82, %c37] : memref<2x49xf32, #tpu.memory_space<vmem>>, vector<2x1xf32>
    %c0_83 = arith.constant 0 : index
    %c159 = arith.constant 159 : index
    %190 = vector.load %arg6[%c0_83, %c159] : memref<2x512xf32, #tpu.memory_space<vmem>>, vector<2x256xf32>
    %191 = vector.broadcast %189 : vector<2x1xf32> to vector<2x256xf32>
    %192 = arith.mulf %191, %190 : vector<2x256xf32>
    %193 = arith.addf %183, %192 : vector<2x256xf32>
    %c0_84 = arith.constant 0 : index
    %c44 = arith.constant 44 : index
    %194 = vector.load %arg4[%c0_84, %c44] : memref<2x49xf32, #tpu.memory_space<vmem>>, vector<2x1xf32>
    %c0_85 = arith.constant 0 : index
    %c175 = arith.constant 175 : index
    %195 = vector.load %arg6[%c0_85, %c175] : memref<2x512xf32, #tpu.memory_space<vmem>>, vector<2x256xf32>
    %196 = vector.broadcast %194 : vector<2x1xf32> to vector<2x256xf32>
    %197 = arith.mulf %196, %195 : vector<2x256xf32>
    %198 = arith.addf %188, %197 : vector<2x256xf32>
    %199 = arith.addf %198, %193 : vector<2x256xf32>
    %c-1_i32 = arith.constant -1 : i32
    %200 = vector.broadcast %c-1_i32 : i32 to vector<1x256xi32>
    %201 = arith.addi %53, %200 : vector<1x256xi32>
    %c0_i32_86 = arith.constant 0 : i32
    %202 = vector.broadcast %c0_i32_86 : i32 to vector<1x256xi32>
    %203 = arith.cmpi sge, %201, %202 : vector<1x256xi32>
    %c-1_i32_87 = arith.constant -1 : i32
    %204 = vector.broadcast %c-1_i32_87 : i32 to vector<1x256xi32>
    %205 = arith.addi %53, %204 : vector<1x256xi32>
    %c16_i32_88 = arith.constant 16 : i32
    %206 = vector.broadcast %c16_i32_88 : i32 to vector<1x256xi32>
    %207 = arith.cmpi slt, %205, %206 : vector<1x256xi32>
    %208 = arith.andi %203, %207 : vector<1x256xi1>
    %cst_89 = arith.constant 0.000000e+00 : f32
    %209 = vector.shape_cast %208 : vector<1x256xi1> to vector<1x256xi1>
    %210 = vector.broadcast %209 : vector<1x256xi1> to vector<2x256xi1>
    %211 = vector.broadcast %cst_89 : f32 to vector<2x256xf32>
    %212 = arith.select %210, %199, %211 : vector<2x256xi1>, vector<2x256xf32>
    %213 = arith.addf %56, %212 : vector<2x256xf32>
    %cst_90 = arith.constant 0.000000e+00 : f32
    %214 = vector.broadcast %cst_90 : f32 to vector<2x256xf32>
    %cst_91 = arith.constant 0.000000e+00 : f32
    %215 = vector.broadcast %cst_91 : f32 to vector<2x256xf32>
    %c0_92 = arith.constant 0 : index
    %c3 = arith.constant 3 : index
    %216 = vector.load %arg4[%c0_92, %c3] : memref<2x49xf32, #tpu.memory_space<vmem>>, vector<2x1xf32>
    %c0_93 = arith.constant 0 : index
    %c80 = arith.constant 80 : index
    %217 = vector.load %arg6[%c0_93, %c80] : memref<2x512xf32, #tpu.memory_space<vmem>>, vector<2x256xf32>
    %218 = vector.broadcast %216 : vector<2x1xf32> to vector<2x256xf32>
    %219 = arith.mulf %218, %217 : vector<2x256xf32>
    %220 = arith.addf %214, %219 : vector<2x256xf32>
    %c0_94 = arith.constant 0 : index
    %c10 = arith.constant 10 : index
    %221 = vector.load %arg4[%c0_94, %c10] : memref<2x49xf32, #tpu.memory_space<vmem>>, vector<2x1xf32>
    %c0_95 = arith.constant 0 : index
    %c96 = arith.constant 96 : index
    %222 = vector.load %arg6[%c0_95, %c96] : memref<2x512xf32, #tpu.memory_space<vmem>>, vector<2x256xf32>
    %223 = vector.broadcast %221 : vector<2x1xf32> to vector<2x256xf32>
    %224 = arith.mulf %223, %222 : vector<2x256xf32>
    %225 = arith.addf %215, %224 : vector<2x256xf32>
    %c0_96 = arith.constant 0 : index
    %c17 = arith.constant 17 : index
    %226 = vector.load %arg4[%c0_96, %c17] : memref<2x49xf32, #tpu.memory_space<vmem>>, vector<2x1xf32>
    %c0_97 = arith.constant 0 : index
    %c112 = arith.constant 112 : index
    %227 = vector.load %arg6[%c0_97, %c112] : memref<2x512xf32, #tpu.memory_space<vmem>>, vector<2x256xf32>
    %228 = vector.broadcast %226 : vector<2x1xf32> to vector<2x256xf32>
    %229 = arith.mulf %228, %227 : vector<2x256xf32>
    %230 = arith.addf %220, %229 : vector<2x256xf32>
    %c0_98 = arith.constant 0 : index
    %c24 = arith.constant 24 : index
    %231 = vector.load %arg4[%c0_98, %c24] : memref<2x49xf32, #tpu.memory_space<vmem>>, vector<2x1xf32>
    %c0_99 = arith.constant 0 : index
    %c128_100 = arith.constant 128 : index
    %232 = vector.load %arg6[%c0_99, %c128_100] : memref<2x512xf32, #tpu.memory_space<vmem>>, vector<2x256xf32>
    %233 = vector.broadcast %231 : vector<2x1xf32> to vector<2x256xf32>
    %234 = arith.mulf %233, %232 : vector<2x256xf32>
    %235 = arith.addf %225, %234 : vector<2x256xf32>
    %c0_101 = arith.constant 0 : index
    %c31 = arith.constant 31 : index
    %236 = vector.load %arg4[%c0_101, %c31] : memref<2x49xf32, #tpu.memory_space<vmem>>, vector<2x1xf32>
    %c0_102 = arith.constant 0 : index
    %c144 = arith.constant 144 : index
    %237 = vector.load %arg6[%c0_102, %c144] : memref<2x512xf32, #tpu.memory_space<vmem>>, vector<2x256xf32>
    %238 = vector.broadcast %236 : vector<2x1xf32> to vector<2x256xf32>
    %239 = arith.mulf %238, %237 : vector<2x256xf32>
    %240 = arith.addf %230, %239 : vector<2x256xf32>
    %c0_103 = arith.constant 0 : index
    %c38 = arith.constant 38 : index
    %241 = vector.load %arg4[%c0_103, %c38] : memref<2x49xf32, #tpu.memory_space<vmem>>, vector<2x1xf32>
    %c0_104 = arith.constant 0 : index
    %c160 = arith.constant 160 : index
    %242 = vector.load %arg6[%c0_104, %c160] : memref<2x512xf32, #tpu.memory_space<vmem>>, vector<2x256xf32>
    %243 = vector.broadcast %241 : vector<2x1xf32> to vector<2x256xf32>
    %244 = arith.mulf %243, %242 : vector<2x256xf32>
    %245 = arith.addf %235, %244 : vector<2x256xf32>
    %c0_105 = arith.constant 0 : index
    %c45 = arith.constant 45 : index
    %246 = vector.load %arg4[%c0_105, %c45] : memref<2x49xf32, #tpu.memory_space<vmem>>, vector<2x1xf32>
    %c0_106 = arith.constant 0 : index
    %c176 = arith.constant 176 : index
    %247 = vector.load %arg6[%c0_106, %c176] : memref<2x512xf32, #tpu.memory_space<vmem>>, vector<2x256xf32>
    %248 = vector.broadcast %246 : vector<2x1xf32> to vector<2x256xf32>
    %249 = arith.mulf %248, %247 : vector<2x256xf32>
    %250 = arith.addf %240, %249 : vector<2x256xf32>
    %251 = arith.addf %250, %245 : vector<2x256xf32>
    %252 = arith.addf %57, %251 : vector<2x256xf32>
    %cst_107 = arith.constant 0.000000e+00 : f32
    %253 = vector.broadcast %cst_107 : f32 to vector<2x256xf32>
    %cst_108 = arith.constant 0.000000e+00 : f32
    %254 = vector.broadcast %cst_108 : f32 to vector<2x256xf32>
    %c0_109 = arith.constant 0 : index
    %c4 = arith.constant 4 : index
    %255 = vector.load %arg4[%c0_109, %c4] : memref<2x49xf32, #tpu.memory_space<vmem>>, vector<2x1xf32>
    %c0_110 = arith.constant 0 : index
    %c81 = arith.constant 81 : index
    %256 = vector.load %arg6[%c0_110, %c81] : memref<2x512xf32, #tpu.memory_space<vmem>>, vector<2x256xf32>
    %257 = vector.broadcast %255 : vector<2x1xf32> to vector<2x256xf32>
    %258 = arith.mulf %257, %256 : vector<2x256xf32>
    %259 = arith.addf %253, %258 : vector<2x256xf32>
    %c0_111 = arith.constant 0 : index
    %c11 = arith.constant 11 : index
    %260 = vector.load %arg4[%c0_111, %c11] : memref<2x49xf32, #tpu.memory_space<vmem>>, vector<2x1xf32>
    %c0_112 = arith.constant 0 : index
    %c97 = arith.constant 97 : index
    %261 = vector.load %arg6[%c0_112, %c97] : memref<2x512xf32, #tpu.memory_space<vmem>>, vector<2x256xf32>
    %262 = vector.broadcast %260 : vector<2x1xf32> to vector<2x256xf32>
    %263 = arith.mulf %262, %261 : vector<2x256xf32>
    %264 = arith.addf %254, %263 : vector<2x256xf32>
    %c0_113 = arith.constant 0 : index
    %c18 = arith.constant 18 : index
    %265 = vector.load %arg4[%c0_113, %c18] : memref<2x49xf32, #tpu.memory_space<vmem>>, vector<2x1xf32>
    %c0_114 = arith.constant 0 : index
    %c113 = arith.constant 113 : index
    %266 = vector.load %arg6[%c0_114, %c113] : memref<2x512xf32, #tpu.memory_space<vmem>>, vector<2x256xf32>
    %267 = vector.broadcast %265 : vector<2x1xf32> to vector<2x256xf32>
    %268 = arith.mulf %267, %266 : vector<2x256xf32>
    %269 = arith.addf %259, %268 : vector<2x256xf32>
    %c0_115 = arith.constant 0 : index
    %c25 = arith.constant 25 : index
    %270 = vector.load %arg4[%c0_115, %c25] : memref<2x49xf32, #tpu.memory_space<vmem>>, vector<2x1xf32>
    %c0_116 = arith.constant 0 : index
    %c129 = arith.constant 129 : index
    %271 = vector.load %arg6[%c0_116, %c129] : memref<2x512xf32, #tpu.memory_space<vmem>>, vector<2x256xf32>
    %272 = vector.broadcast %270 : vector<2x1xf32> to vector<2x256xf32>
    %273 = arith.mulf %272, %271 : vector<2x256xf32>
    %274 = arith.addf %264, %273 : vector<2x256xf32>
    %c0_117 = arith.constant 0 : index
    %c32 = arith.constant 32 : index
    %275 = vector.load %arg4[%c0_117, %c32] : memref<2x49xf32, #tpu.memory_space<vmem>>, vector<2x1xf32>
    %c0_118 = arith.constant 0 : index
    %c145 = arith.constant 145 : index
    %276 = vector.load %arg6[%c0_118, %c145] : memref<2x512xf32, #tpu.memory_space<vmem>>, vector<2x256xf32>
    %277 = vector.broadcast %275 : vector<2x1xf32> to vector<2x256xf32>
    %278 = arith.mulf %277, %276 : vector<2x256xf32>
    %279 = arith.addf %269, %278 : vector<2x256xf32>
    %c0_119 = arith.constant 0 : index
    %c39 = arith.constant 39 : index
    %280 = vector.load %arg4[%c0_119, %c39] : memref<2x49xf32, #tpu.memory_space<vmem>>, vector<2x1xf32>
    %c0_120 = arith.constant 0 : index
    %c161 = arith.constant 161 : index
    %281 = vector.load %arg6[%c0_120, %c161] : memref<2x512xf32, #tpu.memory_space<vmem>>, vector<2x256xf32>
    %282 = vector.broadcast %280 : vector<2x1xf32> to vector<2x256xf32>
    %283 = arith.mulf %282, %281 : vector<2x256xf32>
    %284 = arith.addf %274, %283 : vector<2x256xf32>
    %c0_121 = arith.constant 0 : index
    %c46 = arith.constant 46 : index
    %285 = vector.load %arg4[%c0_121, %c46] : memref<2x49xf32, #tpu.memory_space<vmem>>, vector<2x1xf32>
    %c0_122 = arith.constant 0 : index
    %c177 = arith.constant 177 : index
    %286 = vector.load %arg6[%c0_122, %c177] : memref<2x512xf32, #tpu.memory_space<vmem>>, vector<2x256xf32>
    %287 = vector.broadcast %285 : vector<2x1xf32> to vector<2x256xf32>
    %288 = arith.mulf %287, %286 : vector<2x256xf32>
    %289 = arith.addf %279, %288 : vector<2x256xf32>
    %290 = arith.addf %289, %284 : vector<2x256xf32>
    %c1_i32_123 = arith.constant 1 : i32
    %291 = vector.broadcast %c1_i32_123 : i32 to vector<1x256xi32>
    %292 = arith.addi %53, %291 : vector<1x256xi32>
    %c0_i32_124 = arith.constant 0 : i32
    %293 = vector.broadcast %c0_i32_124 : i32 to vector<1x256xi32>
    %294 = arith.cmpi sge, %292, %293 : vector<1x256xi32>
    %c1_i32_125 = arith.constant 1 : i32
    %295 = vector.broadcast %c1_i32_125 : i32 to vector<1x256xi32>
    %296 = arith.addi %53, %295 : vector<1x256xi32>
    %c16_i32_126 = arith.constant 16 : i32
    %297 = vector.broadcast %c16_i32_126 : i32 to vector<1x256xi32>
    %298 = arith.cmpi slt, %296, %297 : vector<1x256xi32>
    %299 = arith.andi %294, %298 : vector<1x256xi1>
    %cst_127 = arith.constant 0.000000e+00 : f32
    %300 = vector.shape_cast %299 : vector<1x256xi1> to vector<1x256xi1>
    %301 = vector.broadcast %300 : vector<1x256xi1> to vector<2x256xi1>
    %302 = vector.broadcast %cst_127 : f32 to vector<2x256xf32>
    %303 = arith.select %301, %290, %302 : vector<2x256xi1>, vector<2x256xf32>
    %304 = arith.addf %109, %303 : vector<2x256xf32>
    %cst_128 = arith.constant 0.000000e+00 : f32
    %305 = vector.broadcast %cst_128 : f32 to vector<2x256xf32>
    %cst_129 = arith.constant 0.000000e+00 : f32
    %306 = vector.broadcast %cst_129 : f32 to vector<2x256xf32>
    %c0_130 = arith.constant 0 : index
    %c5 = arith.constant 5 : index
    %307 = vector.load %arg4[%c0_130, %c5] : memref<2x49xf32, #tpu.memory_space<vmem>>, vector<2x1xf32>
    %c0_131 = arith.constant 0 : index
    %c82 = arith.constant 82 : index
    %308 = vector.load %arg6[%c0_131, %c82] : memref<2x512xf32, #tpu.memory_space<vmem>>, vector<2x256xf32>
    %309 = vector.broadcast %307 : vector<2x1xf32> to vector<2x256xf32>
    %310 = arith.mulf %309, %308 : vector<2x256xf32>
    %311 = arith.addf %305, %310 : vector<2x256xf32>
    %c0_132 = arith.constant 0 : index
    %c12 = arith.constant 12 : index
    %312 = vector.load %arg4[%c0_132, %c12] : memref<2x49xf32, #tpu.memory_space<vmem>>, vector<2x1xf32>
    %c0_133 = arith.constant 0 : index
    %c98 = arith.constant 98 : index
    %313 = vector.load %arg6[%c0_133, %c98] : memref<2x512xf32, #tpu.memory_space<vmem>>, vector<2x256xf32>
    %314 = vector.broadcast %312 : vector<2x1xf32> to vector<2x256xf32>
    %315 = arith.mulf %314, %313 : vector<2x256xf32>
    %316 = arith.addf %306, %315 : vector<2x256xf32>
    %c0_134 = arith.constant 0 : index
    %c19 = arith.constant 19 : index
    %317 = vector.load %arg4[%c0_134, %c19] : memref<2x49xf32, #tpu.memory_space<vmem>>, vector<2x1xf32>
    %c0_135 = arith.constant 0 : index
    %c114 = arith.constant 114 : index
    %318 = vector.load %arg6[%c0_135, %c114] : memref<2x512xf32, #tpu.memory_space<vmem>>, vector<2x256xf32>
    %319 = vector.broadcast %317 : vector<2x1xf32> to vector<2x256xf32>
    %320 = arith.mulf %319, %318 : vector<2x256xf32>
    %321 = arith.addf %311, %320 : vector<2x256xf32>
    %c0_136 = arith.constant 0 : index
    %c26 = arith.constant 26 : index
    %322 = vector.load %arg4[%c0_136, %c26] : memref<2x49xf32, #tpu.memory_space<vmem>>, vector<2x1xf32>
    %c0_137 = arith.constant 0 : index
    %c130 = arith.constant 130 : index
    %323 = vector.load %arg6[%c0_137, %c130] : memref<2x512xf32, #tpu.memory_space<vmem>>, vector<2x256xf32>
    %324 = vector.broadcast %322 : vector<2x1xf32> to vector<2x256xf32>
    %325 = arith.mulf %324, %323 : vector<2x256xf32>
    %326 = arith.addf %316, %325 : vector<2x256xf32>
    %c0_138 = arith.constant 0 : index
    %c33 = arith.constant 33 : index
    %327 = vector.load %arg4[%c0_138, %c33] : memref<2x49xf32, #tpu.memory_space<vmem>>, vector<2x1xf32>
    %c0_139 = arith.constant 0 : index
    %c146 = arith.constant 146 : index
    %328 = vector.load %arg6[%c0_139, %c146] : memref<2x512xf32, #tpu.memory_space<vmem>>, vector<2x256xf32>
    %329 = vector.broadcast %327 : vector<2x1xf32> to vector<2x256xf32>
    %330 = arith.mulf %329, %328 : vector<2x256xf32>
    %331 = arith.addf %321, %330 : vector<2x256xf32>
    %c0_140 = arith.constant 0 : index
    %c40 = arith.constant 40 : index
    %332 = vector.load %arg4[%c0_140, %c40] : memref<2x49xf32, #tpu.memory_space<vmem>>, vector<2x1xf32>
    %c0_141 = arith.constant 0 : index
    %c162 = arith.constant 162 : index
    %333 = vector.load %arg6[%c0_141, %c162] : memref<2x512xf32, #tpu.memory_space<vmem>>, vector<2x256xf32>
    %334 = vector.broadcast %332 : vector<2x1xf32> to vector<2x256xf32>
    %335 = arith.mulf %334, %333 : vector<2x256xf32>
    %336 = arith.addf %326, %335 : vector<2x256xf32>
    %c0_142 = arith.constant 0 : index
    %c47 = arith.constant 47 : index
    %337 = vector.load %arg4[%c0_142, %c47] : memref<2x49xf32, #tpu.memory_space<vmem>>, vector<2x1xf32>
    %c0_143 = arith.constant 0 : index
    %c178 = arith.constant 178 : index
    %338 = vector.load %arg6[%c0_143, %c178] : memref<2x512xf32, #tpu.memory_space<vmem>>, vector<2x256xf32>
    %339 = vector.broadcast %337 : vector<2x1xf32> to vector<2x256xf32>
    %340 = arith.mulf %339, %338 : vector<2x256xf32>
    %341 = arith.addf %331, %340 : vector<2x256xf32>
    %342 = arith.addf %341, %336 : vector<2x256xf32>
    %c2_i32 = arith.constant 2 : i32
    %343 = vector.broadcast %c2_i32 : i32 to vector<1x256xi32>
    %344 = arith.addi %53, %343 : vector<1x256xi32>
    %c0_i32_144 = arith.constant 0 : i32
    %345 = vector.broadcast %c0_i32_144 : i32 to vector<1x256xi32>
    %346 = arith.cmpi sge, %344, %345 : vector<1x256xi32>
    %c2_i32_145 = arith.constant 2 : i32
    %347 = vector.broadcast %c2_i32_145 : i32 to vector<1x256xi32>
    %348 = arith.addi %53, %347 : vector<1x256xi32>
    %c16_i32_146 = arith.constant 16 : i32
    %349 = vector.broadcast %c16_i32_146 : i32 to vector<1x256xi32>
    %350 = arith.cmpi slt, %348, %349 : vector<1x256xi32>
    %351 = arith.andi %346, %350 : vector<1x256xi1>
    %cst_147 = arith.constant 0.000000e+00 : f32
    %352 = vector.shape_cast %351 : vector<1x256xi1> to vector<1x256xi1>
    %353 = vector.broadcast %352 : vector<1x256xi1> to vector<2x256xi1>
    %354 = vector.broadcast %cst_147 : f32 to vector<2x256xf32>
    %355 = arith.select %353, %342, %354 : vector<2x256xi1>, vector<2x256xf32>
    %356 = arith.addf %161, %355 : vector<2x256xf32>
    %cst_148 = arith.constant 0.000000e+00 : f32
    %357 = vector.broadcast %cst_148 : f32 to vector<2x256xf32>
    %cst_149 = arith.constant 0.000000e+00 : f32
    %358 = vector.broadcast %cst_149 : f32 to vector<2x256xf32>
    %c0_150 = arith.constant 0 : index
    %c6 = arith.constant 6 : index
    %359 = vector.load %arg4[%c0_150, %c6] : memref<2x49xf32, #tpu.memory_space<vmem>>, vector<2x1xf32>
    %c0_151 = arith.constant 0 : index
    %c83 = arith.constant 83 : index
    %360 = vector.load %arg6[%c0_151, %c83] : memref<2x512xf32, #tpu.memory_space<vmem>>, vector<2x256xf32>
    %361 = vector.broadcast %359 : vector<2x1xf32> to vector<2x256xf32>
    %362 = arith.mulf %361, %360 : vector<2x256xf32>
    %363 = arith.addf %357, %362 : vector<2x256xf32>
    %c0_152 = arith.constant 0 : index
    %c13 = arith.constant 13 : index
    %364 = vector.load %arg4[%c0_152, %c13] : memref<2x49xf32, #tpu.memory_space<vmem>>, vector<2x1xf32>
    %c0_153 = arith.constant 0 : index
    %c99 = arith.constant 99 : index
    %365 = vector.load %arg6[%c0_153, %c99] : memref<2x512xf32, #tpu.memory_space<vmem>>, vector<2x256xf32>
    %366 = vector.broadcast %364 : vector<2x1xf32> to vector<2x256xf32>
    %367 = arith.mulf %366, %365 : vector<2x256xf32>
    %368 = arith.addf %358, %367 : vector<2x256xf32>
    %c0_154 = arith.constant 0 : index
    %c20 = arith.constant 20 : index
    %369 = vector.load %arg4[%c0_154, %c20] : memref<2x49xf32, #tpu.memory_space<vmem>>, vector<2x1xf32>
    %c0_155 = arith.constant 0 : index
    %c115 = arith.constant 115 : index
    %370 = vector.load %arg6[%c0_155, %c115] : memref<2x512xf32, #tpu.memory_space<vmem>>, vector<2x256xf32>
    %371 = vector.broadcast %369 : vector<2x1xf32> to vector<2x256xf32>
    %372 = arith.mulf %371, %370 : vector<2x256xf32>
    %373 = arith.addf %363, %372 : vector<2x256xf32>
    %c0_156 = arith.constant 0 : index
    %c27 = arith.constant 27 : index
    %374 = vector.load %arg4[%c0_156, %c27] : memref<2x49xf32, #tpu.memory_space<vmem>>, vector<2x1xf32>
    %c0_157 = arith.constant 0 : index
    %c131 = arith.constant 131 : index
    %375 = vector.load %arg6[%c0_157, %c131] : memref<2x512xf32, #tpu.memory_space<vmem>>, vector<2x256xf32>
    %376 = vector.broadcast %374 : vector<2x1xf32> to vector<2x256xf32>
    %377 = arith.mulf %376, %375 : vector<2x256xf32>
    %378 = arith.addf %368, %377 : vector<2x256xf32>
    %c0_158 = arith.constant 0 : index
    %c34 = arith.constant 34 : index
    %379 = vector.load %arg4[%c0_158, %c34] : memref<2x49xf32, #tpu.memory_space<vmem>>, vector<2x1xf32>
    %c0_159 = arith.constant 0 : index
    %c147 = arith.constant 147 : index
    %380 = vector.load %arg6[%c0_159, %c147] : memref<2x512xf32, #tpu.memory_space<vmem>>, vector<2x256xf32>
    %381 = vector.broadcast %379 : vector<2x1xf32> to vector<2x256xf32>
    %382 = arith.mulf %381, %380 : vector<2x256xf32>
    %383 = arith.addf %373, %382 : vector<2x256xf32>
    %c0_160 = arith.constant 0 : index
    %c41 = arith.constant 41 : index
    %384 = vector.load %arg4[%c0_160, %c41] : memref<2x49xf32, #tpu.memory_space<vmem>>, vector<2x1xf32>
    %c0_161 = arith.constant 0 : index
    %c163 = arith.constant 163 : index
    %385 = vector.load %arg6[%c0_161, %c163] : memref<2x512xf32, #tpu.memory_space<vmem>>, vector<2x256xf32>
    %386 = vector.broadcast %384 : vector<2x1xf32> to vector<2x256xf32>
    %387 = arith.mulf %386, %385 : vector<2x256xf32>
    %388 = arith.addf %378, %387 : vector<2x256xf32>
    %c0_162 = arith.constant 0 : index
    %c48 = arith.constant 48 : index
    %389 = vector.load %arg4[%c0_162, %c48] : memref<2x49xf32, #tpu.memory_space<vmem>>, vector<2x1xf32>
    %c0_163 = arith.constant 0 : index
    %c179 = arith.constant 179 : index
    %390 = vector.load %arg6[%c0_163, %c179] : memref<2x512xf32, #tpu.memory_space<vmem>>, vector<2x256xf32>
    %391 = vector.broadcast %389 : vector<2x1xf32> to vector<2x256xf32>
    %392 = arith.mulf %391, %390 : vector<2x256xf32>
    %393 = arith.addf %383, %392 : vector<2x256xf32>
    %394 = arith.addf %393, %388 : vector<2x256xf32>
    %c3_i32 = arith.constant 3 : i32
    %395 = vector.broadcast %c3_i32 : i32 to vector<1x256xi32>
    %396 = arith.addi %53, %395 : vector<1x256xi32>
    %c0_i32_164 = arith.constant 0 : i32
    %397 = vector.broadcast %c0_i32_164 : i32 to vector<1x256xi32>
    %398 = arith.cmpi sge, %396, %397 : vector<1x256xi32>
    %c3_i32_165 = arith.constant 3 : i32
    %399 = vector.broadcast %c3_i32_165 : i32 to vector<1x256xi32>
    %400 = arith.addi %53, %399 : vector<1x256xi32>
    %c16_i32_166 = arith.constant 16 : i32
    %401 = vector.broadcast %c16_i32_166 : i32 to vector<1x256xi32>
    %402 = arith.cmpi slt, %400, %401 : vector<1x256xi32>
    %403 = arith.andi %398, %402 : vector<1x256xi1>
    %cst_167 = arith.constant 0.000000e+00 : f32
    %404 = vector.shape_cast %403 : vector<1x256xi1> to vector<1x256xi1>
    %405 = vector.broadcast %404 : vector<1x256xi1> to vector<2x256xi1>
    %406 = vector.broadcast %cst_167 : f32 to vector<2x256xf32>
    %407 = arith.select %405, %394, %406 : vector<2x256xi1>, vector<2x256xf32>
    %408 = arith.addf %213, %407 : vector<2x256xf32>
    %409 = arith.addf %304, %356 : vector<2x256xf32>
    %410 = arith.addf %408, %252 : vector<2x256xf32>
    %411 = arith.addf %409, %410 : vector<2x256xf32>
    %cst_168 = arith.constant dense<0.000000e+00> : vector<256xf32>
    %412 = vector.multi_reduction <add>, %411, %cst_168 [0] : vector<2x256xf32> to vector<256xf32>
    %413 = vector.shape_cast %412 : vector<256xf32> to vector<1x256xf32>
    %414 = arith.negf %413 : vector<1x256xf32>
    %415 = math.exp %414 : vector<1x256xf32>
    %cst_169 = arith.constant 1.000000e+00 : f32
    %416 = vector.broadcast %cst_169 : f32 to vector<1x256xf32>
    %417 = arith.addf %416, %415 : vector<1x256xf32>
    %418 = arith.divf %416, %417 : vector<1x256xf32>
    %419 = vector.broadcast %418 : vector<1x256xf32> to vector<32x256xf32>
    %420 = arith.mulf %24, %419 : vector<32x256xf32>
    %c0_170 = arith.constant 0 : index
    %c0_171 = arith.constant 0 : index
    %c0_172 = arith.constant 0 : index
    %421 = vector.load %arg5[%c0_170, %c0_171, %c0_172] : memref<1x32x256xf32, #tpu.memory_space<vmem>>, vector<1x32x256xf32>
    %422 = vector.shape_cast %421 : vector<1x32x256xf32> to vector<32x256xf32>
    %423 = vector.shape_cast %420 : vector<32x256xf32> to vector<1x32x256xf32>
    tpu.vector_store %arg5[%c0_170, %c0_171, %c0_172], %423 {strides = array<i32>} : memref<1x32x256xf32, #tpu.memory_space<vmem>>, vector<1x32x256xf32>,
    return
  }
  func.func @transform_0(%arg0: i32) -> (i32, i32, i32) {
    %c0_i32 = arith.constant 0 : i32
    %c0_i32_0 = arith.constant 0 : i32
    %c0_i32_1 = arith.constant 0 : i32
    return %arg0, %c0_i32, %c0_i32_0 : i32, i32, i32
  }
  func.func @transform_1(%arg0: i32) -> (i32, i32) {
    %c0_i32 = arith.constant 0 : i32
    %c0_i32_0 = arith.constant 0 : i32
    %c0_i32_1 = arith.constant 0 : i32
    return %c0_i32, %c0_i32_0 : i32, i32
  }
  func.func @transform_2(%arg0: i32) -> (i32, i32) {
    %c0_i32 = arith.constant 0 : i32
    %c0_i32_0 = arith.constant 0 : i32
    %c0_i32_1 = arith.constant 0 : i32
    return %c0_i32, %c0_i32_0 : i32, i32
  }
  func.func @transform_3(%arg0: i32) -> (i32, i32) {
    %c0_i32 = arith.constant 0 : i32
    %c0_i32_0 = arith.constant 0 : i32
    %c0_i32_1 = arith.constant 0 : i32
    return %c0_i32, %c0_i32_0 : i32, i32
  }
  func.func @transform_4(%arg0: i32) -> (i32, i32, i32) {
    %c0_i32 = arith.constant 0 : i32
    %c0_i32_0 = arith.constant 0 : i32
    %c0_i32_1 = arith.constant 0 : i32
    return %arg0, %c0_i32, %c0_i32_0 : i32, i32, i32
  }
}

</mosaic_0001>

<bundles_post_ra>
// kernel: tpu_custom_call.1
= control target key start
LH: loop header
LB: loop body
LE: loop exit
PB: predicated region body
PF: predicated region fallthrough
CT: control target
= control target key end

     0   :  { %9 = vsyncpa [#allocation4], 0  ;;  %s4991_s0 = inlined_call_operand.hbm [shape: f32[2,32,256], index: 0, kind: input, shape index: {}]   ;;  %s4992_s1 = inlined_call_operand.vmem [shape: f32[32,2], index: 1, kind: input, shape index: {}]   ;;  %s4993_s2 = inlined_call_operand.vmem [shape: f32[32,2], index: 2, kind: input, shape index: {}]   ;;  %s4994_s3 = inlined_call_operand.vmem [shape: f32[2,49], index: 3, kind: input, shape index: {}]   ;;  %s4995_s4 = inlined_call_operand.hbm [shape: f32[2,32,256], index: 4, kind: output, shape index: {}]  }
   0x1   :  { %11 = vsyncpa [#allocation4 + $0x1], 0 }
   0x2   :  { %12 = vsyncpa [#allocation5], 0 }
   0x3   :  { %14 = vsyncpa [#allocation5 + $0x1], 0  ;;  %s3090_s15 = smov 0   ;;  %s3092_s16 = smov 0  }
   0x4   :  { %s3094_s17 = smov 0   ;;  %s3096_s18 = smov 0  }
   0x5 LB: > { %s3111_s19 = sadd.s32 4294967295, %s2958_s18   ;;  %s2569_s20 = sadd.s32 4294967294, %s2958_s18   ;;  %s2958_s18 = sphi %s3096_s18, %s5492_s18   ;;  %s2954_s17 = sphi %s3094_s17, %s5491_s17   ;;  %s2950_s16 = sphi %s3092_s16, %s5490_s16   ;;  %s2946_s15 = sphi %s3090_s15, %s5489_s15  }
   0x6   : > { %s3115_s21 = sadd.s32 1, %s2958_s18   ;;  %s27_s22 = sadd.s32 1, %s2954_s17 }
   0x7   : > { %s24_s23 = ssub.s32 %s2958_s18, %s3115_s21  ;;  %p34_p0 = scmp.ne.s32.totalorder %s2954_s17, %s2950_s16 }
   0x8   : > { %p25_p1 = scmp.eq.s32.totalorder %s24_s23, 0  ;;  %p35_p2 = scmp.eq.s32.totalorder %s2958_s18, 0 }
   0x9   : > { %p40_p3 = scmp.ne.s32.totalorder %s2950_s16, %s2946_s15  ;;  %p41_p4 = scmp.eq.s32.totalorder %s3111_s19, 0 }
   0xa   : > { %s3127_s24 = scalar_select %p25_p1, %s2954_s17, %s27_s22  }
   0xb   : > { %p3129_p5 = por %p35_p2, %p34_p0  ;;  %p3133_p6 = por %p41_p4, %p40_p3 }
   0xc   : > { %p127_p7 = scmp.eq.s32.totalorder %s3111_s19, 1  ;;  %p133_p8 = scmp.eq.s32.totalorder %s2569_s20, 1 }
   0xd   : > { %p2604_p10 = scmp.lt.s32.totalorder %s2958_s18, 2  ;;  %s162_s29 = sand.u32 1, %s2954_s17  }
   0xe   : > { %p3140_p11 = por %p127_p7, %p34_p0  ;;  %p3144_p12 = por %p133_p8, %p40_p3 }
   0xf   : > { %s2590_s30 = sshll.u32 %s2958_s18, 10  ;;  %s2572_s5 = sshll.u32 %s162_s29, 6 }
  0x10   : > { %s5134_s27 = scalar_select %p3140_p11, 1, 0 }
  0x11   : > { %s5135_s28 = scalar_select %p3144_p12, 1, 0 }
  0x12   : > { %s3153_s8 = scalar_lea.hbm %s4991_s0, %s2590_s30  ;;  %s166_s9 = scalar_lea.vmem [#allocation3], %s2572_s5 }
  0x13   : > { %s173_s10 = sshll.u32 %s166_s9, 4  ;;  %p3157_p13 = pnand %p2604_p10, %p3129_p5  ;;  %s3161_s10 = int_to_ptr.vmem [resolvable:$true] %s173_s10 }
  0x14   : > { %s3163_s12 = scalar_lea.sflag [#allocation4], %s162_s29  ;;  %s2862_s13 = scalar_lea.hbm %s3153_s8, 1024 }
  0x15   : > { %p2863_p0 = scmp.ne.s32.totalorder %s3153_s8, %s2862_s13  ;;  %p2864_p1 = pneg %p3157_p13 }
  0x16   : > { %s2867_s22 = scalar_lea.hbm %s4991_s0, 2048  ;;  %p2868_p4 = scmp.lt.u32.totalorder %s3153_s8, %s4991_s0 }
  0x17   : > { %p2865_p2 = pnand %p2864_p1, %p2863_p0  ;;  %p2869_p5 = scmp.lt.u32.totalorder %s2867_s22, %s2862_s13 }
  0x18   : > { %p2871_p8 = scmp.lt.u32.totalorder %s2862_s13, %s3153_s8 }
  0x19   : > { %p2866_p3 = pneg %p2865_p2  ;;  %p2870_p7 = por %p2869_p5, %p2868_p4 }
  0x1b   : > { %p2872_p10 = por %p2871_p8, %p2870_p7 }
  0x1d   : > { %p2873_p9 = pnand %p2872_p10, %p2866_p3 }
  0x1f   : > { %2876 = shalt.err (!%p2873_p9)
}
  0x20   : > { %s2877_s29 = scalar_lea.vmem %s3161_s10, 1024  ;;  %s2960_s30 = smov [#allocation3]  }
  0x21   : > { %p2878_p0 = scmp.ne.s32.totalorder %s3161_s10, %s2877_s29  ;;  %s2882_s5 = sshll.u32 %s2960_s30, 4  ;;  %s2883_s5 = int_to_ptr.vmem [resolvable:$false] %s2882_s5 }
  0x22   : > { %s2884_s6 = scalar_lea.vmem %s2883_s5, 2048  ;;  %p2885_p11 = scmp.lt.s32.totalorder %s3161_s10, %s2883_s5 }
  0x23   : > { %p2880_p2 = pnand %p2878_p0, %p2864_p1  ;;  %p2886_p4 = scmp.lt.s32.totalorder %s2884_s6, %s2877_s29 }
  0x25   : > { %p2881_p12 = pneg %p2880_p2  ;;  %p2887_p5 = por %p2886_p4, %p2885_p11 }
  0x27   : > { %p2888_p7 = pnand %p2887_p5, %p2881_p12 }
  0x29   : > { %2891 = shalt.err (!%p2888_p7)
}
  0x2a   : > { %s2961_s7 = smov 256   ;;  %s2962_s9 = smov 16  }
  0x2b   : > { %2599 = dma.hbm_to_vmem [thread:$0]  (!%p3157_p13), %s3153_s8, 1024, %s3161_s10, %s3163_s12, %s2961_s7, %s2961_s7, %s2962_s9  }
  0x2c   : > { %p2575_p9 = scmp.ge.s32.totalorder %s2958_s18, 1  ;;  %p181_p1 = scmp.lt.s32.totalorder %s2958_s18, 3 }
  0x2e   : > { %p182_p3 = pnand %p2575_p9, %p181_p1 }
  0x30   : > { %185 = sbr.rel (%p182_p3) target bundleno = 1083 (0x43b), region = 36 }
  0x37   : > { %s3194_s13 = sand.u32 1, %s2950_s16  }
  0x38   : > { %s5056_s14 = sshll.u32 %s3194_s13, 6  ;;  %s188_s20 = scalar_lea.sflag [#allocation4], %s3194_s13 }
  0x39   : > { %s191_s22 = scalar_lea.vmem [#allocation3], %s5056_s14 }
  0x3a   : > { %2937 = dma.done.wait (%p3133_p6), %s188_s20, 1024  }
  0x3b   : > { %2939 = vsyncadd (%p3133_p6), %s188_s20, 4294966272  ;;  %v2963_v0 = vmov 7   ;;  %v467_v1 = vld [vmem:[%s4994_s3] sm:$0x3]  ;;  %v3207_v2 = vld [vmem:[%s191_s22] sm:$0xff]  ;;  %v2964_v8 = vmov 14  }
  0x3c   : > { %2742 = vset.pattern.permute.xlu1 %v2963_v0  ;;  %v3209_v3 = vld [vmem:[%s191_s22 + $0x8] sm:$0xff]  ;;  %v3213_v5 = vld [vmem:[%s191_s22 + $0x10] sm:$0xff]  ;;  %v3215_v6 = vld [vmem:[%s191_s22 + $0x18] sm:$0xff]  ;;  %v2965_v9 = vmov 0   ;;  %v2966_v15 = vmov 31   ;;  %v2967_v20 = vmov 6  }
  0x3d   : > { %471 = vperm.xlu1 %2742, %v467_v1   ;;  %v224_v4 = vadd.f32 %v3209_v3, %v3207_v2  ;;  %v227_v7 = vadd.f32 %v3215_v6, %v3213_v5  ;;  %2741 = vset.pattern.permute.xlu0 %v2965_v9  ;;  %v428_v10 = vld [vmem:[%s4994_s3] sm:$0x3]  ;;  %v3222_v11 = vld [vmem:[%s191_s22 + $0x20] sm:$0xff]  ;;  %v3224_v12 = vld [vmem:[%s191_s22 + $0x28] sm:$0xff]  ;;  %v2968_v22 = vmov 33   ;;  %v2969_v24 = vmov 34  }
  0x3e   : > { %v1439_v13 = vld [vmem:[%s4994_s3] sm:$0x3]  ;;  %v230_v14 = vadd.f32 %v3224_v12, %v3222_v11  ;;  %v3231_v16 = vld [vmem:[%s191_s22 + $0x30] sm:$0xff]  ;;  %v2970_v26 = vmov 41   ;;  %v2971_v29 = vmov 21   ;;  %v2972_v31 = vmov 28  }
  0x3f   : > { %225 = vadd.xlane.f32.xlu0 %v224_v4  ;;  %v3233_v17 = vld [vmem:[%s191_s22 + $0x38] sm:$0xff]  ;;  %v2973_v33 = vmov 35   ;;  %v2974_v35 = vmov 42   ;;  %v2975_v37 = vmov 1   ;;  %v2976_v39 = vmov 8   ;;  %s3015_s5 = smov 19  }
  0x40   : > { %v2142_v18 = vld [vmem:[%s4994_s3] sm:$0x3]  ;;  %v233_v19 = vadd.f32 %v3233_v17, %v3231_v16  ;;  %v2977_v41 = vmov 15   ;;  %v2978_v43 = vmov 22   ;;  %v2979_v45 = vmov 29   ;;  %s3016_s6 = smov 51  }
  0x41   : > { %2743 = vset.pattern.permute.xlu1 %v2964_v8  ;;  %v2007_v21 = vld [vmem:[%s4994_s3] sm:$0x3]  ;;  %v2980_v47 = vmov 36   ;;  %v2981_v49 = vmov 43   ;;  %v2982_v51 = vmov 2   ;;  %v2983_v53 = vmov 9  }
  0x42   : > { %v2298_v23 = vld [vmem:[%s4994_s3] sm:$0x3]  ;;  %v2984_v55 = vmov 16   ;;  %v2985_v57 = vmov 23   ;;  %v2986_v59 = vmov 30   ;;  %v2987_v61 = vmov 37  }
  0x43   : > { %228 = vadd.xlane.f32.xlu0 %v227_v7  ;;  %v2337_v25 = vld [vmem:[%s4994_s3] sm:$0x3]  ;;  %v2988_v63 = vmov 44   ;;  %v2989_v1 = vmov 3   ;;  %v2990_v7 = vmov 10   ;;  %v2991_v9 = vmov 17  }
  0x44   : > { %v506_v27 = vld [vmem:[%s4994_s3] sm:$0x3]  ;;  %vm249_vm0 = vcmask 15360   ;;  %s3017_s7 = smov 3   ;;  %s3018_s9 = smov 35   ;;  %vm575_vm2 = vcmask 23552  }
  0x45   : > { %v545_v28 = vld [vmem:[%s4994_s3] sm:$0x3]  ;;  %s3019_s20 = smov 115   ;;  %s5080_s22 = smov 112   ;;  %vm497_vm3 = vcmask 285696   ;;  %vm536_vm4 = vcmask 154624  }
  0x46   : > { %v584_v30 = vld [vmem:[%s4994_s3] sm:$0x3]  ;;  %s5061_s8 = smov 99   ;;  %s5059_s10 = smov 14   ;;  %vm458_vm5 = vcmask 416768   ;;  %vm614_vm6 = vcmask 941056  }
  0x47   : > { %v623_v32 = vld [vmem:[%s4994_s3] sm:$0x3]  ;;  %s5062_s26 = smov 83   ;;  %s5057_s11 = smov 13   ;;  %vm653_vm7 = vcmask 809984   ;;  %vm692_vm8 = vcmask 678912  }
  0x48   : > { %v662_v34 = vld [vmem:[%s4994_s3] sm:$0x3]  ;;  %s5063_s12 = smov 50   ;;  %s5064_s23 = smov 34   ;;  %vm749_vm9 = vcmask 408576   ;;  %vm827_vm10 = vcmask 146432  }
  0x49   : > { %v719_v36 = vld [vmem:[%s4994_s3] sm:$0x3]  ;;  %s5065_s25 = smov 18   ;;  %s5066_s29 = smov 2   ;;  %vm5128_vm11 = vcmask 277504   ;;  %vm904_vm12 = vcmask 932864  }
  0x4a   : > { %v758_v38 = vld [vmem:[%s4994_s3] sm:$0x3]  ;;  %s5067_s30 = smov 114   ;;  %s5070_s14 = smov 49   ;;  %vm5097_vm13 = vcmask 801792   ;;  %vm5096_vm14 = vcmask 670720  }
  0x4b   : > { %v797_v40 = vld [vmem:[%s4994_s3] sm:$0x3]  ;;  %vm5098_vm15 = vcmask 400384   ;;  %p5486_p11 = scmp.ne.s32.totalorder %s5134_s27, 0 }
  0x4c   : > { %v836_v42 = vld [vmem:[%s4994_s3] sm:$0x3] }
  0x4d   : > { %v874_v44 = vld [vmem:[%s4994_s3] sm:$0x3] }
  0x4e   : > { %v913_v46 = vld [vmem:[%s4994_s3] sm:$0x3] }
  0x4f   : > { %v952_v48 = vld [vmem:[%s4994_s3] sm:$0x3] }
  0x50   : > { %v1009_v50 = vld [vmem:[%s4994_s3] sm:$0x3] }
  0x51   : > { %v1048_v52 = vld [vmem:[%s4994_s3] sm:$0x3] }
  0x52   : > { %v1087_v54 = vld [vmem:[%s4994_s3] sm:$0x3] }
  0x53   : > { %v1126_v56 = vld [vmem:[%s4994_s3] sm:$0x3] }
  0x54   : > { %v1165_v58 = vld [vmem:[%s4994_s3] sm:$0x3] }
  0x55   : > { %v1204_v60 = vld [vmem:[%s4994_s3] sm:$0x3] }
  0x56   : > { %v1243_v62 = vld [vmem:[%s4994_s3] sm:$0x3] }
  0x57   : > { %v1300_v0 = vld [vmem:[%s4994_s3] sm:$0x3] }
  0x58   : > { %v1339_v4 = vld [vmem:[%s4994_s3] sm:$0x3] }
  0x59   : > { %432 = vperm.xlu0 %2741, %v428_v10   ;;  %v1378_v8 = vld [vmem:[%s4994_s3] sm:$0x3] }
  0x5d   : > { %2766 = vset.pattern.permute.xlu0 %v2966_v15 }
  0x5e   : > { %1443 = vperm.xlu0 %2766, %v1439_v13   ;;  %v1417_v13 = vld [vmem:[%s4994_s3] sm:$0x3] }
  0x61   : > { %231 = vadd.xlane.f32.xlu1 %v230_v14  ;;  %v2992_v14 = vmov 24  }
  0x62   : > { %2779 = vset.pattern.permute.xlu0 %v2967_v20 }
  0x63   : > { %2146 = vperm.xlu0 %2779, %v2142_v18   ;;  %v1478_v18 = vld [vmem:[%s4994_s3] sm:$0x3] }
  0x65   : > { %234 = vadd.xlane.f32.xlu1 %v233_v19 }
  0x67   : > { %2782 = vset.pattern.permute.xlu0 %v2968_v22  ;;  %v241_v22 = vld [vmem:[%s4992_s1] sm:$0xff] }
  0x68   : > { %2011 = vperm.xlu0 %2782, %v2007_v21   ;;  %v2993_v21 = vmov 38  }
  0x6c   : > { %2785 = vset.pattern.permute.xlu0 %v2969_v24 }
  0x6d   : > { %2302 = vperm.xlu0 %2785, %v2298_v23   ;;  %v242_v23 = vld [vmem:[%s4992_s1 + $0x8] sm:$0xff] }
  0x71   : > { %2788 = vset.pattern.permute.xlu0 %v2970_v26 }
  0x72   : > { %2341 = vperm.xlu0 %2788, %v2337_v25  }
  0x76   : > { %510 = vperm.xlu1 %2743, %v506_v27   ;;  %v1517_v27 = vld [vmem:[%s4994_s3] sm:$0x3] }
  0x7a   : > { %2744 = vset.pattern.permute.xlu1 %v2971_v29  ;;  %v243_v29 = vld [vmem:[%s4992_s1 + $0x10] sm:$0xff] }
  0x7b   : > { %549 = vperm.xlu1 %2744, %v545_v28   ;;  %v2994_v28 = vmov 45  }
  0x7f   : > { %2745 = vset.pattern.permute.xlu1 %v2972_v31 }
  0x80   : > { %588 = vperm.xlu1 %2745, %v584_v30  }
  0x84   : > { %2746 = vset.pattern.permute.xlu1 %v2973_v33 }
  0x85   : > { %627 = vperm.xlu1 %2746, %v623_v32  }
  0x89   : > { %2747 = vset.pattern.permute.xlu1 %v2974_v35 }
  0x8a   : > { %666 = vperm.xlu1 %2747, %v662_v34   ;;  %v1560_v34 = vld [vmem:[%s4994_s3] sm:$0x3] }
  0x8e   : > { %2748 = vset.pattern.permute.xlu1 %v2975_v37  ;;  %v2995_v37 = vmov 4  }
  0x8f   : > { %723 = vperm.xlu1 %2748, %v719_v36  }
  0x93   : > { %2749 = vset.pattern.permute.xlu1 %v2976_v39 }
  0x94   : > { %762 = vperm.xlu1 %2749, %v758_v38   ;;  %v244_v38 = vld [vmem:[%s4992_s1 + $0x18] sm:$0xff] }
  0x98   : > { %2750 = vset.pattern.permute.xlu1 %v2977_v41 }
  0x99   : > { %801 = vperm.xlu1 %2750, %v797_v40  }
  0x9d   : > { %2751 = vset.pattern.permute.xlu1 %v2978_v43  ;;  %v1599_v43 = vld [vmem:[%s4994_s3] sm:$0x3] }
  0x9e   : > { %840 = vperm.xlu1 %2751, %v836_v42  }
  0xa2   : > { %2752 = vset.pattern.permute.xlu1 %v2979_v45 }
  0xa3   : > { %878 = vperm.xlu1 %2752, %v874_v44  }
  0xa7   : > { %2753 = vset.pattern.permute.xlu1 %v2980_v47 }
  0xa8   : > { %917 = vperm.xlu1 %2753, %v913_v46   ;;  %v2996_v46 = vmov 11  }
  0xac   : > { %2754 = vset.pattern.permute.xlu1 %v2981_v49  ;;  %v1638_v49 = vld [vmem:[%s4994_s3] sm:$0x3] }
  0xad   : > { %956 = vperm.xlu1 %2754, %v952_v48  }
  0xb1   : > { %2755 = vset.pattern.permute.xlu1 %v2982_v51 }
  0xb2   : > { %1013 = vperm.xlu1 %2755, %v1009_v50  }
  0xb6   : > { %2756 = vset.pattern.permute.xlu1 %v2983_v53 }
  0xb7   : > { %1052 = vperm.xlu1 %2756, %v1048_v52   ;;  %v2997_v52 = vmov 18  }
  0xbb   : > { %2757 = vset.pattern.permute.xlu1 %v2984_v55 }
  0xbc   : > { %1091 = vperm.xlu1 %2757, %v1087_v54   ;;  %v3327_v24 = vpop.permute.xlu1 %471  ;;  %v1677_v54 = vld [vmem:[%s4994_s3] sm:$0x3] }
  0xbd   : > { %5137 = vst [vmem:[#allocation9_spill] sm:$0xff] %v3327_v24 }
  0xc0   : > { %2758 = vset.pattern.permute.xlu1 %v2985_v57  ;;  %v2998_v57 = vmov 25  }
  0xc1   : > { %1130 = vperm.xlu1 %2758, %v1126_v56  }
  0xc5   : > { %2759 = vset.pattern.permute.xlu1 %v2986_v59  ;;  %v1716_v59 = vld [vmem:[%s4994_s3] sm:$0x3] }
  0xc6   : > { %1169 = vperm.xlu1 %2759, %v1165_v58  }
  0xca   : > { %2760 = vset.pattern.permute.xlu1 %v2987_v61  ;;  %v264_v61 = vld [vmem:[%s4993_s2] sm:$0xff] }
  0xcb   : > { %1208 = vperm.xlu1 %2760, %v1204_v60  }
  0xcc   : > { %v226_v10 = vpop.xlane.xlu0 %225 }
  0xcd   : > { %v237_v19 = vmul.f32 0.00390625, %v226_v10  ;;  %v3000_v10 = vmov 39  }
  0xcf   : > { %2761 = vset.pattern.permute.xlu1 %v2988_v63  ;;  %v245_v25 = vmul.f32 %v241_v22, %v237_v19  ;;  %v1890_v22 = vld [vmem:[%s4994_s3] sm:$0x3] }
  0xd0   : > { %1247 = vperm.xlu1 %2761, %v1243_v62   ;;  %v229_v15 = vpop.xlane.xlu0 %228  ;;  %v2999_v62 = vmov 32  }
  0xd1   : > { %v238_v20 = vmul.f32 0.00390625, %v229_v15  ;;  %v250_v31 = vsel %vm249_vm0, %v245_v25, 0.0  ;;  %v1794_v15 = vld [vmem:[%s4994_s3] sm:$0x3]  ;;  %v3003_v25 = vmov 12  }
  0xd3   : > { %v246_v26 = vmul.f32 %v242_v23, %v238_v20  ;;  %v1851_v20 = vld [vmem:[%s4994_s3] sm:$0x3] }
  0xd4   : > { %2762 = vset.pattern.permute.xlu1 %v2989_v1  ;;  %v266_v1 = vld [vmem:[%s4993_s2 + $0x10] sm:$0xff] }
  0xd5   : > { %1304 = vperm.xlu1 %2762, %v1300_v0   ;;  %v251_v32 = vsel %vm249_vm0, %v246_v26, 0.0  ;;  %v1929_v26 = vld [vmem:[%s4994_s3] sm:$0x3] }
  0xd6   : > { %v252_v36 = vadd.f32 %v251_v32, %v250_v31  ;;  %v1968_v32 = vld [vmem:[%s4994_s3] sm:$0x3] }
  0xd9   : > { %2763 = vset.pattern.permute.xlu1 %v2990_v7  ;;  %v1755_v7 = vld [vmem:[%s4994_s3] sm:$0x3] }
  0xda   : > { %1343 = vperm.xlu1 %2763, %v1339_v4  }
  0xde   : > { %2764 = vset.pattern.permute.xlu1 %v2991_v9 }
  0xdf   : > { %1382 = vperm.xlu1 %2764, %v1378_v8  }
  0xe3   : > { %2765 = vset.pattern.permute.xlu1 %v2992_v14 }
  0xe4   : > { %1421 = vperm.xlu1 %2765, %v1417_v13  }
  0xe8   : > { %2767 = vset.pattern.permute.xlu1 %v2993_v21  ;;  %v3002_v21 = vmov 5  }
  0xe9   : > { %1482 = vperm.xlu1 %2767, %v1478_v18   ;;  %v3001_v18 = vmov 46  }
  0xed   : > { %2768 = vset.pattern.permute.xlu1 %v2994_v28  ;;  %v3004_v28 = vmov 19  }
  0xee   : > { %1521 = vperm.xlu1 %2768, %v1517_v27   ;;  %v232_v30 = vpop.xlane.xlu1 %231 }
  0xef   : > { %v239_v33 = vmul.f32 0.00390625, %v232_v30  ;;  %v3005_v30 = vmov 20  }
  0xf1   : > { %v247_v35 = vmul.f32 %v243_v29, %v239_v33  ;;  %v2220_v29 = vld [vmem:[%s4994_s3] sm:$0x3]  ;;  %v3006_v33 = vmov 26  }
  0xf2   : > { %2769 = vset.pattern.permute.xlu1 %v2995_v37  ;;  %v235_v39 = vpop.xlane.xlu1 %234 }
  0xf3   : > { %v253_v40 = vsel %vm249_vm0, %v247_v35, 0.0  ;;  %v240_v41 = vmul.f32 0.00390625, %v235_v39  ;;  %1564 = vperm.xlu1 %2769, %v1560_v34   ;;  %v2181_v35 = vld [vmem:[%s4994_s3] sm:$0x3]  ;;  %v3008_v39 = vmov 27  }
  0xf4   : > { %v254_v44 = vadd.f32 %v253_v40, %v252_v36  ;;  %v3007_v36 = vmov 13   ;;  %v2046_v40 = vld [vmem:[%s4994_s3] sm:$0x3] }
  0xf5   : > { %v248_v42 = vmul.f32 %v244_v38, %v240_v41  ;;  %v2259_v38 = vld [vmem:[%s4994_s3] sm:$0x3] }
  0xf6   : > { %v3351_v50 = vpop.permute.xlu1 %510 }
  0xf7   : > { %v255_v45 = vsel %vm249_vm0, %v248_v42, 0.0  ;;  %2770 = vset.pattern.permute.xlu1 %v2996_v46  ;;  %5138 = vst [vmem:[#allocation10_spill] sm:$0xff] %v3351_v50  ;;  %v3009_v42 = vmov 40  }
  0xf8   : > { %v256_v47 = vadd.f32 %v255_v45, %v254_v44  ;;  %1603 = vperm.xlu1 %2770, %v1599_v43   ;;  %v2085_v43 = vld [vmem:[%s4994_s3] sm:$0x3]  ;;  %v3010_v45 = vmov 47  }
  0xfa   : > { %v257_v48 = vrot.slane %v256_v47, 4  ;;  %v3356_v56 = vpop.permute.xlu1 %549 }
  0xfb   : > { %5139 = vst [vmem:[#allocation11_spill] sm:$0xff] %v3356_v56 }
  0xfc   : > { %v258_v51 = vadd.f32 %v257_v48, %v256_v47  ;;  %2771 = vset.pattern.permute.xlu1 %v2997_v52 }
  0xfd   : > { %1642 = vperm.xlu1 %2771, %v1638_v49  }
  0xfe   : > { %v259_v53 = vrot.slane %v258_v51, 2 }
  0xff   : > { %v3366_v0 = vpop.permute.xlu1 %588 }
 0x100   : > { %v260_v55 = vadd.f32 %v259_v53, %v258_v51  ;;  %5140 = vst [vmem:[#allocation12_spill] sm:$0xff] %v3366_v0  ;;  %v265_v51 = vld [vmem:[%s4993_s2 + $0x8] sm:$0xff] }
 0x101   : > { %2772 = vset.pattern.permute.xlu1 %v2998_v57 }
 0x102   : > { %v261_v58 = vrot.slane %v260_v55, 1  ;;  %1681 = vperm.xlu1 %2772, %v1677_v54   ;;  %v267_v54 = vld [vmem:[%s4993_s2 + $0x18] sm:$0xff] }
 0x104   : > { %v262_v60 = vadd.f32 %v261_v58, %v260_v55  ;;  %v3377_v13 = vpop.permute.xlu1 %627 }
 0x105   : > { %5141 = vst [vmem:[#allocation13_spill] sm:$0xff] %v3377_v13 }
 0x106   : > { %2773 = vset.pattern.permute.xlu1 %v2999_v62  ;;  %v3364_v63 = vmax.f32 %v262_v60, 0.0 }
 0x107   : > { %1720 = vperm.xlu1 %2773, %v1716_v59  }
 0x108   : > { %v268_v4 = vmul.f32 %v264_v61, %v3364_v63  ;;  %v270_v9 = vmul.f32 %v266_v1, %v3364_v63  ;;  %v269_v53 = vmul.f32 %v265_v51, %v3364_v63  ;;  %v271_v58 = vmul.f32 %v267_v54, %v3364_v63 }
 0x109   : > { %v3383_v19 = vpop.permute.xlu1 %666 }
 0x10a   : > { %v272_v8 = vsel %vm249_vm0, %v268_v4, 0.0  ;;  %v278_v14 = vsel %vm249_vm0, %v270_v9, 0.0  ;;  %5142 = vst [vmem:[#allocation14_spill] sm:$0xff] %v3383_v19  ;;  %v275_v57 = vsel %vm249_vm0, %v269_v53, 0.0  ;;  %v281_v59 = vsel %vm249_vm0, %v271_v58, 0.0 }
 0x10b   : > { %2774 = vset.pattern.permute.xlu1 %v3000_v10  ;;  %273 = vadd.xlane.f32.xlu0 %v272_v8 }
 0x10c   : > { %1759 = vperm.xlu1 %2774, %v1755_v7  }
 0x10e   : > { %v3391_v23 = vpop.permute.xlu1 %723 }
 0x10f   : > { %279 = vadd.xlane.f32.xlu0 %v278_v14  ;;  %5143 = vst [vmem:[#allocation15_spill] sm:$0xff] %v3391_v23  ;;  %v3011_v14 = vmov 48  }
 0x110   : > { %2775 = vset.pattern.permute.xlu1 %v3001_v18  ;;  %2790 = vset.pattern.permute.xlu0 %v3011_v14 }
 0x111   : > { %1798 = vperm.xlu1 %2775, %v1794_v15   ;;  %v2376_v15 = vld [vmem:[%s4994_s3] sm:$0x3] }
 0x113   : > { %v3396_v27 = vpop.permute.xlu1 %762 }
 0x114   : > { %5144 = vst [vmem:[#allocation16_spill] sm:$0xff] %v3396_v27 }
 0x115   : > { %2776 = vset.pattern.permute.xlu1 %v3002_v21 }
 0x116   : > { %1855 = vperm.xlu1 %2776, %v1851_v20   ;;  %v3012_v20 = vmov 0.0  }
 0x117   : > { %355 = vst [vmem:[#allocation2] sm:$0x3] %v3012_v20  ;;  %356 = vst [vmem:[#allocation2 + $0x6] sm:$0x3] %v3012_v20 }
 0x118   : > { %v3401_v31 = vpop.permute.xlu1 %801 }
 0x119   : > { %5145 = vst [vmem:[#allocation17_spill] sm:$0xff] %v3401_v31 }
 0x11a   : > { %2777 = vset.pattern.permute.xlu1 %v3003_v25 }
 0x11b   : > { %1894 = vperm.xlu1 %2777, %v1890_v22  }
 0x11d   : > { %v3406_v34 = vpop.permute.xlu1 %840 }
 0x11e   : > { %5146 = vst [vmem:[#allocation18_spill] sm:$0xff] %v3406_v34 }
 0x11f   : > { %2778 = vset.pattern.permute.xlu1 %v3004_v28  ;;  %v3481_v28 = vpop.permute.xlu0 %432 }
 0x120   : > { %1933 = vperm.xlu1 %2778, %v1929_v26   ;;  %5171 = vst [vmem:[#allocation43_spill] sm:$0xff] %v3481_v28 }
 0x122   : > { %v3411_v37 = vpop.permute.xlu1 %878 }
 0x123   : > { %5147 = vst [vmem:[#allocation19_spill] sm:$0xff] %v3411_v37 }
 0x124   : > { %2780 = vset.pattern.permute.xlu1 %v3005_v30  ;;  %v3485_v30 = vpop.permute.xlu0 %1443 }
 0x125   : > { %2224 = vperm.xlu1 %2780, %v2220_v29   ;;  %5173 = vst [vmem:[#allocation45_spill] sm:$0xff] %v3485_v30 }
 0x127   : > { %v3419_v41 = vpop.permute.xlu1 %917 }
 0x128   : > { %5148 = vst [vmem:[#allocation20_spill] sm:$0xff] %v3419_v41 }
 0x129   : > { %2781 = vset.pattern.permute.xlu1 %v3006_v33  ;;  %v3489_v33 = vpop.permute.xlu0 %2146 }
 0x12a   : > { %1972 = vperm.xlu1 %2781, %v1968_v32   ;;  %5175 = vst [vmem:[#allocation47_spill] sm:$0xff] %v3489_v33 }
 0x12c   : > { %v3424_v44 = vpop.permute.xlu1 %956 }
 0x12d   : > { %5149 = vst [vmem:[#allocation21_spill] sm:$0xff] %v3424_v44 }
 0x12e   : > { %2783 = vset.pattern.permute.xlu1 %v3007_v36  ;;  %v3493_v36 = vpop.permute.xlu0 %2011 }
 0x12f   : > { %2185 = vperm.xlu1 %2783, %v2181_v35   ;;  %5177 = vst [vmem:[#allocation49_spill] sm:$0xff] %v3493_v36 }
 0x131   : > { %v3426_v46 = vpop.permute.xlu1 %1013 }
 0x132   : > { %5150 = vst [vmem:[#allocation22_spill] sm:$0xff] %v3426_v46 }
 0x133   : > { %2784 = vset.pattern.permute.xlu1 %v3008_v39  ;;  %v3497_v39 = vpop.permute.xlu0 %2302 }
 0x134   : > { %2263 = vperm.xlu1 %2784, %v2259_v38   ;;  %5179 = vst [vmem:[#allocation51_spill] sm:$0xff] %v3497_v39 }
 0x136   : > { %v3428_v47 = vpop.permute.xlu1 %1052 }
 0x137   : > { %5151 = vst [vmem:[#allocation23_spill] sm:$0xff] %v3428_v47 }
 0x138   : > { %2786 = vset.pattern.permute.xlu1 %v3009_v42  ;;  %v3501_v42 = vpop.permute.xlu0 %2341 }
 0x139   : > { %2050 = vperm.xlu1 %2786, %v2046_v40   ;;  %5181 = vst [vmem:[#allocation53_spill] sm:$0xff] %v3501_v42 }
 0x13b   : > { %v3430_v48 = vpop.permute.xlu1 %1091 }
 0x13c   : > { %5152 = vst [vmem:[#allocation24_spill] sm:$0xff] %v3430_v48 }
 0x13d   : > { %2787 = vset.pattern.permute.xlu1 %v3010_v45 }
 0x13e   : > { %2089 = vperm.xlu1 %2787, %v2085_v43  }
 0x140   : > { %v3432_v49 = vpop.permute.xlu1 %1130 }
 0x141   : > { %5153 = vst [vmem:[#allocation25_spill] sm:$0xff] %v3432_v49 }
 0x142   : > { %2789 = vset.pattern.permute.xlu1 %v3011_v14 }
 0x145   : > { %v3437_v52 = vpop.permute.xlu1 %1169 }
 0x146   : > { %5154 = vst [vmem:[#allocation26_spill] sm:$0xff] %v3437_v52 }
 0x14a   : > { %v3443_v55 = vpop.permute.xlu1 %1208 }
 0x14b   : > { %5155 = vst [vmem:[#allocation27_spill] sm:$0xff] %v3443_v55 }
 0x14f   : > { %v3448_v60 = vpop.permute.xlu1 %1247 }
 0x150   : > { %5156 = vst [vmem:[#allocation28_spill] sm:$0xff] %v3448_v60 }
 0x154   : > { %v3450_v61 = vpop.permute.xlu1 %1304 }
 0x155   : > { %5157 = vst [vmem:[#allocation29_spill] sm:$0xff] %v3450_v61 }
 0x159   : > { %v3452_v62 = vpop.permute.xlu1 %1343 }
 0x15a   : > { %5158 = vst [vmem:[#allocation30_spill] sm:$0xff] %v3452_v62 }
 0x15e   : > { %v3454_v1 = vpop.permute.xlu1 %1382 }
 0x15f   : > { %5159 = vst [vmem:[#allocation31_spill] sm:$0xff] %v3454_v1 }
 0x162   : > { %276 = vadd.xlane.f32.xlu1 %v275_v57 }
 0x163   : > { %v3456_v4 = vpop.permute.xlu1 %1421 }
 0x164   : > { %5160 = vst [vmem:[#allocation32_spill] sm:$0xff] %v3456_v4 }
 0x166   : > { %282 = vadd.xlane.f32.xlu1 %v281_v59 }
 0x168   : > { %v3458_v7 = vpop.permute.xlu1 %1482 }
 0x169   : > { %5161 = vst [vmem:[#allocation33_spill] sm:$0xff] %v3458_v7 }
 0x16d   : > { %v3460_v8 = vpop.permute.xlu1 %1521 }
 0x16e   : > { %5162 = vst [vmem:[#allocation34_spill] sm:$0xff] %v3460_v8 }
 0x172   : > { %v3462_v9 = vpop.permute.xlu1 %1564 }
 0x173   : > { %5163 = vst [vmem:[#allocation35_spill] sm:$0xff] %v3462_v9 }
 0x177   : > { %v3464_v63 = vpop.permute.xlu1 %1603  ;;  %2380 = vperm.xlu1 %2789, %v2376_v15  }
 0x178   : > { %5164 = vst [vmem:[#allocation36_spill] sm:$0xff] %v3464_v63 }
 0x17c   : > { %v3466_v10 = vpop.permute.xlu1 %1642 }
 0x17d   : > { %5165 = vst [vmem:[#allocation37_spill] sm:$0xff] %v3466_v10 }
 0x181   : > { %v3471_v18 = vpop.permute.xlu1 %1681 }
 0x182   : > { %5166 = vst [vmem:[#allocation38_spill] sm:$0xff] %v3471_v18 }
 0x186   : > { %v3473_v21 = vpop.permute.xlu1 %1720 }
 0x187   : > { %5167 = vst [vmem:[#allocation39_spill] sm:$0xff] %v3473_v21 }
 0x18b   : > { %v3475_v22 = vpop.permute.xlu1 %1759 }
 0x18c   : > { %5168 = vst [vmem:[#allocation40_spill] sm:$0xff] %v3475_v22 }
 0x190   : > { %v3477_v25 = vpop.permute.xlu1 %1798 }
 0x191   : > { %5169 = vst [vmem:[#allocation41_spill] sm:$0xff] %v3477_v25 }
 0x195   : > { %v3479_v26 = vpop.permute.xlu1 %1855 }
 0x196   : > { %5170 = vst [vmem:[#allocation42_spill] sm:$0xff] %v3479_v26 }
 0x198   : > { %v274_v45 = vpop.xlane.xlu0 %273 }
 0x199   : > { %v2578_v54 = vmul.f32 -1.442695, %v274_v45 }
 0x19a   : > { %v3483_v29 = vpop.permute.xlu1 %1894 }
 0x19b   : > { %5172 = vst [vmem:[#allocation44_spill] sm:$0xff] %v3483_v29  ;;  %2838 = vpow2.f32 %v2578_v54 }
 0x19c   : > { %v280_v53 = vpop.xlane.xlu0 %279 }
 0x19d   : > { %v2580_v57 = vmul.f32 -1.442695, %v280_v53 }
 0x19f   : > { %v3487_v32 = vpop.permute.xlu1 %1933  ;;  %2840 = vpow2.f32 %v2580_v57 }
 0x1a0   : > { %5174 = vst [vmem:[#allocation46_spill] sm:$0xff] %v3487_v32 }
 0x1a4   : > { %v3491_v35 = vpop.permute.xlu1 %2224 }
 0x1a5   : > { %5176 = vst [vmem:[#allocation48_spill] sm:$0xff] %v3491_v35 }
 0x1a9   : > { %v3495_v38 = vpop.permute.xlu1 %1972 }
 0x1aa   : > { %5178 = vst [vmem:[#allocation50_spill] sm:$0xff] %v3495_v38 }
 0x1ae   : > { %v3499_v40 = vpop.permute.xlu1 %2185 }
 0x1af   : > { %5180 = vst [vmem:[#allocation52_spill] sm:$0xff] %v3499_v40  ;;  %v2839_v40 = vpop.eup %2838 }
 0x1b0   : > { %v2841_v42 = vpop.eup %2840  ;;  %v296_v39 = vadd.f32 1.0, %v2839_v40 }
 0x1b3   : > { %v3503_v43 = vpop.permute.xlu1 %2263 }
 0x1b4   : > { %5182 = vst [vmem:[#allocation54_spill] sm:$0xff] %v3503_v43  ;;  %v298_v43 = vadd.f32 1.0, %v2841_v42 }
 0x1b8   : > { %v3505_v51 = vpop.permute.xlu1 %2050 }
 0x1b9   : > { %5183 = vst [vmem:[#allocation55_spill] sm:$0xff] %v3505_v51 }
 0x1bd   : > { %v3507_v58 = vpop.permute.xlu1 %2089 }
 0x1be   : > { %5184 = vst [vmem:[#allocation56_spill] sm:$0xff] %v3507_v58 }
 0x1ef   : > { %v277_v59 = vpop.xlane.xlu1 %276 }
 0x1f0   : > { %v2579_v14 = vmul.f32 -1.442695, %v277_v59 }
 0x1f2   : > { %2842 = vpow2.f32 %v2579_v14 }
 0x1f3   : > { %v283_v15 = vpop.xlane.xlu1 %282 }
 0x1f4   : > { %v2581_v20 = vmul.f32 -1.442695, %v283_v15 }
 0x1f6   : > { %2844 = vpow2.f32 %v2581_v20 }
 0x1f7   : > { %2846 = vrcp.f32 %v296_v39 }
 0x1f8   : > { %2848 = vrcp.f32 %v298_v43 }
 0x1fc   : > { %v2843_v35 = vpop.eup %2842 }
 0x1fd   : > { %v297_v51 = vadd.f32 1.0, %v2843_v35 }
 0x1ff   : > { %2850 = vrcp.f32 %v297_v51 }
 0x200   : > { %v2845_v45 = vpop.eup %2844 }
 0x201   : > { %v299_v53 = vadd.f32 1.0, %v2845_v45  ;;  %v2847_v54 = vpop.eup %2846 }
 0x202   : > { %v2849_v57 = vpop.eup %2848  ;;  %v3510_v59 = vmul.f32 %v2847_v54, %v3207_v2  ;;  %v3513_v14 = vmul.f32 %v2847_v54, %v3209_v3 }
 0x203   : > { %2852 = vrcp.f32 %v299_v53  ;;  %v3522_v35 = vmul.f32 %v2849_v57, %v3222_v11  ;;  %v3525_v42 = vmul.f32 %v2849_v57, %v3224_v12 }
 0x204   : > { %5185 = vst [vmem:[#allocation57_spill] sm:$0xff] %v3510_v59  ;;  %5186 = vst [vmem:[#allocation58_spill] sm:$0xff] %v3513_v14 }
 0x205   : > { %5189 = vst [vmem:[#allocation61_spill] sm:$0xff] %v3522_v35  ;;  %5190 = vst [vmem:[#allocation62_spill] sm:$0xff] %v3525_v42  ;;  %v316_v12 = vmax.f32 %v3510_v59, %v3522_v35 }
 0x209   : > { %v2851_v58 = vpop.eup %2850 }
 0x20a   : > { %v3516_v40 = vmul.f32 %v2851_v58, %v3213_v5  ;;  %v3519_v39 = vmul.f32 %v2851_v58, %v3215_v6  ;;  %v325_v58 = vmax.f32 %v3513_v14, %v3525_v42 }
 0x20c   : > { %5187 = vst [vmem:[#allocation59_spill] sm:$0xff] %v3516_v40  ;;  %5188 = vst [vmem:[#allocation60_spill] sm:$0xff] %v3519_v39  ;;  %v334_v43 = vadd.f32 %v3516_v40, %v3510_v59  ;;  %v343_v2 = vadd.f32 %v3519_v39, %v3513_v14  ;;  %v3013_v59 = vmov 1966171168   ;;  %v5018_v14 = vlaneseq }
 0x20d   : > { %v2853_v3 = vpop.eup %2852 }
 0x20e   : > { %v3532_v51 = vmul.f32 %v2853_v3, %v3231_v16  ;;  %v3535_v5 = vmul.f32 %v2853_v3, %v3233_v17  ;;  %v335_v6 = vadd.f32 %v334_v43, %v3522_v35  ;;  %v344_v11 = vadd.f32 %v343_v2, %v3525_v42 }
 0x20f   : > { %v361_v42 = vunpack.c.l.s4 %v3013_v59  ;;  %vm377_vm1 = vcmp.lt.s32.totalorder %v5018_v14, 256 }
 0x210   : > { %5191 = vst [vmem:[#allocation63_spill] sm:$0xff] %v3532_v51  ;;  %5192 = vst [vmem:[#allocation64_spill] sm:$0xff] %v3535_v5  ;;  %v317_v15 = vmax.f32 %v3516_v40, %v3532_v51  ;;  %v326_v16 = vmax.f32 %v3519_v39, %v3535_v5  ;;  %v336_v20 = vadd.f32 %v335_v6, %v3532_v51 }
 0x211   : > { %v345_v17 = vadd.f32 %v344_v11, %v3535_v5  ;;  %v362_v11 = vunpack.c.0.s8 %v361_v42 }
 0x212   : > { %v318_v45 = vmax.f32 %v316_v12, %v317_v15  ;;  %v327_v53 = vmax.f32 %v325_v58, %v326_v16  ;;  %v337_v54 = vrot.slane %v336_v20, 4  ;;  %v364_v12 = vshrl.u32 %v5018_v14, 7 }
 0x213   : > { %v346_v57 = vrot.slane %v345_v17, 4 }
 0x214   : > { %v319_v43 = vrot.slane %v318_v45, 4  ;;  %v328_v2 = vrot.slane %v327_v53, 4  ;;  %v338_v3 = vadd.f32 %v337_v54, %v336_v20 }
 0x215   : > { %v347_v35 = vadd.f32 %v346_v57, %v345_v17  ;;  %v365_v57 = vsub.s32 %v362_v11, %v364_v12 }
 0x216   : > { %v320_v29 = vmax.f32 %v318_v45, %v319_v43  ;;  %v329_v40 = vmax.f32 %v327_v53, %v328_v2  ;;  %v339_v36 = vrot.slane %v338_v3, 2 }
 0x217   : > { %v348_v38 = vrot.slane %v347_v35, 2 }
 0x218   : > { %v321_v39 = vrot.slane %v320_v29, 2  ;;  %v330_v33 = vrot.slane %v329_v40, 2  ;;  %v340_v6 = vadd.f32 %v339_v36, %v338_v3  ;;  %v3014_v36 = vmov 1983009808  }
 0x219   : > { %v349_v51 = vadd.f32 %v348_v38, %v347_v35  ;;  %v438_v38 = vunpack.c.l.s4 %v3014_v36 }
 0x21a   : > { %v322_v58 = vmax.f32 %v320_v29, %v321_v39  ;;  %v331_v15 = vmax.f32 %v329_v40, %v330_v33  ;;  %v341_v16 = vrot.slane %v340_v6, 1 }
 0x21b   : > { %v350_v5 = vrot.slane %v349_v51, 1  ;;  %v439_v40 = vunpack.c.0.s8 %v438_v38 }
 0x21c   : > { %v323_v20 = vrot.slane %v322_v58, 1  ;;  %v332_v17 = vrot.slane %v331_v15, 1  ;;  %v342_v54 = vadd.f32 %v341_v16, %v340_v6 }
 0x21d   : > { %v351_v59 = vadd.f32 %v350_v5, %v349_v51  ;;  %v3551_v39 = vsub.s32 %v439_v40, %v364_v12 }
 0x21e   : > { %v324_v45 = vmax.f32 %v322_v58, %v323_v20  ;;  %v333_v53 = vmax.f32 %v331_v15, %v332_v17  ;;  %v353_v43 = vmul.f32 0.03125, %v342_v54 }
 0x21f   : > { %v354_v2 = vmul.f32 0.03125, %v351_v59 }
 0x220   : > { %v359_v32 = vcombine.low %v324_v45, %v333_v53 }
 0x221   : > { %v383_v26 = vcombine.low %v353_v43, %v354_v2 }
 0x222   : > { %v366_v35 = vrot.slane %v359_v32, %v365_v57 }
 0x223   : > { %v390_v42 = vrot.slane %v383_v26, %v365_v57 }
 0x224   : > { %v373_v29 = vrot.slane %v366_v35, %v365_v57 }
 0x225   : > { %v397_v33 = vrot.slane %v390_v42, %v365_v57 }
 0x226   : > { %380 = vst.msk [vmem:[#allocation2 + $0x2] ss:$2 sm:$0x3] %vm377_vm1, %v373_v29 }
 0x227   : > { %400 = vst.msk [vmem:[#allocation2 + $0x3] ss:$2 sm:$0x3] %vm377_vm1, %v397_v33  ;;  %vm5116_vm1 = vcmask 138240  }
 0x22e   : > { %v3553_v51 = vld [vmem:[#allocation2] sm:$0x3f] }
 0x22f   : > { %v3557_v5 = vrot.slane %v3553_v51, %v3551_v39  ;;  %v429_v3 = vld [vmem:[#allocation2] sm:$0x3f]  ;;  %v514_v18 = vcombine.high %v3553_v51, %v3553_v51 }
 0x230   : > { %v443_v6 = vrot.slane %v429_v3, %v3551_v39  ;;  %v3560_v32 = vld [vmem:[#allocation2] sm:$0x3f]  ;;  %v436_v35 = vcombine.high %v429_v3, %v429_v3 }
 0x231   : > { %530 = vrot.lane.b32.xlu0 %v3557_v5, %s3015_s5  ;;  %v3564_v26 = vld [vmem:[#allocation2] sm:$0x3f]  ;;  %v3569_v11 = vrot.slane %v3560_v32, %v3551_v39  ;;  %v3682_v1 = vrot.slane %v514_v18, %v3551_v39 }
 0x232   : > { %452 = vrot.lane.b32.xlu1 %v443_v6, %s3016_s6  ;;  %v3573_v12 = vrot.slane %v3564_v26, %v3551_v39  ;;  %v3575_v58 = vld [vmem:[#allocation2 + $0x2] sm:$0x3f]  ;;  %v451_v42 = vcombine.high %v443_v6, %v443_v6  ;;  %v475_v33 = vcombine.high %v3564_v26, %v3564_v26  ;;  %v450_v22 = vrot.slane %v436_v35, %v3551_v39 }
 0x233   : > { %v3579_v15 = vld [vmem:[#allocation2 + $0x2] sm:$0x3f]  ;;  %v3585_v16 = vrot.slane %v3575_v58, %v3551_v39  ;;  %v592_v52 = vcombine.high %v3575_v58, %v3575_v58 }
 0x234   : > { %v3589_v20 = vrot.slane %v3579_v15, %v3551_v39  ;;  %v3591_v17 = vld [vmem:[#allocation2 + $0x2] sm:$0x3f] }
 0x235   : > { %569 = vrot.lane.b32.xlu0 %v3569_v11, %s3017_s7  ;;  %v3595_v54 = vld [vmem:[#allocation2] sm:$0x3f]  ;;  %v3601_v59 = vrot.slane %v3591_v17, %v3551_v39  ;;  %v631_v18 = vcombine.high %v3591_v17, %v3591_v17  ;;  %v3715_v17 = vrot.slane %v592_v52, %v3551_v39 }
 0x236   : > { %491 = vrot.lane.b32.xlu1 %v3573_v12, %s3018_s9  ;;  %v3605_v57 = vrot.slane %v3595_v54, %v3551_v39  ;;  %v3607_v45 = vld [vmem:[#allocation2 + $0x2] sm:$0x3f] }
 0x237   : > { %v3611_v53 = vld [vmem:[#allocation2] sm:$0x3f]  ;;  %v3617_v43 = vrot.slane %v3607_v45, %v3551_v39  ;;  %v670_v26 = vcombine.high %v3607_v45, %v3607_v45 }
 0x238   : > { %5193 = vst [vmem:[#allocation65_spill] sm:$0xff] %v3605_v57  ;;  %v3621_v2 = vrot.slane %v3611_v53, %v3551_v39  ;;  %v720_v36 = vld [vmem:[#allocation2] sm:$0x3f]  ;;  %v2228_v37 = vcombine.high %v3611_v53, %v3611_v53 }
 0x239   : > { %608 = vrot.lane.b32.xlu0 %v3585_v16, %s3019_s20  ;;  %v3628_v38 = vrot.slane %v720_v36, %v3551_v39  ;;  %v759_v29 = vld [vmem:[#allocation2] sm:$0x3f]  ;;  %v727_v63 = vcombine.high %v720_v36, %v720_v36  ;;  %v3707_v48 = vrot.slane %v670_v26, %v3551_v39 }
 0x23a   : > { %1463 = vrot.lane.b32.xlu1 %v3589_v20, %s5080_s22  ;;  %5194 = vst [vmem:[#allocation66_spill] sm:$0xff] %v3621_v2  ;;  %v3636_v40 = vrot.slane %v759_v29, %v3551_v39  ;;  %v798_v14 = vld [vmem:[#allocation2] sm:$0x3f]  ;;  %v766_v10 = vcombine.high %v759_v29, %v759_v29  ;;  %v489_v29 = vrot.slane %v475_v33, %v3551_v39 }
 0x23b   : > { %v837_v25 = vld [vmem:[#allocation2] sm:$0x3f]  ;;  %v805_v8 = vcombine.high %v798_v14, %v798_v14  ;;  %v3659_v51 = vrot.slane %v798_v14, %v3551_v39  ;;  %v553_v33 = vcombine.high %v3560_v32, %v3560_v32  ;;  %v3710_v46 = vrot.slane %v727_v63, %v3551_v39 }
 0x23c   : > { %v3639_v21 = vld [vmem:[#allocation2 + $0x2] sm:$0x3f]  ;;  %v3662_v7 = vrot.slane %v837_v25, %v3551_v39  ;;  %v3721_v44 = vrot.slane %v766_v10, %v3551_v39  ;;  %v1937_v63 = vcombine.high %v3595_v54, %v3595_v54 }
 0x23d   : > { %647 = vrot.lane.b32.xlu0 %v3601_v59, %s5061_s8  ;;  %v3641_v3 = vld [vmem:[#allocation2 + $0x2] sm:$0x3f]  ;;  %v882_v4 = vcombine.high %v3639_v21, %v3639_v21  ;;  %v3704_v47 = vrot.slane %v553_v33, %v3551_v39  ;;  %v3724_v33 = vrot.slane %v805_v8, %v3551_v39  ;;  %v3766_v53 = vrot.slane %v3639_v21, %v3551_v39 }
 0x23e   : > { %1953 = vrot.lane.b32.xlu1 %v3605_v57, %s5059_s10  ;;  %v3643_v6 = vld [vmem:[#allocation2 + $0x2] sm:$0x3f]  ;;  %v3756_v34 = vrot.slane %v1937_v63, %v3551_v39  ;;  %s5072_s10 = smov 17  }
 0x23f   : > { %v3653_v35 = vld [vmem:[#allocation2] sm:$0x3f]  ;;  %v960_v14 = vcombine.high %v3643_v6, %v3643_v6 }
 0x240   : > { %v3655_v9 = vld [vmem:[#allocation2] sm:$0x3f] }
 0x241   : > { %686 = vrot.lane.b32.xlu0 %v3617_v43, %s5062_s26  ;;  %v3664_v45 = vld [vmem:[#allocation2] sm:$0x3f]  ;;  %v1056_v62 = vcombine.high %v3655_v9, %v3655_v9 }
 0x242   : > { %2244 = vrot.lane.b32.xlu1 %v3621_v2, %s5057_s11  ;;  %v3666_v36 = vld [vmem:[#allocation2] sm:$0x3f]  ;;  %v1095_v61 = vcombine.high %v3664_v45, %v3664_v45  ;;  %s5071_s11 = smov 33  }
 0x243   : > { %v3675_v30 = vld [vmem:[#allocation2 + $0x2] sm:$0x3f]  ;;  %v1134_v60 = vcombine.high %v3666_v36, %v3666_v36  ;;  %v3762_v31 = vrot.slane %v1056_v62, %v3551_v39 }
 0x244   : > { %v3692_v55 = vld [vmem:[#allocation2 + $0x2] sm:$0x3f]  ;;  %v1173_v32 = vcombine.high %v3675_v30, %v3675_v30  ;;  %v3776_v63 = vrot.slane %v1095_v61, %v3551_v39  ;;  %v568_v61 = vcombine.high %v3569_v11, %v3569_v11 }
 0x245   : > { %743 = vrot.lane.b32.xlu0 %v3628_v38, %s5063_s12  ;;  %v3701_v49 = vld [vmem:[#allocation2 + $0x2] sm:$0x3f]  ;;  %v1212_v26 = vcombine.high %v3692_v55, %v3692_v55  ;;  %5199 = vst [vmem:[#allocation71_spill] sm:$0xff] %v3762_v31  ;;  %v3789_v19 = vrot.slane %v1134_v60, %v3551_v39  ;;  %v3808_v60 = vrot.slane %v3641_v3, %v3551_v39 }
 0x246   : > { %454 = vrot.lane.b32.xlu1 %v451_v42, %s3016_s6  ;;  %v490_v42 = vcombine.high %v3573_v12, %v3573_v12  ;;  %v844_v12 = vcombine.high %v837_v25, %v837_v25  ;;  %v1017_v25 = vcombine.high %v3653_v35, %v3653_v35  ;;  %v3712_v58 = vld [vmem:[#allocation2] sm:$0x3f]  ;;  %v1251_v8 = vcombine.high %v3701_v49, %v3701_v49 }
 0x247   : > { %v3728_v41 = vld [vmem:[#allocation2] sm:$0x3f]  ;;  %5201 = vst [vmem:[#allocation73_spill] sm:$0xff] %v3776_v63  ;;  %5202 = vst [vmem:[#allocation74_spill] sm:$0xff] %v3789_v19  ;;  %v3803_v13 = vrot.slane %v1212_v26, %v3551_v39  ;;  %v1447_v63 = vcombine.high %v3579_v15, %v3579_v15 }
 0x248   : > { %v3733_v52 = vrot.slane %v844_v12, %v3551_v39  ;;  %v3742_v10 = vld [vmem:[#allocation2] sm:$0x3f]  ;;  %v3750_v12 = vrot.slane %v960_v14, %v3551_v39  ;;  %v3759_v27 = vrot.slane %v1017_v25, %v3551_v39  ;;  %v3773_v14 = vrot.slane %v2228_v37, %v3551_v39 }
 0x249   : > { %782 = vrot.lane.b32.xlu0 %v3636_v40, %s5064_s23  ;;  %v529_v25 = vcombine.high %v3557_v5, %v3557_v5  ;;  %v1386_v62 = vcombine.high %v3742_v10, %v3742_v10  ;;  %v3782_v23 = vld [vmem:[#allocation2 + $0x2] sm:$0x3f]  ;;  %v3792_v37 = vrot.slane %v1173_v32, %v3551_v39  ;;  %5204 = vst [vmem:[#allocation76_spill] sm:$0xff] %v3803_v13 }
 0x24a   : > { %456 = vrot.lane.b32.xlu1 %v450_v22, %s3016_s6  ;;  %v921_v22 = vcombine.high %v3641_v3, %v3641_v3  ;;  %5197 = vst [vmem:[#allocation69_spill] sm:$0xff] %v3750_v12  ;;  %5198 = vst [vmem:[#allocation70_spill] sm:$0xff] %v3759_v27  ;;  %v3784_v21 = vld [vmem:[#allocation2] sm:$0x3f]  ;;  %v3819_v50 = vrot.slane %v1251_v8, %v3551_v39  ;;  %s5068_s6 = smov 98   ;;  %v3871_v12 = vrot.slane %v1447_v63, %v3551_v39 }
 0x24b   : > { %5200 = vst [vmem:[#allocation72_spill] sm:$0xff] %v3773_v14  ;;  %v3786_v2 = vld [vmem:[#allocation2] sm:$0x3f]  ;;  %5203 = vst [vmem:[#allocation75_spill] sm:$0xff] %v3792_v37  ;;  %v1568_v3 = vcombine.high %v3784_v21, %v3784_v21  ;;  %v3848_v19 = vrot.slane %v1386_v62, %v3551_v39  ;;  %v607_v14 = vcombine.high %v3585_v16, %v3585_v16 }
 0x24c   : > { %v3747_v54 = vrot.slane %v921_v22, %v3551_v39  ;;  %v1347_v22 = vcombine.high %v3728_v41, %v3728_v41  ;;  %v3798_v5 = vld [vmem:[#allocation2] sm:$0x3f]  ;;  %5205 = vst [vmem:[#allocation77_spill] sm:$0xff] %v3819_v50  ;;  %v1607_v24 = vcombine.high %v3786_v2, %v3786_v2 }
 0x24d   : > { %821 = vrot.lane.b32.xlu0 %v3659_v51, %s5065_s25  ;;  %v3800_v57 = vld [vmem:[#allocation2 + $0x2] sm:$0x3f]  ;;  %5208 = vst [vmem:[#allocation80_spill] sm:$0xff] %v3848_v19  ;;  %v3877_v15 = vrot.slane %v1568_v3, %v3551_v39 }
 0x24e   : > { %493 = vrot.lane.b32.xlu1 %v490_v42, %s3018_s9  ;;  %v3718_v42 = vrot.slane %v631_v18, %v3551_v39  ;;  %v3736_v18 = vrot.slane %v882_v4, %v3551_v39  ;;  %5196 = vst [vmem:[#allocation68_spill] sm:$0xff] %v3747_v54  ;;  %v1308_v4 = vcombine.high %v3712_v58, %v3712_v58  ;;  %v3812_v32 = vld [vmem:[#allocation2 + $0x2] sm:$0x3f] }
 0x24f   : > { %v3814_v0 = vld [vmem:[#allocation2 + $0x2] sm:$0x3f]  ;;  %v3837_v8 = vrot.slane %v1347_v22, %v3551_v39  ;;  %v1685_v50 = vcombine.high %v3800_v57, %v3800_v57  ;;  %v1724_v22 = vcombine.high %v3812_v32, %v3812_v32 }
 0x250   : > { %5195 = vst [vmem:[#allocation67_spill] sm:$0xff] %v3736_v18  ;;  %v3816_v28 = vld [vmem:[#allocation2 + $0x2] sm:$0x3f]  ;;  %v3822_v26 = vrot.slane %v1308_v4, %v3551_v39  ;;  %v3841_v4 = vrot.slane %v3643_v6, %v3551_v39  ;;  %v1763_v6 = vcombine.high %v3814_v0, %v3814_v0 }
 0x251   : > { %860 = vrot.lane.b32.xlu0 %v3662_v7, %s5066_s29  ;;  %v3830_v56 = vld [vmem:[#allocation2] sm:$0x3f]  ;;  %5207 = vst [vmem:[#allocation79_spill] sm:$0xff] %v3837_v8  ;;  %v1802_v8 = vcombine.high %v3816_v28, %v3816_v28 }
 0x252   : > { %495 = vrot.lane.b32.xlu1 %v489_v29, %s3018_s9  ;;  %v3770_v29 = vld [vmem:[#allocation2 + $0x2] sm:$0x3f]  ;;  %5206 = vst [vmem:[#allocation78_spill] sm:$0xff] %v3822_v26  ;;  %v1646_v26 = vcombine.high %v3798_v5, %v3798_v5  ;;  %v1859_v62 = vcombine.high %v3830_v56, %v3830_v56  ;;  %s5069_s9 = smov 82   ;;  %v3900_v3 = vrot.slane %v1763_v6, %v3551_v39 }
 0x253   : > { %v1486_v11 = vcombine.high %v3770_v29, %v3770_v29  ;;  %v3832_v13 = vld [vmem:[#allocation2] sm:$0x3f]  ;;  %v3903_v16 = vrot.slane %v1802_v8, %v3551_v39 }
 0x254   : > { %v3834_v37 = vld [vmem:[#allocation2 + $0x2] sm:$0x3f]  ;;  %v2150_v19 = vcombine.high %v3832_v13, %v3832_v13 }
 0x255   : > { %898 = vrot.lane.b32.xlu0 %v3766_v53, %s5067_s30  ;;  %v1976_v31 = vcombine.high %v3834_v37, %v3834_v37  ;;  %v3868_v27 = vrot.slane %v1486_v11, %v3551_v39  ;;  %v3884_v18 = vld [vmem:[#allocation2] sm:$0x3f]  ;;  %v3887_v11 = vrot.slane %v1646_v26, %v3551_v39 }
 0x256   : > { %532 = vrot.lane.b32.xlu1 %v529_v25, %s3015_s5  ;;  %v1525_v25 = vcombine.high %v3782_v23, %v3782_v23  ;;  %v3891_v63 = vld [vmem:[#allocation2 + $0x2] sm:$0x3f]  ;;  %v2189_v8 = vcombine.high %v3884_v18, %v3884_v18 }
 0x257   : > { %5210 = vst [vmem:[#allocation82_spill] sm:$0xff] %v3887_v11  ;;  %v3906_v26 = vld [vmem:[#allocation2 + $0x2] sm:$0x3f]  ;;  %v3909_v11 = vrot.slane %v1859_v62, %v3551_v39  ;;  %v3919_v6 = vrot.slane %v1976_v31, %v3551_v39  ;;  %v2306_v62 = vcombine.high %v3891_v63, %v3891_v63 }
 0x258   : > { %v3874_v54 = vrot.slane %v1525_v25, %v3551_v39  ;;  %v3894_v25 = vrot.slane %v1685_v50, %v3551_v39  ;;  %v1024_v50 = vrot.slane %v3653_v35, %v3551_v39  ;;  %v2093_v35 = vcombine.high %v3906_v26, %v3906_v26 }
 0x259   : > { %937 = vrot.lane.b32.xlu0 %v3808_v60, %s5068_s6  ;;  %5212 = vst [vmem:[#allocation84_spill] sm:$0xff] %v3919_v6  ;;  %v3935_v31 = vrot.slane %v2306_v62, %v3551_v39  ;;  %v1063_v6 = vrot.slane %v3655_v9, %v3551_v39  ;;  %v742_v9 = vcombine.high %v3628_v38, %v3628_v38 }
 0x25a   : > { %571 = vrot.lane.b32.xlu1 %v568_v61, %s3017_s7  ;;  %v3880_v61 = vrot.slane %v1607_v24, %v3551_v39  ;;  %v3897_v24 = vrot.slane %v1724_v22, %v3551_v39  ;;  %v3916_v22 = vld [vmem:[#allocation2 + $0x2] sm:$0x3f]  ;;  %v781_v62 = vcombine.high %v3636_v40, %v3636_v40  ;;  %v820_v38 = vcombine.high %v3659_v51, %v3659_v51 }
 0x25b   : > { %v859_v40 = vcombine.high %v3662_v7, %v3662_v7  ;;  %v897_v51 = vcombine.high %v3766_v53, %v3766_v53  ;;  %v936_v7 = vcombine.high %v3808_v60, %v3808_v60  ;;  %v975_v53 = vcombine.high %v3841_v4, %v3841_v4 }
 0x25c   : > { %5209 = vst [vmem:[#allocation81_spill] sm:$0xff] %v3880_v61  ;;  %v3912_v61 = vrot.slane %v2150_v19, %v3551_v39  ;;  %v3929_v19 = vrot.slane %v2189_v8, %v3551_v39  ;;  %v685_v8 = vcombine.high %v3617_v43, %v3617_v43  ;;  %v1141_v43 = vrot.slane %v3666_v36, %v3551_v39 }
 0x25d   : > { %976 = vrot.lane.b32.xlu0 %v3841_v4, %s5069_s9  ;;  %v1219_v36 = vrot.slane %v3692_v55, %v3551_v39  ;;  %v1315_v55 = vrot.slane %v3712_v58, %v3551_v39  ;;  %v1393_v58 = vrot.slane %v3742_v10, %v3551_v39  ;;  %v1032_v60 = vcombine.high %v1024_v50, %v1024_v50 }
 0x25e   : > { %610 = vrot.lane.b32.xlu1 %v607_v14, %s3019_s20  ;;  %5211 = vst [vmem:[#allocation83_spill] sm:$0xff] %v3912_v61  ;;  %v646_v14 = vcombine.high %v3601_v59, %v3601_v59  ;;  %5213 = vst [vmem:[#allocation85_spill] sm:$0xff] %v3929_v19  ;;  %v2384_v59 = vcombine.high %v3916_v22, %v3916_v22  ;;  %v3942_v61 = vrot.slane %v2093_v35, %v3551_v39 }
 0x25f   : > { %v1071_v35 = vcombine.high %v1063_v6, %v1063_v6  ;;  %v4006_v10 = vrot.slane %v3782_v23, %v3551_v39  ;;  %v4020_v23 = vrot.slane %v3786_v2, %v3551_v39  ;;  %v4034_v2 = vrot.slane %v3800_v57, %v3551_v39 }
 0x260   : > { %v3947_v19 = vrot.slane %v2384_v59, %v3551_v39  ;;  %v1227_v59 = vcombine.high %v1219_v36, %v1219_v36 }
 0x261   : > { %1033 = vrot.lane.b32.xlu0 %v1024_v50, %s5070_s14  ;;  %v1149_v50 = vcombine.high %v1141_v43, %v1141_v43 }
 0x262   : > { %649 = vrot.lane.b32.xlu1 %v646_v14, %s5061_s8  ;;  %v1102_v14 = vrot.slane %v3664_v45, %v3551_v39  ;;  %s5073_s8 = smov 1   ;;  %v1180_v45 = vrot.slane %v3675_v30, %v3551_v39  ;;  %v1258_v30 = vrot.slane %v3701_v49, %v3551_v39  ;;  %v1354_v49 = vrot.slane %v3728_v41, %v3551_v39 }
 0x263   : > { %v3999_v41 = vrot.slane %v3770_v29, %v3551_v39  ;;  %v4013_v29 = vrot.slane %v3784_v21, %v3551_v39  ;;  %v4027_v21 = vrot.slane %v3798_v5, %v3551_v39  ;;  %v4039_v5 = vpop.permute.xlu1 %2380 }
 0x264   : > { %v1110_v4 = vcombine.high %v1102_v14, %v1102_v14  ;;  %5214 = vst [vmem:[#allocation86_spill] sm:$0xff] %v4039_v5 }
 0x265   : > { %1072 = vrot.lane.b32.xlu0 %v1063_v6, %s5071_s11  ;;  %v1188_v6 = vcombine.high %v1180_v45, %v1180_v45 }
 0x266   : > { %688 = vrot.lane.b32.xlu1 %v685_v8, %s5062_s26  ;;  %s5074_s26 = smov 113   ;;  %v1266_v8 = vcombine.high %v1258_v30, %v1258_v30 }
 0x269   : > { %1111 = vrot.lane.b32.xlu0 %v1102_v14, %s5072_s10  ;;  %v4043_v14 = vrot.slane %v3812_v32, %v3551_v39 }
 0x26a   : > { %745 = vrot.lane.b32.xlu1 %v742_v9, %s5063_s12  ;;  %s3037_s12 = smov 97   ;;  %v1323_v9 = vcombine.high %v1315_v55, %v1315_v55 }
 0x26d   : > { %1150 = vrot.lane.b32.xlu0 %v1141_v43, %s5073_s8  ;;  %v4052_v43 = vrot.slane %v3814_v0, %v3551_v39 }
 0x26e   : > { %784 = vrot.lane.b32.xlu1 %v781_v62, %s5064_s23  ;;  %s5075_s23 = smov 81   ;;  %v1362_v62 = vcombine.high %v1354_v49, %v1354_v49 }
 0x271   : > { %1189 = vrot.lane.b32.xlu0 %v1180_v45, %s5074_s26 }
 0x272   : > { %823 = vrot.lane.b32.xlu1 %v820_v38, %s5065_s25  ;;  %s5076_s25 = smov 48   ;;  %v4063_v38 = vrot.slane %v3816_v28, %v3551_v39  ;;  %v1462_v28 = vcombine.high %v3589_v20, %v3589_v20 }
 0x275   : > { %1228 = vrot.lane.b32.xlu0 %v1219_v36, %s3037_s12  ;;  %v1401_v36 = vcombine.high %v1393_v58, %v1393_v58 }
 0x276   : > { %862 = vrot.lane.b32.xlu1 %v859_v40, %s5066_s29  ;;  %s5077_s29 = smov 32  }
 0x279   : > { %1267 = vrot.lane.b32.xlu0 %v1258_v30, %s5075_s23  ;;  %v1866_v30 = vrot.slane %v3830_v56, %v3551_v39  ;;  %v1501_v56 = vcombine.high %v3999_v41, %v3999_v41 }
 0x27a   : > { %900 = vrot.lane.b32.xlu1 %v897_v51, %s5067_s30  ;;  %s5078_s30 = smov 16  }
 0x27d   : > { %1324 = vrot.lane.b32.xlu0 %v1315_v55, %s5076_s25  ;;  %v4078_v55 = vld [vmem:[#allocation2] sm:$0x3f] }
 0x27e   : > { %939 = vrot.lane.b32.xlu1 %v936_v7, %s5068_s6  ;;  %s5081_s6 = smov 96  }
 0x281   : > { %1363 = vrot.lane.b32.xlu0 %v1354_v49, %s5077_s29  ;;  %v4086_v49 = vrot.slane %v4078_v55, %v3551_v39 }
 0x282   : > { %978 = vrot.lane.b32.xlu1 %v975_v53, %s5069_s9  ;;  %s3043_s9 = smov 80  }
 0x285   : > { %1402 = vrot.lane.b32.xlu0 %v1393_v58, %s5078_s30  ;;  %v2157_v58 = vrot.slane %v3832_v13, %v3551_v39 }
 0x286   : > { %1035 = vrot.lane.b32.xlu1 %v1032_v60, %s5070_s14  ;;  %s3044_s14 = smov 47   ;;  %v1540_v60 = vcombine.high %v4006_v10, %v4006_v10 }
 0x289   : > { %1502 = vrot.lane.b32.xlu0 %v3999_v41, %s5081_s6 }
 0x28a   : > { %1074 = vrot.lane.b32.xlu1 %v1071_v35, %s5071_s11  ;;  %s3045_s11 = smov 31  }
 0x28d   : > { %1541 = vrot.lane.b32.xlu0 %v4006_v10, %s3043_s9  ;;  %v1622_v10 = vcombine.high %v4020_v23, %v4020_v23 }
 0x28e   : > { %1113 = vrot.lane.b32.xlu1 %v1110_v4, %s5072_s10  ;;  %s3046_s10 = smov 15   ;;  %v1983_v4 = vrot.slane %v3834_v37, %v3551_v39 }
 0x291   : > { %1584 = vrot.lane.b32.xlu0 %v4013_v29, %s3044_s14 }
 0x292   : > { %1152 = vrot.lane.b32.xlu1 %v1149_v50, %s5073_s8  ;;  %s3047_s8 = smov 127   ;;  %v1583_v50 = vcombine.high %v4013_v29, %v4013_v29  ;;  %v1661_v29 = vcombine.high %v4027_v21, %v4027_v21 }
 0x295   : > { %1623 = vrot.lane.b32.xlu0 %v4020_v23, %s3045_s11 }
 0x296   : > { %1191 = vrot.lane.b32.xlu1 %v1188_v6, %s5074_s26  ;;  %s3048_s26 = smov 111  }
 0x299   : > { %1662 = vrot.lane.b32.xlu0 %v4027_v21, %s3046_s10 }
 0x29a   : > { %1230 = vrot.lane.b32.xlu1 %v1227_v59, %s3037_s12 }
 0x29d   : > { %1701 = vrot.lane.b32.xlu0 %v4034_v2, %s3047_s8 }
 0x29e   : > { %1269 = vrot.lane.b32.xlu1 %v1266_v8, %s5075_s23  ;;  %s5082_s23 = smov 95  }
 0x2a1   : > { %1740 = vrot.lane.b32.xlu0 %v4043_v14, %s3048_s26 }
 0x2a2   : > { %1326 = vrot.lane.b32.xlu1 %v1323_v9, %s5076_s25  ;;  %s3050_s25 = smov 79   ;;  %v1700_v9 = vcombine.high %v4034_v2, %v4034_v2 }
 0x2a3   : > { %v4048_v57 = vpop.permute.xlu0 %530 }
 0x2a4   : > { %v4054_v45 = vpop.permute.xlu1 %452 }
 0x2a5   : > { %1779 = vrot.lane.b32.xlu0 %v4052_v43, %s5082_s23 }
 0x2a6   : > { %1365 = vrot.lane.b32.xlu1 %v1362_v62, %s5077_s29  ;;  %s3051_s29 = smov 46   ;;  %v1739_v62 = vcombine.high %v4043_v14, %v4043_v14 }
 0x2a7   : > { %v4059_v32 = vpop.permute.xlu0 %569 }
 0x2a8   : > { %v4065_v40 = vpop.permute.xlu1 %491 }
 0x2a9   : > { %1818 = vrot.lane.b32.xlu0 %v4063_v38, %s3050_s25 }
 0x2aa   : > { %1404 = vrot.lane.b32.xlu1 %v1401_v36, %s5078_s30  ;;  %s3052_s30 = smov 30   ;;  %v1778_v36 = vcombine.high %v4052_v43, %v4052_v43  ;;  %v1874_v43 = vcombine.high %v1866_v30, %v1866_v30 }
 0x2ab   : > { %v4070_v0 = vpop.permute.xlu0 %608 }
 0x2ac   : > { %v4074_v51 = vpop.permute.xlu1 %1463 }
 0x2ad   : > { %5215 = vst [vmem:[#allocation87_spill] sm:$0xff] %v4074_v51  ;;  %1875 = vrot.lane.b32.xlu0 %v1866_v30, %s3051_s29  ;;  %v2165_v30 = vcombine.high %v2157_v58, %v2157_v58  ;;  %v5262_v51 = vld [vmem:[#allocation75_spill] sm:$0xff] }
 0x2ae   : > { %1465 = vrot.lane.b32.xlu1 %v1462_v28, %s5080_s22  ;;  %s5083_s22 = smov 45   ;;  %v1817_v28 = vcombine.high %v4063_v38, %v4063_v38 }
 0x2af   : > { %v4082_v7 = vpop.permute.xlu0 %647 }
 0x2b0   : > { %v4090_v53 = vpop.permute.xlu1 %1953 }
 0x2b1   : > { %5216 = vst [vmem:[#allocation88_spill] sm:$0xff] %v4090_v53  ;;  %1914 = vrot.lane.b32.xlu0 %v4086_v49, %s3052_s30 }
 0x2b2   : > { %1504 = vrot.lane.b32.xlu1 %v1501_v56, %s5081_s6  ;;  %s5084_s6 = smov 126  }
 0x2b3   : > { %v4095_v20 = vpop.permute.xlu0 %686 }
 0x2b4   : > { %5217 = vst [vmem:[#allocation89_spill] sm:$0xff] %v4095_v20  ;;  %v4101_v35 = vpop.permute.xlu1 %2244  ;;  %v5298_v20 = vld [vmem:[#allocation65_spill] sm:$0xff] }
 0x2b5   : > { %5218 = vst [vmem:[#allocation90_spill] sm:$0xff] %v4101_v35  ;;  %2166 = vrot.lane.b32.xlu0 %v2157_v58, %s5083_s22  ;;  %v5259_v35 = vld [vmem:[#allocation74_spill] sm:$0xff] }
 0x2b6   : > { %1543 = vrot.lane.b32.xlu1 %v1540_v60, %s3043_s9  ;;  %v1898_v60 = vcombine.high %v4078_v55, %v4078_v55 }
 0x2b7   : > { %v4105_v41 = vpop.permute.xlu0 %743 }
 0x2b8   : > { %5219 = vst [vmem:[#allocation91_spill] sm:$0xff] %v4105_v41  ;;  %v4111_v6 = vpop.permute.xlu1 %454  ;;  %v1912_v58 = vrot.slane %v1898_v60, %v3551_v39 }
 0x2b9   : > { %1992 = vrot.lane.b32.xlu0 %v1983_v4, %s5084_s6 }
 0x2ba   : > { %1586 = vrot.lane.b32.xlu1 %v1583_v50, %s3044_s14 }
 0x2bb   : > { %v4115_v13 = vpop.permute.xlu0 %782 }
 0x2bc   : > { %5220 = vst [vmem:[#allocation92_spill] sm:$0xff] %v4115_v13  ;;  %v4119_v59 = vpop.permute.xlu1 %456  ;;  %v5296_v13 = vld [vmem:[#allocation12_spill] sm:$0xff] }
 0x2bd   : > { %534 = vrot.lane.b32.xlu0 %v3682_v1, %s3015_s5  ;;  %s5224_s5 = smov 99  }
 0x2be   : > { %1625 = vrot.lane.b32.xlu1 %v1622_v10, %s3045_s11 }
 0x2bf   : > { %v4124_v37 = vpop.permute.xlu0 %821 }
 0x2c0   : > { %5221 = vst [vmem:[#allocation93_spill] sm:$0xff] %v4124_v37  ;;  %v4128_v8 = vpop.permute.xlu1 %493 }
 0x2c1   : > { %573 = vrot.lane.b32.xlu0 %v3704_v47, %s3017_s7  ;;  %s5226_s7 = smov 83  }
 0x2c2   : > { %1664 = vrot.lane.b32.xlu1 %v1661_v29, %s3046_s10 }
 0x2c3   : > { %v4133_v23 = vpop.permute.xlu0 %860 }
 0x2c4   : > { %5222 = vst [vmem:[#allocation94_spill] sm:$0xff] %v4133_v23  ;;  %v4137_v1 = vpop.permute.xlu1 %495 }
 0x2c5   : > { %612 = vrot.lane.b32.xlu0 %v3715_v17, %s3019_s20  ;;  %s5228_s20 = smov 50  }
 0x2c6   : > { %1703 = vrot.lane.b32.xlu1 %v1700_v9, %s3047_s8  ;;  %v1991_v9 = vcombine.high %v1983_v4, %v1983_v4 }
 0x2c7   : > { %v4142_v21 = vpop.permute.xlu0 %898 }
 0x2c8   : > { %5223 = vst [vmem:[#allocation95_spill] sm:$0xff] %v4142_v21  ;;  %v4146_v47 = vpop.permute.xlu1 %532 }
 0x2c9   : > { %651 = vrot.lane.b32.xlu0 %v3718_v42, %s5224_s5  ;;  %s5230_s5 = smov 34  }
 0x2ca   : > { %1742 = vrot.lane.b32.xlu1 %v1739_v62, %s3048_s26  ;;  %v5247_v62 = vld [vmem:[#allocation69_spill] sm:$0xff] }
 0x2cb   : > { %v4151_v2 = vpop.permute.xlu0 %937 }
 0x2cc   : > { %5225 = vst [vmem:[#allocation96_spill] sm:$0xff] %v4151_v2  ;;  %v4158_v17 = vpop.permute.xlu1 %571 }
 0x2cd   : > { %690 = vrot.lane.b32.xlu0 %v3707_v48, %s5226_s7  ;;  %s5232_s7 = smov 18  }
 0x2ce   : > { %1781 = vrot.lane.b32.xlu1 %v1778_v36, %s5082_s23  ;;  %s5233_s23 = smov 14   ;;  %v2008_v36 = vld [vmem:[#allocation2 + $0x2] sm:$0x3f] }
 0x2cf   : > { %v4160_v14 = vpop.permute.xlu0 %976 }
 0x2d0   : > { %5227 = vst [vmem:[#allocation97_spill] sm:$0xff] %v4160_v14  ;;  %v4169_v56 = vpop.permute.xlu1 %610 }
 0x2d1   : > { %747 = vrot.lane.b32.xlu0 %v3710_v46, %s5228_s20  ;;  %s5235_s20 = smov 2  }
 0x2d2   : > { %1820 = vrot.lane.b32.xlu1 %v1817_v28, %s3050_s25 }
 0x2d3   : > { %v4167_v42 = vpop.permute.xlu0 %1033 }
 0x2d4   : > { %5229 = vst [vmem:[#allocation98_spill] sm:$0xff] %v4167_v42  ;;  %v4180_v46 = vpop.permute.xlu1 %649 }
 0x2d5   : > { %786 = vrot.lane.b32.xlu0 %v3721_v44, %s5230_s5  ;;  %s5237_s5 = smov 114  }
 0x2d6   : > { %1877 = vrot.lane.b32.xlu1 %v1874_v43, %s3051_s29  ;;  %v4213_v43 = vrot.slane %v2008_v36, %v3551_v39 }
 0x2d7   : > { %v4174_v48 = vpop.permute.xlu0 %1072 }
 0x2d8   : > { %5231 = vst [vmem:[#allocation99_spill] sm:$0xff] %v4174_v48  ;;  %v4191_v50 = vpop.permute.xlu1 %688  ;;  %v5292_v48 = vld [vmem:[#allocation9_spill] sm:$0xff] }
 0x2d9   : > { %825 = vrot.lane.b32.xlu0 %v3724_v33, %s5232_s7  ;;  %v5238_v33 = vld [vmem:[#allocation67_spill] sm:$0xff]  ;;  %s5239_s7 = smov 13  }
 0x2da   : > { %1957 = vrot.lane.b32.xlu1 %v3756_v34, %s5233_s23  ;;  %v5240_v34 = vld [vmem:[#allocation72_spill] sm:$0xff] }
 0x2db   : > { %v4182_v38 = vpop.permute.xlu0 %1111 }
 0x2dc   : > { %5234 = vst [vmem:[#allocation100_spill] sm:$0xff] %v4182_v38  ;;  %v4203_v29 = vpop.permute.xlu1 %745  ;;  %v5295_v38 = vld [vmem:[#allocation43_spill] sm:$0xff] }
 0x2dd   : > { %864 = vrot.lane.b32.xlu0 %v3733_v52, %s5235_s20  ;;  %s5242_s20 = smov 98   ;;  %v5243_v52 = vld [vmem:[#allocation68_spill] sm:$0xff]  ;;  %5244 = vst [vmem:[#allocation72_spill] sm:$0xff] %v4203_v29 }
 0x2de   : > { %2168 = vrot.lane.b32.xlu1 %v2165_v30, %s5083_s22  ;;  %s5246_s22 = smov 82   ;;  %v2015_v30 = vcombine.high %v2008_v36, %v2008_v36 }
 0x2df   : > { %v4187_v44 = vpop.permute.xlu0 %1150 }
 0x2e0   : > { %5236 = vst [vmem:[#allocation101_spill] sm:$0xff] %v4187_v44  ;;  %v4215_v60 = vpop.permute.xlu1 %784 }
 0x2e1   : > { %902 = vrot.lane.b32.xlu0 %v5238_v33, %s5237_s5  ;;  %s5249_s5 = smov 49   ;;  %v5250_v33 = vld [vmem:[#allocation70_spill] sm:$0xff] }
 0x2e2   : > { %2248 = vrot.lane.b32.xlu1 %v5240_v34, %s5239_s7  ;;  %v2029_v34 = vrot.slane %v2015_v30, %v3551_v39  ;;  %v2260_v30 = vld [vmem:[#allocation2 + $0x2] sm:$0x3f] }
 0x2e3   : > { %v4197_v10 = vpop.permute.xlu0 %1189 }
 0x2e4   : > { %5241 = vst [vmem:[#allocation67_spill] sm:$0xff] %v4197_v10 }
 0x2e5   : > { %941 = vrot.lane.b32.xlu0 %v5243_v52, %s5242_s20  ;;  %s5086_s20 = smov 110   ;;  %v5253_v52 = vld [vmem:[#allocation71_spill] sm:$0xff] }
 0x2e6   : > { %1918 = vrot.lane.b32.xlu1 %v1912_v58, %s3052_s30  ;;  %v4226_v58 = vrot.slane %v3884_v18, %v3551_v39 }
 0x2e7   : > { %v4205_v55 = vpop.permute.xlu0 %1228 }
 0x2e8   : > { %5245 = vst [vmem:[#allocation68_spill] sm:$0xff] %v4205_v55  ;;  %v2204_v36 = vcombine.high %v4226_v58, %v4226_v58 }
 0x2e9   : > { %980 = vrot.lane.b32.xlu0 %v5247_v62, %s5246_s22  ;;  %s5252_s22 = smov 33  }
 0x2ea   : > { %1994 = vrot.lane.b32.xlu1 %v1991_v9, %s5084_s6  ;;  %v4231_v9 = vpop.permute.xlu1 %823  ;;  %s5093_s6 = smov 29  }
 0x2eb   : > { %v4210_v28 = vpop.permute.xlu0 %1267 }
 0x2ec   : > { %5248 = vst [vmem:[#allocation69_spill] sm:$0xff] %v4210_v28 }
 0x2ed   : > { %1037 = vrot.lane.b32.xlu0 %v5250_v33, %s5249_s5  ;;  %s5255_s5 = smov 17   ;;  %v5256_v33 = vld [vmem:[#allocation73_spill] sm:$0xff] }
 0x2ee   : > { %2031 = vrot.lane.b32.xlu1 %v4213_v43, %s5086_s20  ;;  %v4245_v5 = vpop.permute.xlu1 %862 }
 0x2ef   : > { %v4221_v4 = vpop.permute.xlu0 %1324 }
 0x2f0   : > { %5251 = vst [vmem:[#allocation70_spill] sm:$0xff] %v4221_v4 }
 0x2f1   : > { %1076 = vrot.lane.b32.xlu0 %v5253_v52, %s5252_s22  ;;  %v4243_v52 = vrot.slane %v2260_v30, %v3551_v39  ;;  %s5258_s22 = smov 1  }
 0x2f2   : > { %2035 = vrot.lane.b32.xlu1 %v2029_v34, %s5086_s20  ;;  %v2267_v34 = vcombine.high %v2260_v30, %v2260_v30  ;;  %s5087_s20 = smov 125   ;;  %v4261_v30 = vpop.permute.xlu1 %900 }
 0x2f3   : > { %v4233_v62 = vpop.permute.xlu0 %1363 }
 0x2f4   : > { %5254 = vst [vmem:[#allocation71_spill] sm:$0xff] %v4233_v62  ;;  %v2281_v53 = vrot.slane %v2267_v34, %v3551_v39  ;;  %v2047_v34 = vld [vmem:[#allocation2 + $0x2] sm:$0x3f] }
 0x2f5   : > { %1115 = vrot.lane.b32.xlu0 %v5256_v33, %s5255_s5  ;;  %s5261_s5 = smov 113  }
 0x2f6   : > { %2207 = vrot.lane.b32.xlu1 %v2204_v36, %s5093_s6  ;;  %v4256_v36 = vrot.slane %v3891_v63, %v3551_v39  ;;  %v4275_v4 = vpop.permute.xlu1 %939  ;;  %s3062_s6 = smov 77  }
 0x2f7   : > { %v4240_v18 = vpop.permute.xlu0 %1402 }
 0x2f8   : > { %5257 = vst [vmem:[#allocation73_spill] sm:$0xff] %v4240_v18  ;;  %v2321_v62 = vcombine.high %v4256_v36, %v4256_v36 }
 0x2f9   : > { %1154 = vrot.lane.b32.xlu0 %v5259_v35, %s5258_s22  ;;  %s5088_s22 = smov 109  }
 0x2fa   : > { %2283 = vrot.lane.b32.xlu1 %v4243_v52, %s5087_s20 }
 0x2fb   : > { %v4251_v33 = vpop.permute.xlu0 %1502 }
 0x2fc   : > { %5260 = vst [vmem:[#allocation74_spill] sm:$0xff] %v4251_v33  ;;  %v5264_v33 = vld [vmem:[#allocation76_spill] sm:$0xff] }
 0x2fd   : > { %1193 = vrot.lane.b32.xlu0 %v5262_v51, %s5261_s5  ;;  %v4273_v51 = vrot.slane %v2047_v34, %v3551_v39  ;;  %s5266_s5 = smov 81  }
 0x2fe   : > { %2287 = vrot.lane.b32.xlu1 %v2281_v53, %s5087_s20  ;;  %v2054_v53 = vcombine.high %v2047_v34, %v2047_v34  ;;  %s5090_s20 = smov 94   ;;  %v4291_v34 = vpop.permute.xlu1 %978 }
 0x2ff   : > { %v4263_v35 = vpop.permute.xlu0 %1541 }
 0x300   : > { %5263 = vst [vmem:[#allocation75_spill] sm:$0xff] %v4263_v35  ;;  %v5267_v35 = vld [vmem:[#allocation77_spill] sm:$0xff]  ;;  %v2068_v18 = vrot.slane %v2054_v53, %v3551_v39  ;;  %v2338_v53 = vld [vmem:[#allocation2 + $0x2] sm:$0x3f] }
 0x301   : > { %1232 = vrot.lane.b32.xlu0 %v5264_v33, %s3037_s12  ;;  %s5269_s12 = smov 48  }
 0x302   : > { %2324 = vrot.lane.b32.xlu1 %v2321_v62, %s5088_s22  ;;  %v4286_v62 = vrot.slane %v3906_v26, %v3551_v39  ;;  %s5091_s22 = smov 78   ;;  %v4305_v55 = vpop.permute.xlu1 %1035 }
 0x303   : > { %v4270_v63 = vpop.permute.xlu0 %1584 }
 0x304   : > { %5265 = vst [vmem:[#allocation76_spill] sm:$0xff] %v4270_v63  ;;  %v5270_v63 = vld [vmem:[#allocation78_spill] sm:$0xff]  ;;  %v2108_v28 = vcombine.high %v4286_v62, %v4286_v62 }
 0x305   : > { %1271 = vrot.lane.b32.xlu0 %v5267_v35, %s5266_s5  ;;  %s5272_s5 = smov 32  }
 0x306   : > { %2070 = vrot.lane.b32.xlu1 %v4273_v51, %s5090_s20 }
 0x307   : > { %v4281_v33 = vpop.permute.xlu0 %1623 }
 0x308   : > { %5268 = vst [vmem:[#allocation77_spill] sm:$0xff] %v4281_v33  ;;  %v5273_v33 = vld [vmem:[#allocation79_spill] sm:$0xff] }
 0x309   : > { %1328 = vrot.lane.b32.xlu0 %v5270_v63, %s5269_s12  ;;  %v4303_v63 = vrot.slane %v2338_v53, %v3551_v39  ;;  %s5275_s12 = smov 16  }
 0x30a   : > { %2074 = vrot.lane.b32.xlu1 %v2068_v18, %s5090_s20  ;;  %v2345_v18 = vcombine.high %v2338_v53, %v2338_v53  ;;  %s3061_s20 = smov 93   ;;  %v4321_v53 = vpop.permute.xlu1 %1074 }
 0x30b   : > { %v4293_v35 = vpop.permute.xlu0 %1662  ;;  %5279 = vst [vmem:[#allocation102_spill] sm:$0xff] %v4321_v53 }
 0x30c   : > { %5271 = vst [vmem:[#allocation78_spill] sm:$0xff] %v4293_v35  ;;  %v5276_v35 = vld [vmem:[#allocation80_spill] sm:$0xff]  ;;  %v2359_v44 = vrot.slane %v2345_v18, %v3551_v39 }
 0x30d   : > { %1367 = vrot.lane.b32.xlu0 %v5273_v33, %s5272_s5  ;;  %s5278_s5 = smov 112  }
 0x30e   : > { %2111 = vrot.lane.b32.xlu1 %v2108_v28, %s5091_s22  ;;  %v4316_v28 = vrot.slane %v3916_v22, %v3551_v39  ;;  %s5281_s22 = smov 96   ;;  %v4332_v22 = vpop.permute.xlu1 %1113 }
 0x30f   : > { %v4300_v26 = vpop.permute.xlu0 %1701 }
 0x310   : > { %5274 = vst [vmem:[#allocation79_spill] sm:$0xff] %v4300_v26  ;;  %v2399_v26 = vcombine.high %v4316_v28, %v4316_v28 }
 0x311   : > { %1406 = vrot.lane.b32.xlu0 %v5276_v35, %s5275_s12 }
 0x312   : > { %2361 = vrot.lane.b32.xlu1 %v4303_v63, %s3061_s20 }
 0x313   : > { %v4311_v33 = vpop.permute.xlu0 %1740 }
 0x314   : > { %5277 = vst [vmem:[#allocation80_spill] sm:$0xff] %v4311_v33 }
 0x315   : > { %1467 = vrot.lane.b32.xlu0 %v3871_v12, %s5278_s5 }
 0x316   : > { %2365 = vrot.lane.b32.xlu1 %v2359_v44, %s3061_s20  ;;  %v4340_v44 = vpop.permute.xlu1 %1152 }
 0x317   : > { %v4323_v35 = vpop.permute.xlu0 %1779 }
 0x318   : > { %5280 = vst [vmem:[#allocation103_spill] sm:$0xff] %v4323_v35 }
 0x319   : > { %1506 = vrot.lane.b32.xlu0 %v3868_v27, %s5281_s22  ;;  %v5285_v27 = vld [vmem:[#allocation81_spill] sm:$0xff] }
 0x31a   : > { %2402 = vrot.lane.b32.xlu1 %v2399_v26, %s3062_s6  ;;  %v4348_v35 = vpop.permute.xlu1 %1191 }
 0x31b   : > { %v4330_v39 = vpop.permute.xlu0 %1818 }
 0x31c   : > { %5282 = vst [vmem:[#allocation104_spill] sm:$0xff] %v4330_v39  ;;  %v5287_v39 = vld [vmem:[#allocation82_spill] sm:$0xff] }
 0x31d   : > { %1545 = vrot.lane.b32.xlu0 %v3874_v54, %s3043_s9  ;;  %s5481_s9 = sshll.u32 %s3194_s13, 6 }
 0x31f   : > { %v4336_v12 = vpop.permute.xlu0 %1875 }
 0x320   : > { %5283 = vst [vmem:[#allocation105_spill] sm:$0xff] %v4336_v12 }
 0x321   : > { %1588 = vrot.lane.b32.xlu0 %v3877_v15, %s3044_s14  ;;  %v4356_v15 = vpop.permute.xlu1 %1230  ;;  %s5290_s14 = smov 95  }
 0x323   : > { %v4342_v18 = vpop.permute.xlu0 %1914 }
 0x324   : > { %5284 = vst [vmem:[#allocation106_spill] sm:$0xff] %v4342_v18 }
 0x325   : > { %1627 = vrot.lane.b32.xlu0 %v5285_v27, %s3045_s11  ;;  %v4360_v27 = vpop.permute.xlu1 %1269  ;;  %s5317_s11 = smov 29  }
 0x326   : > { %5289 = vst [vmem:[#allocation107_spill] sm:$0xff] %v4360_v27 }
 0x327   : > { %v4346_v26 = vpop.permute.xlu0 %2166 }
 0x328   : > { %5286 = vst [vmem:[#allocation81_spill] sm:$0xff] %v4346_v26  ;;  %v5291_v26 = vld [vmem:[#allocation11_spill] sm:$0xff] }
 0x329   : > { %1666 = vrot.lane.b32.xlu0 %v5287_v39, %s3046_s10  ;;  %s5310_s10 = smov 126  }
 0x32b   : > { %v4352_v54 = vpop.permute.xlu0 %1992 }
 0x32c   : > { %5288 = vst [vmem:[#allocation82_spill] sm:$0xff] %v4352_v54 }
 0x32d   : > { %1705 = vrot.lane.b32.xlu0 %v3894_v25, %s3047_s8  ;;  %v499_v25 = vsel %vm497_vm3, %v4128_v8, %v4137_v1  ;;  %v4380_v1 = vpop.permute.xlu1 %1326  ;;  %s5301_s8 = smov 45  }
 0x32e   : > { %v503_v10 = vmul.f32 %v499_v25, %v5292_v48  ;;  %5293 = vst [vmem:[#allocation11_spill] sm:$0xff] %v4380_v1 }
 0x32f   : > { %v535_v12 = vpop.permute.xlu0 %534 }
 0x331   : > { %1744 = vrot.lane.b32.xlu0 %v3897_v24, %s3048_s26  ;;  %v538_v24 = vsel %vm536_vm4, %v4146_v47, %v535_v12  ;;  %v5294_v12 = vld [vmem:[#allocation10_spill] sm:$0xff]  ;;  %v4394_v37 = vpop.permute.xlu1 %1365  ;;  %s5314_s26 = smov 110  }
 0x332   : > { %v542_v42 = vmul.f32 %v538_v24, %v5294_v12  ;;  %v1952_v24 = vcombine.high %v5298_v20, %v5298_v20  ;;  %5299 = vst [vmem:[#allocation9_spill] sm:$0xff] %v4394_v37 }
 0x333   : > { %v574_v18 = vpop.permute.xlu0 %573 }
 0x334   : > { %v577_v39 = vsel %vm575_vm2, %v4158_v17, %v574_v18 }
 0x335   : > { %1783 = vrot.lane.b32.xlu0 %v3900_v3, %s5290_s14  ;;  %v581_v33 = vmul.f32 %v577_v39, %v5291_v26  ;;  %v460_v3 = vsel %vm458_vm5, %v4111_v6, %v4119_v59  ;;  %v5297_v59 = vld [vmem:[#allocation13_spill] sm:$0xff] }
 0x337   : > { %v613_v54 = vpop.permute.xlu0 %612  ;;  %v583_v2 = vadd.f32 %v581_v33, %v503_v10  ;;  %v5300_v33 = vld [vmem:[#allocation14_spill] sm:$0xff] }
 0x338   : > { %v616_v18 = vsel %vm614_vm6, %v4169_v56, %v613_v54 }
 0x339   : > { %1822 = vrot.lane.b32.xlu0 %v3903_v16, %s3050_s25  ;;  %v464_v16 = vmul.f32 %v460_v3, %v5295_v38  ;;  %v620_v21 = vmul.f32 %v616_v18, %v5296_v13  ;;  %s5323_s25 = smov 109  }
 0x33b   : > { %v652_v14 = vpop.permute.xlu0 %651  ;;  %v544_v54 = vadd.f32 %v542_v42, %v464_v16  ;;  %v5304_v42 = vld [vmem:[#allocation66_spill] sm:$0xff]  ;;  %v1913_v16 = vcombine.high %v4086_v49, %v4086_v49 }
 0x33c   : > { %v655_v39 = vsel %vm653_vm7, %v4180_v46, %v652_v14 }
 0x33d   : > { %v659_v41 = vmul.f32 %v655_v39, %v5297_v59  ;;  %1879 = vrot.lane.b32.xlu0 %v3909_v11, %s3051_s29  ;;  %v622_v10 = vadd.f32 %v620_v21, %v544_v54  ;;  %v5311_v59 = vld [vmem:[#allocation84_spill] sm:$0xff]  ;;  %s5328_s29 = smov 94  }
 0x33f   : > { %v661_v25 = vadd.f32 %v659_v41, %v583_v2  ;;  %v691_v23 = vpop.permute.xlu0 %690  ;;  %v5302_v41 = vld [vmem:[#allocation83_spill] sm:$0xff]  ;;  %v4402_v2 = vpop.permute.xlu1 %1404 }
 0x340   : > { %v694_v14 = vsel %vm692_vm8, %v4191_v50, %v691_v23  ;;  %5303 = vst [vmem:[#allocation10_spill] sm:$0xff] %v4402_v2  ;;  %v2243_v23 = vcombine.high %v5304_v42, %v5304_v42 }
 0x341   : > { %v698_v3 = vmul.f32 %v694_v14, %v5300_v33  ;;  %1955 = vrot.lane.b32.xlu0 %v1952_v24, %s5233_s23  ;;  %v5306_v14 = vld [vmem:[#allocation15_spill] sm:$0xff]  ;;  %s5321_s23 = smov 125  }
 0x343   : > { %v700_v18 = vadd.f32 %v698_v3, %v622_v10  ;;  %v748_v39 = vpop.permute.xlu0 %747  ;;  %v4413_v24 = vpop.permute.xlu1 %1465  ;;  %v5307_v3 = vld [vmem:[#allocation17_spill] sm:$0xff] }
 0x344   : > { %v751_v21 = vsel %vm749_vm9, %v4203_v29, %v748_v39  ;;  %5305 = vst [vmem:[#allocation43_spill] sm:$0xff] %v4413_v24 }
 0x345   : > { %v4398_v11 = vadd.f32 %v700_v18, %v661_v25  ;;  %2170 = vrot.lane.b32.xlu0 %v5302_v41, %s5301_s8  ;;  %v755_v10 = vmul.f32 %v751_v21, %v5306_v14 }
 0x347   : > { %v787_v20 = vpop.permute.xlu0 %786  ;;  %v4426_v21 = vpop.permute.xlu1 %1504 }
 0x348   : > { %v790_v39 = vsel %vm5128_vm11, %v4215_v60, %v787_v20  ;;  %5312 = vst [vmem:[#allocation12_spill] sm:$0xff] %v4426_v21  ;;  %v2030_v20 = vcombine.high %v4213_v43, %v4213_v43  ;;  %vm1959_vm11 = vcmask 113664  }
 0x349   : > { %2246 = vrot.lane.b32.xlu0 %v2243_v23, %s5239_s7  ;;  %v5308_v23 = vld [vmem:[#allocation16_spill] sm:$0xff]  ;;  %s215_s7 = scalar_lea.vmem [#allocation6], %s5481_s9 }
 0x34a   : > { %v794_v33 = vmul.f32 %v790_v39, %v5308_v23 }
 0x34b   : > { %v826_v54 = vpop.permute.xlu0 %825  ;;  %v4436_v23 = vpop.permute.xlu1 %1543 }
 0x34c   : > { %v829_v25 = vsel %vm827_vm10, %v4231_v9, %v826_v54  ;;  %v5309_v54 = vld [vmem:[#allocation18_spill] sm:$0xff]  ;;  %5315 = vst [vmem:[#allocation65_spill] sm:$0xff] %v4436_v23 }
 0x34d   : > { %v833_v18 = vmul.f32 %v829_v25, %v5307_v3  ;;  %1916 = vrot.lane.b32.xlu0 %v1913_v16, %s3052_s30  ;;  %s5330_s30 = smov 78  }
 0x34f   : > { %v835_v41 = vadd.f32 %v833_v18, %v755_v10  ;;  %v865_v42 = vpop.permute.xlu0 %864  ;;  %v5313_v18 = vld [vmem:[#allocation19_spill] sm:$0xff] }
 0x350   : > { %v867_v49 = vsel %vm249_vm0, %v4245_v5, %v865_v42 }
 0x351   : > { %v871_v29 = vmul.f32 %v867_v49, %v5309_v54  ;;  %1996 = vrot.lane.b32.xlu0 %v5311_v59, %s5310_s10  ;;  %s3063_s10 = smov [#allocation6]  }
 0x353   : > { %v873_v25 = vadd.f32 %v871_v29, %v794_v33  ;;  %v903_v16 = vpop.permute.xlu0 %902  ;;  %v5316_v29 = vld [vmem:[#allocation20_spill] sm:$0xff] }
 0x354   : > { %v906_v10 = vsel %vm904_vm12, %v4261_v30, %v903_v16 }
 0x355   : > { %v910_v42 = vmul.f32 %v906_v10, %v5313_v18  ;;  %2033 = vrot.lane.b32.xlu0 %v2030_v20, %s5314_s26  ;;  %v5318_v20 = vld [vmem:[#allocation21_spill] sm:$0xff]  ;;  %s2896_s26 = sshll.u32 %s3063_s10, 4  ;;  %s2897_s26 = int_to_ptr.vmem [resolvable:$false] %s2896_s26 }
 0x357   : > { %v912_v39 = vadd.f32 %v910_v42, %v835_v41  ;;  %v942_v49 = vpop.permute.xlu0 %941  ;;  %v5319_v41 = vld [vmem:[#allocation85_spill] sm:$0xff]  ;;  %v4446_v42 = vpop.permute.xlu1 %1586 }
 0x358   : > { %v945_v59 = vsel %vm5097_vm13, %v4275_v4, %v942_v49  ;;  %vm5100_vm13 = vcmask 7168  }
 0x359   : > { %v949_v33 = vmul.f32 %v945_v59, %v5316_v29  ;;  %2205 = vrot.lane.b32.xlu0 %v4226_v58, %s5317_s11  ;;  %v2282_v59 = vcombine.high %v4243_v52, %v4243_v52  ;;  %v5324_v52 = vld [vmem:[#allocation22_spill] sm:$0xff] }
 0x35b   : > { %v951_v43 = vadd.f32 %v949_v33, %v873_v25  ;;  %v981_v16 = vpop.permute.xlu0 %980  ;;  %v4453_v25 = vpop.permute.xlu1 %1625 }
 0x35c   : > { %v984_v10 = vsel %vm5096_vm14, %v4291_v34, %v981_v16  ;;  %5322 = vst [vmem:[#allocation66_spill] sm:$0xff] %v4453_v25  ;;  %vm5101_vm14 = vcmask 269312   ;;  %v5325_v16 = vld [vmem:[#allocation24_spill] sm:$0xff] }
 0x35d   : > { %v988_v18 = vmul.f32 %v984_v10, %v5318_v20  ;;  %2209 = vrot.lane.b32.xlu0 %v5319_v41, %s5317_s11  ;;  %s2898_s11 = scalar_lea.vmem %s2897_s26, 2048 }
 0x35f   : > { %v990_v49 = vadd.f32 %v988_v18, %v912_v39  ;;  %v1038_v14 = vpop.permute.xlu0 %1037 }
 0x360   : > { %v1041_v33 = vsel %vm5098_vm15, %v4305_v55, %v1038_v14  ;;  %vm5104_vm15 = vcmask 924672  }
 0x361   : > { %v4450_v29 = vadd.f32 %v990_v49, %v951_v43  ;;  %2285 = vrot.lane.b32.xlu0 %v2282_v59, %s5321_s23  ;;  %v1045_v43 = vmul.f32 %v1041_v33, %v5324_v52  ;;  %v2069_v59 = vcombine.high %v4273_v51, %v4273_v51  ;;  %v5326_v33 = vld [vmem:[#allocation23_spill] sm:$0xff] }
 0x363   : > { %5320 = vst [vmem:[#allocation83_spill] sm:$0xff] %v4450_v29  ;;  %v1077_v58 = vpop.permute.xlu0 %1076 }
 0x364   : > { %v1080_v41 = vsel %vm5101_vm14, %v4321_v53, %v1077_v58  ;;  %vm5103_vm14 = vcmask 662528  }
 0x365   : > { %2322 = vrot.lane.b32.xlu0 %v4256_v36, %s5323_s25  ;;  %v4467_v36 = vpop.permute.xlu1 %1664  ;;  %v1084_v29 = vmul.f32 %v1080_v41, %v5326_v33 }
 0x367   : > { %v1116_v18 = vpop.permute.xlu0 %1115 }
 0x368   : > { %v1119_v39 = vsel %vm5116_vm1, %v4332_v22, %v1116_v18  ;;  %vm5123_vm1 = vcmask 1039360  }
 0x369   : > { %v1123_v10 = vmul.f32 %v1119_v39, %v5325_v16  ;;  %2326 = vrot.lane.b32.xlu0 %v3935_v31, %s5323_s25  ;;  %v5327_v39 = vld [vmem:[#allocation25_spill] sm:$0xff] }
 0x36b   : > { %v1125_v14 = vadd.f32 %v1123_v10, %v1045_v43  ;;  %v1155_v49 = vpop.permute.xlu0 %1154  ;;  %v4478_v43 = vpop.permute.xlu1 %1703  ;;  %v5329_v10 = vld [vmem:[#allocation26_spill] sm:$0xff] }
 0x36c   : > { %v1158_v18 = vsel %vm5100_vm13, %v4340_v44, %v1155_v49  ;;  %vm5102_vm13 = vcmask 793600  }
 0x36d   : > { %v1162_v52 = vmul.f32 %v1158_v18, %v5327_v39  ;;  %2072 = vrot.lane.b32.xlu0 %v2069_v59, %s5328_s29  ;;  %v5331_v59 = vld [vmem:[#allocation27_spill] sm:$0xff]  ;;  %v5337_v39 = vld [vmem:[#allocation45_spill] sm:$0xff] }
 0x36f   : > { %v1164_v31 = vadd.f32 %v1162_v52, %v1084_v29  ;;  %v1194_v58 = vpop.permute.xlu0 %1193  ;;  %v4488_v29 = vpop.permute.xlu1 %1742 }
 0x370   : > { %v1197_v53 = vsel %vm5104_vm15, %v4348_v35, %v1194_v58  ;;  %vm5110_vm15 = vcmask 261120  }
 0x371   : > { %v1201_v20 = vmul.f32 %v1197_v53, %v5329_v10  ;;  %2109 = vrot.lane.b32.xlu0 %v4286_v62, %s5330_s30  ;;  %v2360_v53 = vcombine.high %v4303_v63, %v4303_v63 }
 0x373   : > { %v1203_v51 = vadd.f32 %v1201_v20, %v1125_v14  ;;  %v1233_v41 = vpop.permute.xlu0 %1232  ;;  %v5332_v20 = vld [vmem:[#allocation28_spill] sm:$0xff] }
 0x374   : > { %v1236_v49 = vsel %vm5102_vm13, %v4356_v15, %v1233_v41  ;;  %vm5105_vm13 = vcmask 392192  }
 0x375   : > { %v1240_v18 = vmul.f32 %v1236_v49, %v5331_v59  ;;  %2113 = vrot.lane.b32.xlu0 %v3942_v61, %s5330_s30  ;;  %v4496_v59 = vpop.permute.xlu1 %1781 }
 0x377   : > { %v1242_v52 = vadd.f32 %v1240_v18, %v1164_v31  ;;  %v1272_v58 = vpop.permute.xlu0 %1271 }
 0x378   : > { %v1275_v62 = vsel %vm5103_vm14, %v4360_v27, %v1272_v58  ;;  %vm5108_vm14 = vcmask 130048   ;;  %v4508_v58 = vld.sshfl [vmem:[#allocation2 + $0x2] sm:$0x33 pattern:$0x76325410] }
 0x379   : > { %v1279_v14 = vmul.f32 %v1275_v62, %v5332_v20  ;;  %2363 = vrot.lane.b32.xlu0 %v2360_v53, %s3061_s20  ;;  %v4506_v18 = vpop.permute.xlu1 %1820  ;;  %v5334_v53 = vld [vmem:[#allocation29_spill] sm:$0xff]  ;;  %v5335_v62 = vld [vmem:[#allocation31_spill] sm:$0xff]  ;;  %s2496_s20 = sshll.u32 %s215_s7, 4  ;;  %s4946_s20 = int_to_ptr.vmem [resolvable:$true] %s2496_s20 }
 0x37a   : > { %s2892_s8 = scalar_lea.vmem %s4946_s20, 1024  ;;  %p2899_p8 = scmp.lt.s32.totalorder %s4946_s20, %s2897_s26 }
 0x37b   : > { %v1281_v41 = vadd.f32 %v1279_v14, %v1203_v51  ;;  %v1329_v49 = vpop.permute.xlu0 %1328  ;;  %p2893_p6 = scmp.ne.s32.totalorder %s4946_s20, %s2892_s8  ;;  %p2900_p10 = scmp.lt.s32.totalorder %s2898_s11, %s2892_s8 }
 0x37c   : > { %v1332_v63 = vsel %vm5105_vm13, %v4380_v1, %v1329_v49  ;;  %vm5114_vm13 = vcmask 916480  }
 0x37d   : > { %v4498_v61 = vadd.f32 %v1281_v41, %v1242_v52  ;;  %2400 = vrot.lane.b32.xlu0 %v4316_v28, %s3062_s6  ;;  %v1336_v28 = vmul.f32 %v1332_v63, %v5334_v53  ;;  %v1432_v41 = vcombine.high %v4508_v58, %v4508_v58  ;;  %v4520_v20 = vpop.permute.xlu1 %1877  ;;  %v5338_v53 = vld [vmem:[#allocation32_spill] sm:$0xff]  ;;  %p2894_p12 = pnand %p2893_p6, %p5486_p11  ;;  %p2901_p0 = por %p2900_p10, %p2899_p8 }
 0x37f   : > { %5333 = vst [vmem:[#allocation17_spill] sm:$0xff] %v4498_v61  ;;  %v1368_v31 = vpop.permute.xlu0 %1367  ;;  %p2895_p13 = pneg %p2894_p12 }
 0x381   : > { %2404 = vrot.lane.b32.xlu0 %v3947_v19, %s3062_s6  ;;  %v1371_v19 = vsel %vm5110_vm15, %v4394_v37, %v1368_v31  ;;  %vm5115_vm15 = vcmask 654336   ;;  %v4528_v27 = vpop.permute.xlu1 %1957  ;;  %s2591_s6 = sshll.u32 %s3111_s19, 10  ;;  %s2483_s19 = scalar_lea.sflag [#allocation5], %s3194_s13 }
 0x382   : > { %s4940_s14 = scalar_lea.hbm %s4995_s4, %s2591_s6  ;;  %p2902_p2 = pnand %p2901_p0, %p2895_p13 }
 0x383   : > { %v1407_v51 = vpop.permute.xlu0 %1406 }
 0x384   : > { %v1410_v52 = vsel %vm5108_vm14, %v4402_v2, %v1407_v51  ;;  %v5336_v51 = vld [vmem:[#allocation30_spill] sm:$0xff]  ;;  %vm5113_vm14 = vcmask 785408  }
 0x385   : > { %v1414_v14 = vmul.f32 %v1410_v52, %v5335_v62  ;;  %v1375_v2 = vmul.f32 %v1371_v19, %v5336_v51  ;;  %v1436_v52 = vmul.f32 %v1432_v41, %v5338_v53 }
 0x387   : > { %v1416_v49 = vadd.f32 %v1414_v14, %v1336_v28  ;;  %v1468_v61 = vpop.permute.xlu0 %1467  ;;  %v1438_v33 = vadd.f32 %v1436_v52, %v1375_v2  ;;  %v5339_v28 = vld [vmem:[#allocation33_spill] sm:$0xff]  ;;  %v5344_v52 = vld [vmem:[#allocation35_spill] sm:$0xff] }
 0x388   : > { %v1471_v1 = vsel %vm5114_vm13, %v4413_v24, %v1468_v61  ;;  %vm5127_vm13 = vcmask 121856  }
 0x389   : > { %v1475_v63 = vmul.f32 %v1471_v1, %v5337_v39  ;;  %v5340_v1 = vld [vmem:[#allocation34_spill] sm:$0xff] }
 0x38b   : > { %v1477_v62 = vadd.f32 %v1475_v63, %v1416_v49  ;;  %v1507_v31 = vpop.permute.xlu0 %1506  ;;  %v4533_v49 = vpop.permute.xlu1 %2168 }
 0x38c   : > { %v1510_v37 = vsel %vm5113_vm14, %v4426_v21, %v1507_v31  ;;  %5341 = vst [vmem:[#allocation18_spill] sm:$0xff] %v4533_v49  ;;  %vm5119_vm14 = vcmask 384000   ;;  %v5349_v49 = vlaneseq }
 0x38d   : > { %v1514_v14 = vmul.f32 %v1510_v37, %v5339_v28  ;;  %v5348_v28 = vld [vmem:[#allocation38_spill] sm:$0xff] }
 0x38f   : > { %v1516_v61 = vadd.f32 %v1514_v14, %v1438_v33  ;;  %v1546_v24 = vpop.permute.xlu0 %1545  ;;  %v4539_v2 = vpop.permute.xlu1 %2248 }
 0x390   : > { %v1549_v19 = vsel %vm5115_vm15, %v4436_v23, %v1546_v24  ;;  %5343 = vst [vmem:[#allocation85_spill] sm:$0xff] %v4539_v2  ;;  %vm5121_vm15 = vcmask 252928   ;;  %v5347_v2 = vld [vmem:[#allocation36_spill] sm:$0xff]  ;;  %v402_v23 = vand.u32 127, %v5349_v49 }
 0x391   : > { %v1553_v39 = vmul.f32 %v1549_v19, %v5340_v1  ;;  %v5352_v49 = vld [vmem:[#allocation40_spill] sm:$0xff] }
 0x392   : > { %v403_v21 = vadd.s32 128, %v402_v23 }
 0x393   : > { %v1555_v41 = vadd.f32 %v1553_v39, %v1477_v62  ;;  %v1589_v51 = vpop.permute.xlu0 %1588  ;;  %v5345_v62 = vld [vmem:[#allocation37_spill] sm:$0xff] }
 0x394   : > { %v1592_v37 = vsel %vm5119_vm14, %v4446_v42, %v1589_v51  ;;  %vm5125_vm14 = vcmask 908288  }
 0x395   : > { %v4535_v63 = vadd.f32 %v1555_v41, %v1516_v61  ;;  %v1596_v39 = vmul.f32 %v1592_v37, %v5344_v52  ;;  %v4559_v52 = vand.u32 15, %v403_v21 }
 0x397   : > { %5342 = vst [vmem:[#allocation84_spill] sm:$0xff] %v4535_v63  ;;  %v1628_v31 = vpop.permute.xlu0 %1627  ;;  %v4549_v63 = vpop.permute.xlu1 %1918 }
 0x398   : > { %v1631_v61 = vsel %vm5121_vm15, %v4453_v25, %v1628_v31  ;;  %5346 = vst [vmem:[#allocation24_spill] sm:$0xff] %v4549_v63  ;;  %vm5126_vm15 = vcmask 777216  }
 0x399   : > { %v1635_v1 = vmul.f32 %v1631_v61, %v5347_v2  ;;  %v704_v2 = vadd.s32 4294967293, %v4559_v52 }
 0x39b   : > { %v1667_v33 = vpop.permute.xlu0 %1666  ;;  %v4557_v25 = vpop.permute.xlu1 %1994 }
 0x39c   : > { %v1670_v24 = vsel %vm5127_vm13, %v4467_v36, %v1667_v33  ;;  %5351 = vst [vmem:[#allocation26_spill] sm:$0xff] %v4557_v25  ;;  %vm1881_vm13 = vcmask 375808  }
 0x39d   : > { %v1674_v14 = vmul.f32 %v1670_v24, %v5345_v62 }
 0x39f   : > { %v1676_v19 = vadd.f32 %v1674_v14, %v1596_v39  ;;  %v1706_v41 = vpop.permute.xlu0 %1705  ;;  %v5350_v39 = vld [vmem:[#allocation39_spill] sm:$0xff]  ;;  %v4568_v25 = vpop.permute.xlu1 %2031 }
 0x3a0   : > { %v1709_v51 = vsel %vm5123_vm1, %v4478_v43, %v1706_v41  ;;  %vm1824_vm1 = vcmask 646144   ;;  %5353 = vst [vmem:[#allocation32_spill] sm:$0xff] %v4568_v25 }
 0x3a1   : > { %v1713_v33 = vmul.f32 %v1709_v51, %v5348_v28 }
 0x3a3   : > { %v1715_v37 = vadd.f32 %v1713_v33, %v1635_v1  ;;  %v1745_v24 = vpop.permute.xlu0 %1744 }
 0x3a4   : > { %v1748_v31 = vsel %vm5125_vm14, %v4488_v29, %v1745_v24  ;;  %v1836_v24 = vadd.s32 1, %v4559_v52  ;;  %vm706_vm14 = vcmp.ge.s32.totalorder %v704_v2, 0 }
 0x3a5   : > { %v1752_v14 = vmul.f32 %v1748_v31, %v5350_v39 }
 0x3a7   : > { %v1754_v41 = vadd.f32 %v1752_v14, %v1676_v19  ;;  %v1784_v63 = vpop.permute.xlu0 %1783  ;;  %v5354_v19 = vld [vmem:[#allocation41_spill] sm:$0xff] }
 0x3a8   : > { %v1787_v61 = vsel %vm5126_vm15, %v4496_v59, %v1784_v63  ;;  %vm1840_vm15 = vcmp.lt.s32.totalorder %v1836_v24, 16 }
 0x3a9   : > { %v1791_v51 = vmul.f32 %v1787_v61, %v5352_v49  ;;  %v716_v61 = vsel %vm706_vm14, %v4398_v11, 0.0  ;;  %vm5400_vm14 = vcmask 662528  }
 0x3ab   : > { %v1793_v1 = vadd.f32 %v1791_v51, %v1715_v37  ;;  %v1823_v33 = vpop.permute.xlu0 %1822  ;;  %v4574_v51 = vpop.permute.xlu1 %2035 }
 0x3ac   : > { %v1826_v31 = vsel %vm1824_vm1, %v4506_v18, %v1823_v33 }
 0x3ad   : > { %v1830_v21 = vmul.f32 %v1826_v31, %v5354_v19 }
 0x3af   : > { %v1832_v14 = vadd.f32 %v1830_v21, %v1754_v41  ;;  %v1880_v28 = vpop.permute.xlu0 %1879  ;;  %v5356_v41 = vld [vmem:[#allocation42_spill] sm:$0xff]  ;;  %v4589_v11 = vpop.permute.xlu1 %2207 }
 0x3b0   : > { %v1883_v37 = vsel %vm1881_vm13, %v4520_v20, %v1880_v28  ;;  %5358 = vst [vmem:[#allocation39_spill] sm:$0xff] %v4589_v11  ;;  %v5389_v11 = vld [vmem:[#allocation102_spill] sm:$0xff] }
 0x3b1   : > { %v1834_v63 = vadd.f32 %v1832_v14, %v1793_v1  ;;  %v1887_v24 = vmul.f32 %v1883_v37, %v5356_v41  ;;  %v5357_v1 = vld [vmem:[#allocation46_spill] sm:$0xff]  ;;  %v459_v37 = vsel %vm458_vm5, %v4054_v45, %v4111_v6  ;;  %vm5382_vm5 = vcmask 400384  }
 0x3b2   : > { %v463_v6 = vmul.f32 %v459_v37, %v5295_v38  ;;  %v5366_v37 = vld [vmem:[#allocation72_spill] sm:$0xff] }
 0x3b3   : > { %v1848_v49 = vsel %vm1840_vm15, %v1834_v63, 0.0  ;;  %v4576_v33 = vpop.permute.xlu0 %1955  ;;  %v4593_v63 = vpop.permute.xlu1 %2283  ;;  %vm5403_vm15 = vcmask 384000  }
 0x3b4   : > { %v4578_v25 = vadd.f32 %v1848_v49, %v716_v61  ;;  %v1961_v2 = vsel %vm1959_vm11, %v4576_v33, %v4528_v27  ;;  %v537_v27 = vsel %vm536_vm4, %v4048_v57, %v4146_v47  ;;  %v4600_v61 = vand.u32 15, %v402_v23  ;;  %v5361_v23 = vld [vmem:[#allocation93_spill] sm:$0xff] }
 0x3b5   : > { %v1965_v31 = vmul.f32 %v1961_v2, %v5357_v1  ;;  %v4616_v57 = vmul.f32 %v4508_v58, %v5338_v53  ;;  %v828_v58 = vsel %vm827_vm10, %v5361_v23, %v4231_v9  ;;  %v5365_v9 = vld [vmem:[#allocation13_spill] sm:$0xff]  ;;  %vm5377_vm4 = vcmask 670720  }
 0x3b6   : > { %5355 = vst [vmem:[#allocation37_spill] sm:$0xff] %v4578_v25  ;;  %v576_v25 = vsel %vm575_vm2, %v4059_v32, %v4158_v17  ;;  %v4619_v47 = vadd.s32 4294967293, %v4600_v61  ;;  %v4631_v32 = vadd.s32 4294967294, %v4600_v61  ;;  %v4639_v38 = vadd.s32 4294967295, %v4600_v61 }
 0x3b7   : > { %v4585_v21 = vadd.f32 %v1965_v31, %v1887_v24  ;;  %v4587_v28 = vpop.permute.xlu0 %2170  ;;  %v498_v24 = vsel %vm497_vm3, %v4065_v40, %v4128_v8  ;;  %v541_v31 = vmul.f32 %v537_v27, %v5294_v12  ;;  %v4621_v45 = vpop.permute.xlu1 %2287  ;;  %v615_v40 = vsel %vm614_vm6, %v4070_v0, %v4169_v56  ;;  %v5363_v56 = vld [vmem:[#allocation89_spill] sm:$0xff] }
 0x3b8   : > { %5359 = vst [vmem:[#allocation41_spill] sm:$0xff] %v4619_v47  ;;  %5360 = vst [vmem:[#allocation42_spill] sm:$0xff] %v4621_v45  ;;  %v654_v8 = vsel %vm653_vm7, %v4082_v7, %v4180_v46  ;;  %v502_v17 = vmul.f32 %v498_v24, %v5292_v48  ;;  %v580_v12 = vmul.f32 %v576_v25, %v5291_v26  ;;  %v5364_v46 = vld [vmem:[#allocation94_spill] sm:$0xff]  ;;  %v4650_v26 = vadd.s32 1, %v4600_v61  ;;  %v5367_v24 = vld [vmem:[#allocation91_spill] sm:$0xff] }
 0x3b9   : > { %5362 = vst [vmem:[#allocation46_spill] sm:$0xff] %v4639_v38  ;;  %v543_v0 = vadd.f32 %v541_v31, %v463_v6  ;;  %v693_v7 = vsel %vm692_vm8, %v5363_v56, %v4191_v50  ;;  %v866_v48 = vsel %vm249_vm0, %v5364_v46, %v4245_v5  ;;  %v619_v25 = vmul.f32 %v615_v40, %v5296_v13  ;;  %v5368_v31 = vld [vmem:[#allocation95_spill] sm:$0xff]  ;;  %v5369_v50 = vld [vmem:[#allocation92_spill] sm:$0xff]  ;;  %v5381_v38 = vld [vmem:[#allocation98_spill] sm:$0xff] }
 0x3ba   : > { %v658_v27 = vmul.f32 %v654_v8, %v5365_v9  ;;  %v750_v23 = vsel %vm749_vm9, %v5367_v24, %v5366_v37  ;;  %v905_v6 = vsel %vm904_vm12, %v5368_v31, %v4261_v30  ;;  %vm5370_vm2 = vcmask 277504   ;;  %v5371_v46 = vld [vmem:[#allocation96_spill] sm:$0xff]  ;;  %v5375_v37 = vld [vmem:[#allocation14_spill] sm:$0xff]  ;;  %v5376_v30 = vld [vmem:[#allocation97_spill] sm:$0xff] }
 0x3bb   : > { %v4591_v14 = vpop.permute.xlu0 %2246  ;;  %v789_v56 = vsel %vm5370_vm2, %v5369_v50, %v4215_v60  ;;  %v832_v5 = vmul.f32 %v828_v58, %v5307_v3  ;;  %vm5372_vm0 = vcmask 801792   ;;  %v5373_v40 = vld [vmem:[#allocation100_spill] sm:$0xff]  ;;  %vm5374_vm3 = vcmask 138240   ;;  %v4675_v60 = vpop.permute.xlu1 %2324  ;;  %v5379_v58 = vld [vmem:[#allocation15_spill] sm:$0xff] }
 0x3bc   : > { %v944_v13 = vsel %vm5372_vm0, %v5371_v46, %v4275_v4  ;;  %v1118_v8 = vsel %vm5374_vm3, %v5373_v40, %v4332_v22  ;;  %v582_v9 = vadd.f32 %v580_v12, %v502_v17  ;;  %v697_v24 = vmul.f32 %v693_v7, %v5375_v37  ;;  %v5380_v4 = vld [vmem:[#allocation19_spill] sm:$0xff]  ;;  %v5385_v7 = vld [vmem:[#allocation16_spill] sm:$0xff] }
 0x3bd   : > { %v870_v45 = vmul.f32 %v866_v48, %v5309_v54  ;;  %v983_v31 = vsel %vm5377_vm4, %v5376_v30, %v4291_v34  ;;  %v754_v50 = vmul.f32 %v750_v23, %v5379_v58  ;;  %v909_v46 = vmul.f32 %v905_v6, %v5380_v4  ;;  %v5383_v17 = vld [vmem:[#allocation67_spill] sm:$0xff]  ;;  %v5386_v34 = vld [vmem:[#allocation20_spill] sm:$0xff]  ;;  %v5387_v23 = vld [vmem:[#allocation21_spill] sm:$0xff] }
 0x3be   : > { %v1040_v22 = vsel %vm5382_vm5, %v5381_v38, %v4305_v55  ;;  %vm5384_vm6 = vcmask 924672   ;;  %v621_v12 = vadd.f32 %v619_v25, %v543_v0  ;;  %v793_v48 = vmul.f32 %v789_v56, %v5385_v7  ;;  %v5388_v55 = vld [vmem:[#allocation22_spill] sm:$0xff]  ;;  %v5390_v47 = vld [vmem:[#allocation99_spill] sm:$0xff] }
 0x3bf   : > { %v4595_v49 = vpop.permute.xlu0 %1916  ;;  %v1196_v54 = vsel %vm5384_vm6, %v5383_v17, %v4348_v35  ;;  %v948_v40 = vmul.f32 %v944_v13, %v5386_v34  ;;  %v1122_v37 = vmul.f32 %v1118_v8, %v5325_v16  ;;  %v660_v30 = vadd.f32 %v658_v27, %v582_v9  ;;  %v5392_v27 = vld [vmem:[#allocation101_spill] sm:$0xff]  ;;  %v5394_v13 = vld [vmem:[#allocation78_spill] sm:$0xff]  ;;  %v5404_v17 = vld [vmem:[#allocation80_spill] sm:$0xff] }
 0x3c0   : > { %v987_v58 = vmul.f32 %v983_v31, %v5387_v23  ;;  %v4692_v6 = vadd.s32 4294967294, %v4559_v52  ;;  %v872_v4 = vadd.f32 %v870_v45, %v793_v48  ;;  %v1044_v38 = vmul.f32 %v1040_v22, %v5388_v55  ;;  %v5399_v31 = vld [vmem:[#allocation69_spill] sm:$0xff]  ;;  %v5402_v22 = vld [vmem:[#allocation76_spill] sm:$0xff]  ;;  %v5407_v48 = vld [vmem:[#allocation10_spill] sm:$0xff] }
 0x3c1   : > { %vm5391_vm7 = vcmask 269312   ;;  %v1200_v0 = vmul.f32 %v1196_v54, %v5329_v10  ;;  %v699_v56 = vadd.f32 %v697_v24, %v621_v12  ;;  %vm5393_vm8 = vcmask 7168   ;;  %v5406_v12 = vld [vmem:[#allocation25_spill] sm:$0xff]  ;;  %v5411_v55 = vld [vmem:[#allocation28_spill] sm:$0xff] }
 0x3c2   : > { %v1079_v35 = vsel %vm5391_vm7, %v5390_v47, %v5389_v11  ;;  %vm5395_vm9 = vcmask 121856   ;;  %v950_v8 = vadd.f32 %v948_v40, %v872_v4  ;;  %vm995_vm10 = vcmp.ge.s32.totalorder %v4631_v32, 0  ;;  %v5396_v11 = vld [vmem:[#allocation68_spill] sm:$0xff]  ;;  %v5398_v47 = vld [vmem:[#allocation107_spill] sm:$0xff]  ;;  %v5408_v34 = vld [vmem:[#allocation73_spill] sm:$0xff] }
 0x3c3   : > { %v4605_v2 = vpop.permute.xlu0 %1996  ;;  %v1669_v45 = vsel %vm5395_vm9, %v5394_v13, %v4467_v36  ;;  %v1124_v9 = vadd.f32 %v1122_v37, %v1044_v38  ;;  %vm5397_vm12 = vcmask 793600   ;;  %v1274_v24 = vsel %vm5400_vm14, %v5399_v31, %v5398_v47  ;;  %v5412_v38 = vld [vmem:[#allocation79_spill] sm:$0xff]  ;;  %v5418_v13 = vld [vmem:[#allocation9_spill] sm:$0xff] }
 0x3c4   : > { %v1235_v10 = vsel %vm5397_vm12, %v5396_v11, %v4356_v15  ;;  %v1591_v36 = vsel %vm5403_vm15, %v5402_v22, %v4446_v42  ;;  %vm5405_vm2 = vcmask 908288   ;;  %vm2172_vm0 = vcmask 367616   ;;  %v5422_v47 = vld [vmem:[#allocation31_spill] sm:$0xff]  ;;  %v5426_v22 = vld [vmem:[#allocation66_spill] sm:$0xff] }
 0x3c5   : > { %v1747_v54 = vsel %vm5405_vm2, %v5404_v17, %v4488_v29  ;;  %v1202_v7 = vadd.f32 %v1200_v0, %v1124_v9  ;;  %vm5409_vm3 = vcmask 130048   ;;  %v1673_v37 = vmul.f32 %v1669_v45, %v5345_v62  ;;  %v5419_v62 = vld [vmem:[#allocation71_spill] sm:$0xff] }
 0x3c6   : > { %v1409_v40 = vsel %vm5409_vm3, %v5408_v34, %v5407_v48  ;;  %v1278_v42 = vmul.f32 %v1274_v24, %v5411_v55  ;;  %vm5413_vm4 = vcmask 1039360   ;;  %vm5417_vm5 = vcmask 392192   ;;  %v5421_v9 = vld [vmem:[#allocation35_spill] sm:$0xff]  ;;  %v5431_v55 = vld [vmem:[#allocation38_spill] sm:$0xff] }
 0x3c7   : > { %v4641_v53 = vpop.permute.xlu0 %2033  ;;  %v1708_v29 = vsel %vm5413_vm4, %v5412_v38, %v4478_v43  ;;  %vm5420_vm6 = vcmask 261120   ;;  %v1595_v11 = vmul.f32 %v1591_v36, %v5421_v9  ;;  %v1413_v31 = vmul.f32 %v1409_v40, %v5422_v47  ;;  %v5423_v24 = vld [vmem:[#allocation43_spill] sm:$0xff]  ;;  %v5434_v9 = vld [vmem:[#allocation45_spill] sm:$0xff] }
 0x3c8   : > { %v1370_v45 = vsel %vm5420_vm6, %v5419_v62, %v5418_v13  ;;  %v5424_v43 = vld [vmem:[#allocation87_spill] sm:$0xff]  ;;  %vm5425_vm7 = vcmask 916480   ;;  %v1712_v36 = vmul.f32 %v1708_v29, %v5431_v55  ;;  %v5433_v13 = vld [vmem:[#allocation30_spill] sm:$0xff]  ;;  %vm996_vm9 = vcmp.ge.s32.totalorder %v4692_v6, 0 }
 0x3c9   : > { %v1374_v62 = vmul.f32 %v1370_v45, %v5433_v13  ;;  %vm1998_vm12 = vcmask 1031168   ;;  %vm5439_vm14 = vcmask 785408   ;;  %vm5442_vm15 = vcmask 654336   ;;  %v5450_v13 = vld [vmem:[#allocation47_spill] sm:$0xff] }
 0x3ca   : > { %vm2037_vm2 = vcmask 900096   ;;  %vm2211_vm3 = vcmask 236544   ;;  %vm2289_vm4 = vcmask 1022976   ;;  %vm2115_vm6 = vcmask 637952  }
 0x3cb   : > { %v4677_v3 = vpop.permute.xlu0 %2205  ;;  %v4840_v6 = vadd.s32 2, %v4600_v61 }
 0x3cc   : > { %5378 = vst [vmem:[#allocation93_spill] sm:$0xff] %v4677_v3  ;;  %v834_v3 = vadd.f32 %v832_v5, %v754_v50  ;;  %v1157_v5 = vsel %vm5393_vm8, %v5392_v27, %v4340_v44  ;;  %v5401_v44 = vld [vmem:[#allocation23_spill] sm:$0xff]  ;;  %v5416_v27 = vld [vmem:[#allocation70_spill] sm:$0xff]  ;;  %vm5430_vm8 = vcmask 777216  }
 0x3cd   : > { %v1161_v15 = vmul.f32 %v1157_v5, %v5406_v12  ;;  %v5429_v12 = vld [vmem:[#allocation103_spill] sm:$0xff] }
 0x3ce   : > { %v911_v16 = vadd.f32 %v909_v46, %v834_v3  ;;  %v4714_v3 = vpop.permute.xlu1 %2070  ;;  %v1083_v46 = vmul.f32 %v1079_v35, %v5401_v44  ;;  %v5414_v35 = vld [vmem:[#allocation104_spill] sm:$0xff]  ;;  %v1470_v44 = vsel %vm5425_vm7, %v5424_v43, %v5423_v24  ;;  %v1786_v48 = vsel %vm5430_vm8, %v5429_v12, %v4496_v59  ;;  %v5444_v12 = vld [vmem:[#allocation18_spill] sm:$0xff] }
 0x3cf   : > { %v4699_v25 = vpop.permute.xlu0 %2209  ;;  %v1825_v0 = vsel %vm1824_vm1, %v5414_v35, %v4506_v18  ;;  %v5427_v18 = vld [vmem:[#allocation77_spill] sm:$0xff]  ;;  %vm5428_vm1 = vcmask 252928   ;;  %v1280_v35 = vadd.f32 %v1278_v42, %v1202_v7  ;;  %v1474_v47 = vmul.f32 %v1470_v44, %v5434_v9  ;;  %v5435_v59 = vld [vmem:[#allocation36_spill] sm:$0xff] }
 0x3d0   : > { %v989_v50 = vadd.f32 %v987_v58, %v911_v16  ;;  %v5410_v58 = vld [vmem:[#allocation27_spill] sm:$0xff]  ;;  %v1630_v17 = vsel %vm5428_vm1, %v5427_v18, %v5426_v22  ;;  %v1163_v38 = vadd.f32 %v1161_v15, %v1083_v46  ;;  %v5437_v46 = vld [vmem:[#allocation12_spill] sm:$0xff]  ;;  %v5438_v15 = vld [vmem:[#allocation74_spill] sm:$0xff]  ;;  %v4789_v22 = vadd.f32 %v4616_v57, %v1374_v62 }
 0x3d1   : > { %v1239_v4 = vmul.f32 %v1235_v10, %v5410_v58  ;;  %v5415_v16 = vld [vmem:[#allocation11_spill] sm:$0xff]  ;;  %v1751_v10 = vmul.f32 %v1747_v54, %v5350_v39  ;;  %v1675_v58 = vadd.f32 %v1673_v37, %v1595_v11  ;;  %v1829_v39 = vmul.f32 %v1825_v0, %v5354_v19  ;;  %v5436_v37 = vld [vmem:[#allocation40_spill] sm:$0xff]  ;;  %v5440_v42 = vld [vmem:[#allocation65_spill] sm:$0xff] }
 0x3d2   : > { %v1331_v5 = vsel %vm5417_vm5, %v5416_v27, %v5415_v16  ;;  %v991_v34 = vadd.f32 %v989_v50, %v950_v8  ;;  %v2075_v54 = vpop.permute.xlu1 %2074  ;;  %v5432_v16 = vld [vmem:[#allocation29_spill] sm:$0xff]  ;;  %v1634_v8 = vmul.f32 %v1630_v17, %v5435_v59  ;;  %v1790_v29 = vmul.f32 %v1786_v48, %v5436_v37  ;;  %v5451_v9 = vld [vmem:[#allocation88_spill] sm:$0xff] }
 0x3d3   : > { %v4728_v23 = vpop.permute.xlu0 %2285  ;;  %v1335_v27 = vmul.f32 %v1331_v5, %v5432_v16  ;;  %v1753_v50 = vadd.f32 %v1751_v10, %v1675_v58  ;;  %v4766_v11 = vadd.f32 %v699_v56, %v660_v30  ;;  %v1241_v19 = vadd.f32 %v1239_v4, %v1163_v38  ;;  %v5441_v5 = vld [vmem:[#allocation75_spill] sm:$0xff]  ;;  %v5443_v56 = vld [vmem:[#allocation105_spill] sm:$0xff]  ;;  %v5448_v38 = vld [vmem:[#allocation26_spill] sm:$0xff] }
 0x3d4   : > { %v1509_v7 = vsel %vm5439_vm14, %v5438_v15, %v5437_v46  ;;  %v1548_v45 = vsel %vm5442_vm15, %v5441_v5, %v5440_v42  ;;  %v1714_v24 = vadd.f32 %v1712_v36, %v1634_v8  ;;  %v4778_v10 = vsel %vm995_vm10, %v991_v34, 0.0  ;;  %v5445_v48 = vld [vmem:[#allocation81_spill] sm:$0xff]  ;;  %v5447_v36 = vld [vmem:[#allocation34_spill] sm:$0xff]  ;;  %v5453_v37 = vld [vmem:[#allocation32_spill] sm:$0xff] }
 0x3d5   : > { %v1415_v0 = vadd.f32 %v1413_v31, %v1335_v27  ;;  %v1831_v43 = vadd.f32 %v1829_v39, %v1753_v50  ;;  %v4780_v30 = vadd.f32 %v1280_v35, %v1241_v19  ;;  %v1882_v4 = vsel %vm1881_vm13, %v5443_v56, %v4520_v20  ;;  %v5446_v58 = vld [vmem:[#allocation33_spill] sm:$0xff]  ;;  %v5449_v35 = vld [vmem:[#allocation82_spill] sm:$0xff]  ;;  %v5456_v42 = vld [vmem:[#allocation24_spill] sm:$0xff] }
 0x3d6   : > { %v4786_v31 = vadd.s32 4294967295, %v4559_v52  ;;  %v1792_v17 = vadd.f32 %v1790_v29, %v1714_v24  ;;  %v2173_v32 = vsel %vm2172_vm0, %v5445_v48, %v5444_v12  ;;  %v2112_v34 = vpop.permute.xlu1 %2111  ;;  %v4797_v55 = vmul.f32 %v1509_v7, %v5446_v58  ;;  %v5452_v8 = vld [vmem:[#allocation50_spill] sm:$0xff] }
 0x3d7   : > { %v4758_v40 = vpop.permute.xlu0 %2322  ;;  %v4791_v18 = vadd.f32 %v1474_v47, %v1415_v0  ;;  %v4800_v39 = vmul.f32 %v1548_v45, %v5447_v36  ;;  %vm2250_vm13 = vcmask 105472   ;;  %vm1920_vm10 = vcmask 244736   ;;  %v5455_v15 = vld [vmem:[#allocation106_spill] sm:$0xff]  ;;  %v5460_v36 = vld [vmem:[#allocation55_spill] sm:$0xff] }
 0x3d8   : > { %v4802_v20 = vadd.f32 %v1831_v43, %v1792_v17  ;;  %v1886_v57 = vmul.f32 %v1882_v4, %v5356_v41  ;;  %v1999_v16 = vsel %vm1998_vm12, %v5449_v35, %v5448_v38  ;;  %v4809_v62 = vmul.f32 %v2173_v32, %v5450_v13  ;;  %v5457_v43 = vld [vmem:[#allocation49_spill] sm:$0xff]  ;;  %v5458_v4 = vld [vmem:[#allocation44_spill] sm:$0xff]  ;;  %v5459_v32 = vld [vmem:[#allocation90_spill] sm:$0xff] }
 0x3d9   : > { %v1960_v47 = vsel %vm1959_vm11, %v5451_v9, %v4576_v33  ;;  %v2000_v59 = vsel %vm1998_vm12, %v5448_v38, %v4605_v2  ;;  %vm2076_vm5 = vcmask 769024   ;;  %v4818_v41 = vadd.s32 2, %v4559_v52  ;;  %v5454_v33 = vld [vmem:[#allocation83_spill] sm:$0xff]  ;;  %v5461_v35 = vld [vmem:[#allocation56_spill] sm:$0xff] }
 0x3da   : > { %v2003_v50 = vmul.f32 %v1999_v16, %v5452_v8  ;;  %v2038_v29 = vsel %vm2037_vm2, %v5453_v37, %v4641_v53  ;;  %v2039_v19 = vsel %vm2037_vm2, %v4641_v53, %v4574_v51  ;;  %vm2328_vm11 = vcmask 891904   ;;  %v2362_v2 = vpop.permute.xlu1 %2361 }
 0x3db   : > { %v4774_v44 = vpop.permute.xlu0 %2326  ;;  %v4828_v0 = vsel %vm996_vm9, %v5454_v33, 0.0  ;;  %v1964_v46 = vmul.f32 %v1960_v47, %v5357_v1  ;;  %v1921_v7 = vsel %vm1920_vm10, %v5455_v15, %v4595_v49  ;;  %v1922_v5 = vsel %vm1920_vm10, %v4595_v49, %v5456_v42  ;;  %v5464_v15 = vld [vmem:[#allocation41_spill] sm:$0xff] }
 0x3dc   : > { %v2004_v51 = vmul.f32 %v2000_v59, %v5452_v8  ;;  %v2042_v1 = vmul.f32 %v2038_v29, %v5457_v43  ;;  %v2043_v56 = vmul.f32 %v2039_v19, %v5457_v43  ;;  %vm2131_vm7 = vcmp.lt.s32.totalorder %v4818_v41, 16  ;;  %v5462_v59 = vld [vmem:[#allocation85_spill] sm:$0xff]  ;;  %v5468_v43 = vld [vmem:[#allocation42_spill] sm:$0xff] }
 0x3dd   : > { %vm2367_vm1 = vcmask 760832   ;;  %v1925_v17 = vmul.f32 %v1921_v7, %v5458_v4  ;;  %v1926_v49 = vmul.f32 %v1922_v5, %v5458_v4  ;;  %vm2406_vm8 = vcmask 629760   ;;  %v5465_v7 = vld [vmem:[#allocation39_spill] sm:$0xff]  ;;  %v5466_v42 = vld [vmem:[#allocation93_spill] sm:$0xff] }
 0x3de   : > { %v2251_v58 = vsel %vm2250_vm13, %v5459_v32, %v4591_v14  ;;  %v2174_v47 = vsel %vm2172_vm0, %v5444_v12, %v4587_v28  ;;  %v2252_v8 = vsel %vm2250_vm13, %v4591_v14, %v5462_v59  ;;  %vm2130_vm9 = vcmp.lt.s32.totalorder %v4840_v6, 16  ;;  %v5463_v28 = vld [vmem:[#allocation48_spill] sm:$0xff] }
 0x3df   : > { %v2073_v27 = vpop.permute.xlu0 %2072  ;;  %vm1839_vm12 = vcmp.lt.s32.totalorder %v4650_v26, 16  ;;  %v2045_v29 = vadd.f32 %v2043_v56, %v4585_v21  ;;  %v2255_v12 = vmul.f32 %v2251_v58, %v5463_v28  ;;  %v2290_v14 = vsel %vm2289_vm4, %v4593_v63, %v4728_v23  ;;  %v5469_v56 = vld [vmem:[#allocation54_spill] sm:$0xff] }
 0x3e0   : > { %v2078_v53 = vsel %vm2076_vm5, %v2073_v27, %v2075_v54  ;;  %v2077_v48 = vsel %vm2076_vm5, %v4714_v3, %v2073_v27  ;;  %v1966_v54 = vadd.f32 %v1964_v46, %v1886_v57  ;;  %v2006_v3 = vadd.f32 %v2004_v51, %v1926_v49  ;;  %v2366_v27 = vpop.permute.xlu1 %2365 }
 0x3e1   : > { %v2082_v38 = vmul.f32 %v2078_v53, %v5460_v36  ;;  %v2081_v19 = vmul.f32 %v2077_v48, %v5460_v36  ;;  %v2005_v46 = vadd.f32 %v2003_v50, %v1925_v17  ;;  %vm705_vm0 = vcmp.ge.s32.totalorder %v5464_v15, 0  ;;  %v5470_v17 = vld [vmem:[#allocation51_spill] sm:$0xff]  ;;  %v5471_v36 = vld [vmem:[#allocation52_spill] sm:$0xff] }
 0x3e2   : > { %v2044_v37 = vadd.f32 %v2042_v1, %v1966_v54  ;;  %v2212_v21 = vsel %vm2211_vm3, %v5466_v42, %v5465_v7  ;;  %v2178_v50 = vmul.f32 %v2174_v47, %v5450_v13  ;;  %v2291_v63 = vsel %vm2289_vm4, %v4728_v23, %v5468_v43 }
 0x3e3   : > { %v2110_v45 = vpop.permute.xlu0 %2109  ;;  %v2084_v5 = vadd.f32 %v2082_v38, %v2006_v3  ;;  %v2417_v1 = vadd.s32 3, %v4600_v61  ;;  %v2294_v4 = vmul.f32 %v2290_v14, %v5469_v56  ;;  %v2083_v48 = vadd.f32 %v2081_v19, %v2005_v46 }
 0x3e4   : > { %v2116_v24 = vsel %vm2115_vm6, %v2110_v45, %v2112_v34  ;;  %v2256_v32 = vmul.f32 %v2252_v8, %v5463_v28  ;;  %v2257_v58 = vadd.f32 %v2255_v12, %v4809_v62  ;;  %v2216_v13 = vmul.f32 %v2212_v21, %v5471_v36  ;;  %v2403_v38 = vpop.permute.xlu1 %2402 }
 0x3e5   : > { %v2120_v16 = vmul.f32 %v2116_v24, %v5461_v35  ;;  %v5467_v24 = vld [vmem:[#allocation46_spill] sm:$0xff]  ;;  %v2330_v23 = vsel %vm2328_vm11, %v4675_v60, %v4774_v44  ;;  %v2213_v61 = vsel %vm2211_vm3, %v5465_v7, %v4699_v25  ;;  %v2295_v62 = vmul.f32 %v2291_v63, %v5469_v56 }
 0x3e6   : > { %vm1286_vm14 = vcmp.ge.s32.totalorder %v5467_v24, 0  ;;  %v2296_v44 = vadd.f32 %v2294_v4, %v2216_v13  ;;  %v5473_v25 = vld [vmem:[#allocation86_spill] sm:$0xff]  ;;  %v1554_v41 = vadd.f32 %v4800_v39, %v4791_v18  ;;  %v2217_v19 = vmul.f32 %v2213_v61, %v5471_v36  ;;  %v5476_v4 = vld [vmem:[#allocation84_spill] sm:$0xff] }
 0x3e7   : > { %v2114_v9 = vpop.permute.xlu0 %2113  ;;  %v2122_v45 = vadd.f32 %v2120_v16, %v2044_v37  ;;  %v5472_v16 = vld [vmem:[#allocation53_spill] sm:$0xff]  ;;  %vm2421_vm15 = vcmp.lt.s32.totalorder %v2417_v1, 16  ;;  %v2418_v18 = vadd.s32 3, %v4559_v52  ;;  %vm1287_vm13 = vcmp.ge.s32.totalorder %v4786_v31, 0 }
 0x3e8   : > { %v2117_v57 = vsel %vm2115_vm6, %v2112_v34, %v2114_v9  ;;  %v2329_v34 = vsel %vm2328_vm11, %v4758_v40, %v4675_v60  ;;  %v2297_v7 = vadd.f32 %v2295_v62, %v2217_v19  ;;  %v1296_v52 = vsel %vm1286_vm14, %v4780_v30, 0.0  ;;  %v5475_v1 = vld [vmem:[#allocation17_spill] sm:$0xff] }
 0x3e9   : > { %v2121_v33 = vmul.f32 %v2117_v57, %v5461_v35  ;;  %v2333_v49 = vmul.f32 %v2329_v34, %v5470_v17  ;;  %v2334_v57 = vmul.f32 %v2330_v23, %v5470_v17  ;;  %v1847_v34 = vsel %vm1839_vm12, %v4802_v20, 0.0 }
 0x3ea   : > { %vm2422_vm10 = vcmp.lt.s32.totalorder %v2418_v18, 16  ;;  %vm2439_vm2 = vcmask 1041408  }
 0x3eb   : > { %v2123_v51 = vadd.f32 %v2121_v33, %v2045_v29  ;;  %v2364_v53 = vpop.permute.xlu0 %2363  ;;  %v2335_v3 = vadd.f32 %v2333_v49, %v2257_v58  ;;  %v2258_v29 = vadd.f32 %v2256_v32, %v2178_v50  ;;  %v5474_v33 = vld [vmem:[#allocation37_spill] sm:$0xff] }
 0x3ec   : > { %v2368_v40 = vsel %vm2367_vm1, %v2362_v2, %v2364_v53  ;;  %v2124_v2 = vadd.f32 %v2122_v45, %v2083_v48  ;;  %v2369_v8 = vsel %vm2367_vm1, %v2364_v53, %v2366_v27  ;;  %v1515_v45 = vadd.f32 %v4797_v55, %v4789_v22 }
 0x3ed   : > { %v2125_v54 = vadd.f32 %v2123_v51, %v2084_v5  ;;  %v2372_v9 = vmul.f32 %v2368_v40, %v5472_v16  ;;  %v2373_v27 = vmul.f32 %v2369_v8, %v5472_v16  ;;  %v2336_v42 = vadd.f32 %v2334_v57, %v2258_v29  ;;  %v5478_v57 = vld [vmem:[#allocation59_spill] sm:$0xff] }
 0x3ee   : > { %v715_v5 = vsel %vm705_vm0, %v4766_v11, 0.0  ;;  %v1556_v50 = vadd.f32 %v1554_v41, %v1515_v45  ;;  %v1297_v22 = vsel %vm1287_vm13, %v5475_v1, 0.0  ;;  %v5480_v29 = vld [vmem:[#allocation63_spill] sm:$0xff] }
 0x3ef   : > { %v2139_v35 = vsel %vm2131_vm7, %v2125_v54, 0.0  ;;  %v2401_v47 = vpop.permute.xlu0 %2400  ;;  %v2374_v12 = vadd.f32 %v2372_v9, %v2296_v44  ;;  %v2375_v20 = vadd.f32 %v2373_v27, %v2297_v7  ;;  %v1849_v43 = vadd.f32 %v1847_v34, %v715_v5  ;;  %v5477_v44 = vld [vmem:[#allocation57_spill] sm:$0xff]  ;;  %v5483_v27 = vld [vmem:[#allocation60_spill] sm:$0xff] }
 0x3f0   : > { %v2141_v59 = vadd.f32 %v2139_v35, %v4828_v0  ;;  %v2407_v60 = vsel %vm2406_vm8, %v2401_v47, %v2403_v38  ;;  %v2138_v0 = vsel %vm2130_vm9, %v2124_v2, 0.0  ;;  %v5485_v34 = vld [vmem:[#allocation64_spill] sm:$0xff] }
 0x3f1   : > { %v2411_v37 = vmul.f32 %v2407_v60, %v5473_v25  ;;  %v2140_v26 = vadd.f32 %v2138_v0, %v4778_v10 }
 0x3f2   : > { %v2434_v28 = vadd.f32 %v2141_v59, %v5474_v33 }
 0x3f3   : > { %v2413_v46 = vadd.f32 %v2411_v37, %v2335_v3  ;;  %v2405_v14 = vpop.permute.xlu0 %2404  ;;  %v2433_v11 = vadd.f32 %v2140_v26, %v1849_v43  ;;  %v5479_v37 = vld [vmem:[#allocation61_spill] sm:$0xff] }
 0x3f4   : > { %v2408_v39 = vsel %vm2406_vm8, %v2403_v38, %v2405_v14 }
 0x3f5   : > { %v2415_v21 = vadd.f32 %v2413_v46, %v2374_v12  ;;  %v2412_v6 = vmul.f32 %v2408_v39, %v5473_v25  ;;  %v5484_v46 = vld [vmem:[#allocation62_spill] sm:$0xff] }
 0x3f7   : > { %v2429_v51 = vsel %vm2421_vm15, %v2415_v21, 0.0  ;;  %v2414_v53 = vadd.f32 %v2412_v6, %v2336_v42 }
 0x3f8   : > { %v2431_v63 = vadd.f32 %v2429_v51, %v1296_v52 }
 0x3f9   : > { %v2416_v15 = vadd.f32 %v2414_v53, %v2375_v20 }
 0x3fa   : > { %v2435_v40 = vadd.f32 %v2431_v63, %v1556_v50 }
 0x3fb   : > { %v2430_v31 = vsel %vm2422_vm10, %v2416_v15, 0.0 }
 0x3fc   : > { %v2437_v55 = vadd.f32 %v2435_v40, %v2433_v11  ;;  %v2432_v10 = vadd.f32 %v2430_v31, %v1297_v22 }
 0x3fe   : > { %v2440_v56 = vsel %vm2439_vm2, %v2437_v55, 0.0  ;;  %v2436_v24 = vadd.f32 %v2432_v10, %v5476_v4 }
 0x3ff   : > { %v2441_v30 = vrot.slane %v2440_v56, 4 }
 0x400   : > { %v2438_v17 = vadd.f32 %v2436_v24, %v2434_v28  ;;  %v5482_v28 = vld [vmem:[#allocation58_spill] sm:$0xff] }
 0x401   : > { %v2442_v49 = vadd.f32 %v2441_v30, %v2440_v56 }
 0x402   : > { %v2447_v48 = vsel %vm2439_vm2, %v2438_v17, 0.0 }
 0x403   : > { %v2443_v54 = vrot.slane %v2442_v49, 2  ;;  %v2448_v32 = vrot.slane %v2447_v48, 4 }
 0x405   : > { %v2444_v58 = vadd.f32 %v2443_v54, %v2442_v49  ;;  %v2449_v36 = vadd.f32 %v2448_v32, %v2447_v48 }
 0x407   : > { %v2445_v13 = vrot.slane %v2444_v58, 1  ;;  %v2450_v23 = vrot.slane %v2449_v36, 2 }
 0x409   : > { %v2446_v38 = vadd.f32 %v2445_v13, %v2444_v58  ;;  %v2451_v61 = vadd.f32 %v2450_v23, %v2449_v36 }
 0x40b   : > { %v2583_v2 = vmul.f32 -1.442695, %v2446_v38  ;;  %v2452_v35 = vrot.slane %v2451_v61, 1 }
 0x40d   : > { %2854 = vpow2.f32 %v2583_v2  ;;  %v2453_v16 = vadd.f32 %v2452_v35, %v2451_v61 }
 0x40f   : > { %v2584_v9 = vmul.f32 -1.442695, %v2453_v16 }
 0x411   : > { %2856 = vpow2.f32 %v2584_v9 }
 0x417   : > { %v2855_v47 = vpop.eup %2854 }
 0x418   : > { %v2460_v62 = vadd.f32 1.0, %v2855_v47 }
 0x41a   : > { %2858 = vrcp.f32 %v2460_v62 }
 0x41b   : > { %v2857_v59 = vpop.eup %2856 }
 0x41c   : > { %v2461_v8 = vadd.f32 1.0, %v2857_v59 }
 0x41e   : > { %2860 = vrcp.f32 %v2461_v8 }
 0x424   : > { %v2859_v60 = vpop.eup %2858 }
 0x425   : > { %v2466_v3 = vmul.f32 %v2859_v60, %v5477_v44  ;;  %v2468_v25 = vmul.f32 %v2859_v60, %v5478_v57  ;;  %v2470_v41 = vmul.f32 %v2859_v60, %v5479_v37  ;;  %v2472_v19 = vmul.f32 %v2859_v60, %v5480_v29 }
 0x427   : > { %2474 = vst [vmem:[%s215_s7] sm:$0xff] %v2466_v3  ;;  %2476 = vst [vmem:[%s215_s7 + $0x10] sm:$0xff] %v2468_v25 }
 0x428   : > { %2478 = vst [vmem:[%s215_s7 + $0x20] sm:$0xff] %v2470_v41  ;;  %2480 = vst [vmem:[%s215_s7 + $0x30] sm:$0xff] %v2472_v19  ;;  %v2861_v33 = vpop.eup %2860 }
 0x429   : > { %v2467_v0 = vmul.f32 %v2861_v33, %v5482_v28  ;;  %v2469_v12 = vmul.f32 %v2861_v33, %v5483_v27  ;;  %v2471_v14 = vmul.f32 %v2861_v33, %v5484_v46  ;;  %v2473_v18 = vmul.f32 %v2861_v33, %v5485_v34 }
 0x42b   : > { %2475 = vst [vmem:[%s215_s7 + $0x8] sm:$0xff] %v2467_v0  ;;  %2477 = vst [vmem:[%s215_s7 + $0x18] sm:$0xff] %v2469_v12 }
 0x42c   : > { %2479 = vst [vmem:[%s215_s7 + $0x28] sm:$0xff] %v2471_v14  ;;  %2481 = vst [vmem:[%s215_s7 + $0x38] sm:$0xff] %v2473_v18 }
 0x42d   : > { %2905 = shalt.err (!%p2902_p2)
}
 0x42e   : > { %s2906_s23 = scalar_lea.hbm %s4940_s14, 1024  ;;  %s2910_s30 = scalar_lea.hbm %s4995_s4, 2048 }
 0x42f   : > { %p2907_p4 = scmp.ne.s32.totalorder %s4940_s14, %s2906_s23  ;;  %p2911_p9 = scmp.lt.u32.totalorder %s4940_s14, %s4995_s4 }
 0x430   : > { %p2912_p1 = scmp.lt.u32.totalorder %s2910_s30, %s2906_s23  ;;  %p2914_p6 = scmp.lt.u32.totalorder %s2906_s23, %s4940_s14 }
 0x431   : > { %p2908_p5 = pnand %p2907_p4, %p5486_p11 }
 0x432   : > { %p2913_p3 = por %p2912_p1, %p2911_p9 }
 0x433   : > { %p2909_p7 = pneg %p2908_p5 }
 0x434   : > { %p2915_p12 = por %p2914_p6, %p2913_p3 }
 0x436   : > { %p2916_p13 = pnand %p2915_p12, %p2909_p7 }
 0x438   : > { %2919 = shalt.err (!%p2916_p13)
}
 0x439   : > { %s3064_s7 = smov 256  }
 0x43a   : > { %2594 = dma.vmem_to_hbm [thread:$0]  (%p5486_p11), %s4946_s20, 1024, %s4940_s14, %s2483_s19, %s3064_s7, %s3064_s7, %s5275_s12  }
 0x43b PF: > { %s2511_s22 = sand.u32 1, %s2946_s15   ;;  %p5487_p8 = scmp.ne.s32.totalorder %s5135_s28, 0 }
 0x43c   : > { %p5488_p10 = scmp.ge.s32.totalorder %s2958_s18, 2  ;;  %s2512_s5 = scalar_lea.sflag [#allocation5], %s2511_s22 }
 0x43e   : > { %p2601_p0 = pnand %p5488_p10, %p5487_p8 }
 0x440   : > { %2941 = dma.done.wait (!%p2601_p0), %s2512_s5, 1024  }
 0x441   : > { %2943 = vsyncadd (!%p2601_p0), %s2512_s5, 4294966272  ;;  %p17_p2 = scmp.ge.s32.totalorder %s3115_s21, 4   ;;  %s5489_s15 = smov %s2950_s16 }
 0x442   : > { %s5490_s16 = smov %s2954_s17  ;;  %s5491_s17 = smov %s3127_s24 }
 0x443   : > { %s5492_s18 = smov %s3115_s21  ;;  %19 = sbr.rel (!%p17_p2) target bundleno = 5 (0x5), region = 83 }
 0x44a   :  { %2517 = vsyncpa [#allocation4], 1 }
 0x44b   :  { %2519 = vsyncpa [#allocation4 + $0x1], 1 }
 0x44c   :  { %2520 = vsyncpa [#allocation5], 1 }
 0x44d   :  { %2522 = vsyncpa [#allocation5 + $0x1], 1 }

</bundles_post_ra>
